<compile_context>
chip_gen: v5e
topology: v5e:2x2
jax: 0.10.0
libtpu: 0.0.40
codegen_flags: <defaults>
</compile_context>

<pallas_src>
import math

import jax
import jax.numpy as jnp
import numpy as np
from jax.experimental import pallas as pl
from jax.experimental.pallas import tpu as pltpu


def _round_up(x, m):
    return ((x + m - 1) // m) * m


def _cdiv(a, b):
    return (a + b - 1) // b


def _pick_tile(B, block_m):
    """Batch tile: multiple of 16 sublanes; >=2 grid steps whenever the batch
    allows it (keeps v7x's second TensorCore busy); sized so padded-row waste
    in the (masked) last block stays small."""
    min_steps = 2 if B > 16 else 1
    steps = max(_cdiv(B, block_m), min_steps)
    return _round_up(_cdiv(B, steps), 16)


# ----------------------------------------------------------------------------
# Pallas kernel: fused VAE forward (one batch tile per grid step)
# ----------------------------------------------------------------------------
def _vae_kernel(
    x_ref, eps_ref,
    w1_ref, b1_ref, w2_ref, b2_ref, w3_ref, b3_ref,
    wd1_ref, bd1_ref, wd2_ref, bd2_ref, wd3_ref, bd3_ref,
    lat_ref, pxmu_ref, pxls_ref,
):
    f32 = jnp.float32
    bf16 = jnp.bfloat16

    lp = eps_ref.shape[-1]      # padded latent width (128)
    obs = pxmu_ref.shape[-1]    # observation features (1024)

    # x arrives as f32 (no wrapper cast/pad round trip); cast to bf16 on the
    # VPU here — hidden under the MXU/DMA schedule.
    x = x_ref[...].astype(bf16)        # (tm, obs)
    eps = eps_ref[...]                 # (tm, lp) f32

    # ---- encoder ----
    h1 = jnp.dot(x, w1_ref[...], preferred_element_type=f32) + b1_ref[...]
    h1 = jnp.maximum(h1, 0.0).astype(bf16)
    h2 = jnp.dot(h1, w2_ref[...], preferred_element_type=f32) + b2_ref[...]
    h2 = jnp.maximum(h2, 0.0).astype(bf16)

    # fused encoder head: (tm, 2*lp); mu / log_sigma are 128-lane-aligned slices
    head = jnp.dot(h2, w3_ref[...], preferred_element_type=f32) + b3_ref[...]
    mu = head[:, :lp]
    log_sigma = head[:, lp:]

    # ---- reparameterization: z = mu + exp(log_sigma) * eps ----
    # (padded lanes: mu=0, log_sigma=0 -> sigma=1; the resulting lanes multiply
    #  zero rows of wd1 and are sliced away in the wrapper, so they are inert)
    z = mu + jnp.exp(log_sigma) * eps

    # ---- decoder ----
    d1 = jnp.dot(z.astype(bf16), wd1_ref[...], preferred_element_type=f32) + bd1_ref[...]
    d1 = jnp.maximum(d1, 0.0).astype(bf16)
    d2 = jnp.dot(d1, wd2_ref[...], preferred_element_type=f32) + bd2_ref[...]
    d2 = jnp.maximum(d2, 0.0).astype(bf16)

    # fused decoder head: (tm, 2*obs); obs is a multiple of 128 so both slices
    # below are unmasked lane-dense stores.
    px = jnp.dot(d2, wd3_ref[...], preferred_element_type=f32) + bd3_ref[...]

    # ---- outputs ----
    # Latent-sized results fused into one (tm, 3*lp) f32 block (one DMA).
    lat_ref[:, :lp] = mu
    lat_ref[:, lp:2 * lp] = log_sigma
    lat_ref[:, 2 * lp:] = z
    # Big observation-sized results written back as bf16 (halves HBM bytes).
    pxmu_ref[...] = px[:, :obs].astype(bf16)
    pxls_ref[...] = px[:, obs:].astype(bf16)


def vae_forward_pallas(x_flat, eps, params, latent_features, *, block_m=256):
    """Run the fused VAE forward.

    x_flat: (B, obs) f32.  eps: (B, Lp) f32 with Lp the lane-padded latent
    width (only the first `latent_features` lanes are used).  Returns
    (qz_mu, qz_log_sigma, z) as f32 at the true latent width and
    (px_mu, px_log_sigma) as bf16 at (B, obs).
    """
    B, obs = x_flat.shape
    Lp = eps.shape[1]
    L = latent_features

    tm = _pick_tile(B, block_m)
    grid = (_cdiv(B, tm),)

    weight_args = (
        params["w1"], params["b1"], params["w2"], params["b2"],
        params["w3"], params["b3"],
        params["wd1"], params["bd1"], params["wd2"], params["bd2"],
        params["wd3"], params["bd3"],
    )

    def batch_spec(cols):
        return pl.BlockSpec((tm, cols), lambda i: (i, 0))

    def resident_spec(arr):
        # full-array block, constant index -> fetched once, stays VMEM-resident
        return pl.BlockSpec(arr.shape, lambda i: (0, 0))

    in_specs = [batch_spec(obs), batch_spec(Lp)] + [resident_spec(a) for a in weight_args]
    out_specs = (
        batch_spec(3 * Lp),      # fused (mu | log_sigma | z)
        batch_spec(obs),         # px_mu   (bf16)
        batch_spec(obs),         # px_log_sigma (bf16)
    )
    out_shapes = (
        jax.ShapeDtypeStruct((B, 3 * Lp), jnp.float32),
        jax.ShapeDtypeStruct((B, obs), jnp.bfloat16),
        jax.ShapeDtypeStruct((B, obs), jnp.bfloat16),
    )

    lat, px_mu, px_ls = pl.pallas_call(
        _vae_kernel,
        out_shape=out_shapes,
        grid_spec=pltpu.PrefetchScalarGridSpec(
            num_scalar_prefetch=0,
            grid=grid,
            in_specs=in_specs,
            out_specs=out_specs,
        ),
        compiler_params=pltpu.CompilerParams(
            dimension_semantics=("parallel",),
            vmem_limit_bytes=32 << 20,
        ),
    )(x_flat, eps, *weight_args)

    qz_mu = lat[:, :L]
    qz_log_sigma = lat[:, Lp:Lp + L]
    z = lat[:, 2 * Lp:2 * Lp + L]
    return qz_mu, qz_log_sigma, z, px_mu, px_ls


# ----------------------------------------------------------------------------
# Parameter construction (deterministic, torch-Linear-style uniform init)
# ----------------------------------------------------------------------------
def _init_linear(key, fan_in, fan_out):
    bound = 1.0 / math.sqrt(fan_in)
    kw, kb = jax.random.split(key)
    w = jax.random.uniform(kw, (fan_in, fan_out), jnp.float32, -bound, bound)
    b = jax.random.uniform(kb, (1, fan_out), jnp.float32, -bound, bound)
    return w, b


def make_params(key, obs_features, latent_features, weight_dtype=jnp.bfloat16):
    Lp = _round_up(latent_features, 128)
    L = latent_features
    keys = jax.random.split(key, 6)

    # encoder: obs -> 256 -> 128 -> 2*L    decoder: L -> 128 -> 256 -> 2*obs
    w1, b1 = _init_linear(keys[0], obs_features, 256)
    w2, b2 = _init_linear(keys[1], 256, 128)
    w3, b3 = _init_linear(keys[2], 128, 2 * L)
    wd1, bd1 = _init_linear(keys[3], L, 128)
    wd2, bd2 = _init_linear(keys[4], 128, 256)
    wd3, bd3 = _init_linear(keys[5], 256, 2 * obs_features)

    # Encoder head padded to lane width: cols [0:L] = mu half, [Lp:Lp+L] =
    # log_sigma half (== torch chunk(2, -1)), zeros elsewhere.
    w3_pad = jnp.zeros((128, 2 * Lp), jnp.float32)
    w3_pad = w3_pad.at[:, :L].set(w3[:, :L]).at[:, Lp:Lp + L].set(w3[:, L:])
    b3_pad = jnp.zeros((1, 2 * Lp), jnp.float32)
    b3_pad = b3_pad.at[:, :L].set(b3[:, :L]).at[:, Lp:Lp + L].set(b3[:, L:])

    # Decoder first layer padded with zero rows for the padded latent lanes.
    wd1_pad = jnp.zeros((Lp, 128), jnp.float32).at[:L, :].set(wd1)

    return {
        "w1": w1.astype(weight_dtype), "b1": b1,
        "w2": w2.astype(weight_dtype), "b2": b2,
        "w3": w3_pad.astype(weight_dtype), "b3": b3_pad,
        "wd1": wd1_pad.astype(weight_dtype), "bd1": bd1,
        "wd2": wd2.astype(weight_dtype), "bd2": bd2,
        "wd3": wd3.astype(weight_dtype), "bd3": bd3,
    }


# ----------------------------------------------------------------------------
# Pure-JAX reference (same bf16-weight / f32-accumulate precision policy)
# ----------------------------------------------------------------------------
def vae_forward_ref(x_flat, eps_lp, p, latent_features):
    f32 = jnp.float32
    Lp = eps_lp.shape[1]
    L = latent_features

    def mm(a, w):
        return jnp.dot(a.astype(w.dtype), w, preferred_element_type=f32)

    h1 = jnp.maximum(mm(x_flat, p["w1"]) + p["b1"], 0.0)
    h2 = jnp.maximum(mm(h1, p["w2"]) + p["b2"], 0.0)
    head = mm(h2, p["w3"]) + p["b3"]
    mu, log_sigma = head[:, :Lp], head[:, Lp:]
    z = mu + jnp.exp(log_sigma) * eps_lp
    d1 = jnp.maximum(mm(z, p["wd1"]) + p["bd1"], 0.0)
    d2 = jnp.maximum(mm(d1, p["wd2"]) + p["bd2"], 0.0)
    px = mm(d2, p["wd3"]) + p["bd3"]
    obs = px.shape[-1] // 2
    return (mu[:, :L], log_sigma[:, :L], z[:, :L], px[:, :obs], px[:, obs:])


# ----------------------------------------------------------------------------
# Main
# ----------------------------------------------------------------------------
if __name__ == "__main__":
    # Small shapes consistent with the module: input NCHW (B, C, H, W)
    B, C, H, W = 2, 4, 16, 16
    latent_features = 10
    obs_features = C * H * W            # 1024
    Lp = _round_up(latent_features, 128)  # 128

    key = jax.random.PRNGKey(0)
    k_x, k_eps, k_params = jax.random.split(key, 3)

    x = jax.random.uniform(k_x, (B, C, H, W), jnp.float32)      # NCHW input
    x_flat = x.reshape(B, -1)                                   # == x.view(B, -1)
    # eps ~ N(0, I) drawn directly at the lane-padded width (no pad round trip);
    # only the first `latent_features` lanes carry meaning.
    eps = jax.random.normal(k_eps, (B, Lp), jnp.float32)

    params = make_params(k_params, obs_features, latent_features)

    # run the Pallas kernel
    qz_mu, qz_ls, z, px_mu, px_ls = jax.block_until_ready(
        vae_forward_pallas(x_flat, eps, params, latent_features)
    )

    # prior p(z) = N(0, I): mu = 0, log_sigma = 0 (no compute needed)
    pz_mu = jnp.zeros((B, latent_features), jnp.float32)
    pz_log_sigma = jnp.zeros((B, latent_features), jnp.float32)

    # equivalent of the module's return dict (distribution parameters + sample);
    # px sigmoid is only applied inside px.rsample(), never in forward().
    outputs = {
        "px": {"mu": px_mu, "log_sigma": px_ls},
        "pz": {"mu": pz_mu, "log_sigma": pz_log_sigma},
        "qz": {"mu": qz_mu, "log_sigma": qz_ls},
        "z": z,
    }

    # verify against a pure-JAX reference with identical precision policy
    # (px outputs are bf16, so they get a correspondingly looser tolerance)
    ref = vae_forward_ref(x_flat, eps, params, latent_features)
    got = (qz_mu, qz_ls, z, px_mu, px_ls)
    tols = [(5e-3, 5e-3)] * 3 + [(2e-2, 2e-2)] * 2
    for r, g, (rt, at) in zip(ref, got, tols):
        np.testing.assert_allclose(
            np.asarray(r, dtype=np.float32),
            np.asarray(g.astype(jnp.float32)),
            rtol=rt, atol=at,
        )

    print("KERNEL_OK")
</pallas_src>

<mosaic_0001>
module attributes {stable_mosaic.version = 11 : i64} {
  func.func @_vae_kernel(%arg0: i32, %arg1: memref<16x1024xf32, #tpu.memory_space<vmem>>, %arg2: memref<16x128xf32, #tpu.memory_space<vmem>>, %arg3: memref<1024x256xbf16, #tpu.memory_space<vmem>>, %arg4: memref<1x256xf32, #tpu.memory_space<vmem>>, %arg5: memref<256x128xbf16, #tpu.memory_space<vmem>>, %arg6: memref<1x128xf32, #tpu.memory_space<vmem>>, %arg7: memref<128x256xbf16, #tpu.memory_space<vmem>>, %arg8: memref<1x256xf32, #tpu.memory_space<vmem>>, %arg9: memref<128x128xbf16, #tpu.memory_space<vmem>>, %arg10: memref<1x128xf32, #tpu.memory_space<vmem>>, %arg11: memref<128x256xbf16, #tpu.memory_space<vmem>>, %arg12: memref<1x256xf32, #tpu.memory_space<vmem>>, %arg13: memref<256x2048xbf16, #tpu.memory_space<vmem>>, %arg14: memref<1x2048xf32, #tpu.memory_space<vmem>>, %arg15: memref<16x384xf32, #tpu.memory_space<vmem>>, %arg16: memref<16x1024xbf16, #tpu.memory_space<vmem>>, %arg17: memref<16x1024xbf16, #tpu.memory_space<vmem>>) attributes {dimension_semantics = [#tpu.dimension_semantics<parallel>], iteration_bounds = array<i64: 1>, scalar_prefetch = 0 : i64, scratch_operands = 0 : i64, tpu.core_type = #tpu.core_type<tc>, window_params = [{transform_indices = @transform_0, window_bounds = array<i64: 16, 1024>}, {transform_indices = @transform_1, window_bounds = array<i64: 16, 128>}, {pipeline_mode = #tpu.pipeline_mode<synchronous>, transform_indices = @transform_2, window_bounds = array<i64: 1024, 256>}, {pipeline_mode = #tpu.pipeline_mode<synchronous>, transform_indices = @transform_3, window_bounds = array<i64: 1, 256>}, {pipeline_mode = #tpu.pipeline_mode<synchronous>, transform_indices = @transform_4, window_bounds = array<i64: 256, 128>}, {pipeline_mode = #tpu.pipeline_mode<synchronous>, transform_indices = @transform_5, window_bounds = array<i64: 1, 128>}, {pipeline_mode = #tpu.pipeline_mode<synchronous>, transform_indices = @transform_6, window_bounds = array<i64: 128, 256>}, {pipeline_mode = #tpu.pipeline_mode<synchronous>, transform_indices = @transform_7, window_bounds = array<i64: 1, 256>}, {pipeline_mode = #tpu.pipeline_mode<synchronous>, transform_indices = @transform_8, window_bounds = array<i64: 128, 128>}, {pipeline_mode = #tpu.pipeline_mode<synchronous>, transform_indices = @transform_9, window_bounds = array<i64: 1, 128>}, {pipeline_mode = #tpu.pipeline_mode<synchronous>, transform_indices = @transform_10, window_bounds = array<i64: 128, 256>}, {pipeline_mode = #tpu.pipeline_mode<synchronous>, transform_indices = @transform_11, window_bounds = array<i64: 1, 256>}, {pipeline_mode = #tpu.pipeline_mode<synchronous>, transform_indices = @transform_12, window_bounds = array<i64: 256, 2048>}, {pipeline_mode = #tpu.pipeline_mode<synchronous>, transform_indices = @transform_13, window_bounds = array<i64: 1, 2048>}, {transform_indices = @transform_14, window_bounds = array<i64: 16, 384>}, {transform_indices = @transform_15, window_bounds = array<i64: 16, 1024>}, {transform_indices = @transform_16, window_bounds = array<i64: 16, 1024>}]} {
    %c0 = arith.constant 0 : index
    %c0_0 = arith.constant 0 : index
    %0 = vector.load %arg1[%c0, %c0_0] : memref<16x1024xf32, #tpu.memory_space<vmem>>, vector<16x1024xf32>
    %1 = arith.truncf %0 : vector<16x1024xf32> to vector<16x1024xbf16>
    %c0_1 = arith.constant 0 : index
    %c0_2 = arith.constant 0 : index
    %2 = vector.load %arg2[%c0_1, %c0_2] : memref<16x128xf32, #tpu.memory_space<vmem>>, vector<16x128xf32>
    %c0_3 = arith.constant 0 : index
    %c0_4 = arith.constant 0 : index
    %3 = vector.load %arg3[%c0_3, %c0_4] : memref<1024x256xbf16, #tpu.memory_space<vmem>>, vector<1024x256xbf16>
    %cst = arith.constant dense<0.000000e+00> : vector<16x256xf32>
    %4 = tpu.matmul %1, %3, %cst {dimension_numbers = #tpu.dot_dimension_numbers<[1], [0], [0], [1], [0, 0, 1, 1], [], []>} : vector<16x1024xbf16>, vector<1024x256xbf16>, vector<16x256xf32> -> vector<16x256xf32>
    %c0_5 = arith.constant 0 : index
    %c0_6 = arith.constant 0 : index
    %5 = vector.load %arg4[%c0_5, %c0_6] : memref<1x256xf32, #tpu.memory_space<vmem>>, vector<1x256xf32>
    %6 = vector.broadcast %5 : vector<1x256xf32> to vector<16x256xf32>
    %7 = arith.addf %4, %6 : vector<16x256xf32>
    %cst_7 = arith.constant 0.000000e+00 : f32
    %8 = vector.broadcast %cst_7 : f32 to vector<16x256xf32>
    %9 = arith.maximumf %7, %8 : vector<16x256xf32>
    %10 = arith.truncf %9 : vector<16x256xf32> to vector<16x256xbf16>
    %c0_8 = arith.constant 0 : index
    %c0_9 = arith.constant 0 : index
    %11 = vector.load %arg5[%c0_8, %c0_9] : memref<256x128xbf16, #tpu.memory_space<vmem>>, vector<256x128xbf16>
    %cst_10 = arith.constant dense<0.000000e+00> : vector<16x128xf32>
    %12 = tpu.matmul %10, %11, %cst_10 {dimension_numbers = #tpu.dot_dimension_numbers<[1], [0], [0], [1], [0, 0, 1, 1], [], []>} : vector<16x256xbf16>, vector<256x128xbf16>, vector<16x128xf32> -> vector<16x128xf32>
    %c0_11 = arith.constant 0 : index
    %c0_12 = arith.constant 0 : index
    %13 = vector.load %arg6[%c0_11, %c0_12] : memref<1x128xf32, #tpu.memory_space<vmem>>, vector<1x128xf32>
    %14 = vector.broadcast %13 : vector<1x128xf32> to vector<16x128xf32>
    %15 = arith.addf %12, %14 : vector<16x128xf32>
    %cst_13 = arith.constant 0.000000e+00 : f32
    %16 = vector.broadcast %cst_13 : f32 to vector<16x128xf32>
    %17 = arith.maximumf %15, %16 : vector<16x128xf32>
    %18 = arith.truncf %17 : vector<16x128xf32> to vector<16x128xbf16>
    %c0_14 = arith.constant 0 : index
    %c0_15 = arith.constant 0 : index
    %19 = vector.load %arg7[%c0_14, %c0_15] : memref<128x256xbf16, #tpu.memory_space<vmem>>, vector<128x256xbf16>
    %cst_16 = arith.constant dense<0.000000e+00> : vector<16x256xf32>
    %20 = tpu.matmul %18, %19, %cst_16 {dimension_numbers = #tpu.dot_dimension_numbers<[1], [0], [0], [1], [0, 0, 1, 1], [], []>} : vector<16x128xbf16>, vector<128x256xbf16>, vector<16x256xf32> -> vector<16x256xf32>
    %c0_17 = arith.constant 0 : index
    %c0_18 = arith.constant 0 : index
    %21 = vector.load %arg8[%c0_17, %c0_18] : memref<1x256xf32, #tpu.memory_space<vmem>>, vector<1x256xf32>
    %22 = vector.broadcast %21 : vector<1x256xf32> to vector<16x256xf32>
    %23 = arith.addf %20, %22 : vector<16x256xf32>
    %24 = vector.extract_strided_slice %23 {offsets = [0, 0], sizes = [16, 128], strides = [1, 1]} : vector<16x256xf32> to vector<16x128xf32>
    %25 = vector.extract_strided_slice %23 {offsets = [0, 128], sizes = [16, 128], strides = [1, 1]} : vector<16x256xf32> to vector<16x128xf32>
    %26 = math.exp %25 : vector<16x128xf32>
    %27 = arith.mulf %26, %2 : vector<16x128xf32>
    %28 = arith.addf %24, %27 : vector<16x128xf32>
    %29 = arith.truncf %28 : vector<16x128xf32> to vector<16x128xbf16>
    %c0_19 = arith.constant 0 : index
    %c0_20 = arith.constant 0 : index
    %30 = vector.load %arg9[%c0_19, %c0_20] : memref<128x128xbf16, #tpu.memory_space<vmem>>, vector<128x128xbf16>
    %cst_21 = arith.constant dense<0.000000e+00> : vector<16x128xf32>
    %31 = tpu.matmul %29, %30, %cst_21 {dimension_numbers = #tpu.dot_dimension_numbers<[1], [0], [0], [1], [0, 0, 1, 1], [], []>} : vector<16x128xbf16>, vector<128x128xbf16>, vector<16x128xf32> -> vector<16x128xf32>
    %c0_22 = arith.constant 0 : index
    %c0_23 = arith.constant 0 : index
    %32 = vector.load %arg10[%c0_22, %c0_23] : memref<1x128xf32, #tpu.memory_space<vmem>>, vector<1x128xf32>
    %33 = vector.broadcast %32 : vector<1x128xf32> to vector<16x128xf32>
    %34 = arith.addf %31, %33 : vector<16x128xf32>
    %cst_24 = arith.constant 0.000000e+00 : f32
    %35 = vector.broadcast %cst_24 : f32 to vector<16x128xf32>
    %36 = arith.maximumf %34, %35 : vector<16x128xf32>
    %37 = arith.truncf %36 : vector<16x128xf32> to vector<16x128xbf16>
    %c0_25 = arith.constant 0 : index
    %c0_26 = arith.constant 0 : index
    %38 = vector.load %arg11[%c0_25, %c0_26] : memref<128x256xbf16, #tpu.memory_space<vmem>>, vector<128x256xbf16>
    %cst_27 = arith.constant dense<0.000000e+00> : vector<16x256xf32>
    %39 = tpu.matmul %37, %38, %cst_27 {dimension_numbers = #tpu.dot_dimension_numbers<[1], [0], [0], [1], [0, 0, 1, 1], [], []>} : vector<16x128xbf16>, vector<128x256xbf16>, vector<16x256xf32> -> vector<16x256xf32>
    %c0_28 = arith.constant 0 : index
    %c0_29 = arith.constant 0 : index
    %40 = vector.load %arg12[%c0_28, %c0_29] : memref<1x256xf32, #tpu.memory_space<vmem>>, vector<1x256xf32>
    %41 = vector.broadcast %40 : vector<1x256xf32> to vector<16x256xf32>
    %42 = arith.addf %39, %41 : vector<16x256xf32>
    %cst_30 = arith.constant 0.000000e+00 : f32
    %43 = vector.broadcast %cst_30 : f32 to vector<16x256xf32>
    %44 = arith.maximumf %42, %43 : vector<16x256xf32>
    %45 = arith.truncf %44 : vector<16x256xf32> to vector<16x256xbf16>
    %c0_31 = arith.constant 0 : index
    %c0_32 = arith.constant 0 : index
    %46 = vector.load %arg13[%c0_31, %c0_32] : memref<256x2048xbf16, #tpu.memory_space<vmem>>, vector<256x2048xbf16>
    %cst_33 = arith.constant dense<0.000000e+00> : vector<16x2048xf32>
    %47 = tpu.matmul %45, %46, %cst_33 {dimension_numbers = #tpu.dot_dimension_numbers<[1], [0], [0], [1], [0, 0, 1, 1], [], []>} : vector<16x256xbf16>, vector<256x2048xbf16>, vector<16x2048xf32> -> vector<16x2048xf32>
    %c0_34 = arith.constant 0 : index
    %c0_35 = arith.constant 0 : index
    %48 = vector.load %arg14[%c0_34, %c0_35] : memref<1x2048xf32, #tpu.memory_space<vmem>>, vector<1x2048xf32>
    %49 = vector.broadcast %48 : vector<1x2048xf32> to vector<16x2048xf32>
    %50 = arith.addf %47, %49 : vector<16x2048xf32>
    %c0_36 = arith.constant 0 : index
    %c0_37 = arith.constant 0 : index
    %51 = vector.load %arg15[%c0_36, %c0_37] : memref<16x384xf32, #tpu.memory_space<vmem>>, vector<16x128xf32>
    tpu.vector_store %arg15[%c0_36, %c0_37], %24 {strides = array<i32>} : memref<16x384xf32, #tpu.memory_space<vmem>>, vector<16x128xf32>,
    %c0_38 = arith.constant 0 : index
    %c128 = arith.constant 128 : index
    %52 = vector.load %arg15[%c0_38, %c128] : memref<16x384xf32, #tpu.memory_space<vmem>>, vector<16x128xf32>
    tpu.vector_store %arg15[%c0_38, %c128], %25 {strides = array<i32>} : memref<16x384xf32, #tpu.memory_space<vmem>>, vector<16x128xf32>,
    %c0_39 = arith.constant 0 : index
    %c256 = arith.constant 256 : index
    %53 = vector.load %arg15[%c0_39, %c256] : memref<16x384xf32, #tpu.memory_space<vmem>>, vector<16x128xf32>
    tpu.vector_store %arg15[%c0_39, %c256], %28 {strides = array<i32>} : memref<16x384xf32, #tpu.memory_space<vmem>>, vector<16x128xf32>,
    %54 = vector.extract_strided_slice %50 {offsets = [0, 0], sizes = [16, 1024], strides = [1, 1]} : vector<16x2048xf32> to vector<16x1024xf32>
    %55 = arith.truncf %54 : vector<16x1024xf32> to vector<16x1024xbf16>
    %c0_40 = arith.constant 0 : index
    %c0_41 = arith.constant 0 : index
    %56 = vector.load %arg16[%c0_40, %c0_41] : memref<16x1024xbf16, #tpu.memory_space<vmem>>, vector<16x1024xbf16>
    tpu.vector_store %arg16[%c0_40, %c0_41], %55 {strides = array<i32>} : memref<16x1024xbf16, #tpu.memory_space<vmem>>, vector<16x1024xbf16>,
    %57 = vector.extract_strided_slice %50 {offsets = [0, 1024], sizes = [16, 1024], strides = [1, 1]} : vector<16x2048xf32> to vector<16x1024xf32>
    %58 = arith.truncf %57 : vector<16x1024xf32> to vector<16x1024xbf16>
    %c0_42 = arith.constant 0 : index
    %c0_43 = arith.constant 0 : index
    %59 = vector.load %arg17[%c0_42, %c0_43] : memref<16x1024xbf16, #tpu.memory_space<vmem>>, vector<16x1024xbf16>
    tpu.vector_store %arg17[%c0_42, %c0_43], %58 {strides = array<i32>} : memref<16x1024xbf16, #tpu.memory_space<vmem>>, vector<16x1024xbf16>,
    return
  }
  func.func @transform_0(%arg0: i32) -> (i32, i32) {
    %c0_i32 = arith.constant 0 : i32
    %c0_i32_0 = arith.constant 0 : i32
    return %arg0, %c0_i32 : i32, i32
  }
  func.func @transform_1(%arg0: i32) -> (i32, i32) {
    %c0_i32 = arith.constant 0 : i32
    %c0_i32_0 = arith.constant 0 : i32
    return %arg0, %c0_i32 : i32, i32
  }
  func.func @transform_2(%arg0: i32) -> (i32, i32) {
    %c0_i32 = arith.constant 0 : i32
    %c0_i32_0 = arith.constant 0 : i32
    %c0_i32_1 = arith.constant 0 : i32
    return %c0_i32, %c0_i32_0 : i32, i32
  }
  func.func @transform_3(%arg0: i32) -> (i32, i32) {
    %c0_i32 = arith.constant 0 : i32
    %c0_i32_0 = arith.constant 0 : i32
    %c0_i32_1 = arith.constant 0 : i32
    return %c0_i32, %c0_i32_0 : i32, i32
  }
  func.func @transform_4(%arg0: i32) -> (i32, i32) {
    %c0_i32 = arith.constant 0 : i32
    %c0_i32_0 = arith.constant 0 : i32
    %c0_i32_1 = arith.constant 0 : i32
    return %c0_i32, %c0_i32_0 : i32, i32
  }
  func.func @transform_5(%arg0: i32) -> (i32, i32) {
    %c0_i32 = arith.constant 0 : i32
    %c0_i32_0 = arith.constant 0 : i32
    %c0_i32_1 = arith.constant 0 : i32
    return %c0_i32, %c0_i32_0 : i32, i32
  }
  func.func @transform_6(%arg0: i32) -> (i32, i32) {
    %c0_i32 = arith.constant 0 : i32
    %c0_i32_0 = arith.constant 0 : i32
    %c0_i32_1 = arith.constant 0 : i32
    return %c0_i32, %c0_i32_0 : i32, i32
  }
  func.func @transform_7(%arg0: i32) -> (i32, i32) {
    %c0_i32 = arith.constant 0 : i32
    %c0_i32_0 = arith.constant 0 : i32
    %c0_i32_1 = arith.constant 0 : i32
    return %c0_i32, %c0_i32_0 : i32, i32
  }
  func.func @transform_8(%arg0: i32) -> (i32, i32) {
    %c0_i32 = arith.constant 0 : i32
    %c0_i32_0 = arith.constant 0 : i32
    %c0_i32_1 = arith.constant 0 : i32
    return %c0_i32, %c0_i32_0 : i32, i32
  }
  func.func @transform_9(%arg0: i32) -> (i32, i32) {
    %c0_i32 = arith.constant 0 : i32
    %c0_i32_0 = arith.constant 0 : i32
    %c0_i32_1 = arith.constant 0 : i32
    return %c0_i32, %c0_i32_0 : i32, i32
  }
  func.func @transform_10(%arg0: i32) -> (i32, i32) {
    %c0_i32 = arith.constant 0 : i32
    %c0_i32_0 = arith.constant 0 : i32
    %c0_i32_1 = arith.constant 0 : i32
    return %c0_i32, %c0_i32_0 : i32, i32
  }
  func.func @transform_11(%arg0: i32) -> (i32, i32) {
    %c0_i32 = arith.constant 0 : i32
    %c0_i32_0 = arith.constant 0 : i32
    %c0_i32_1 = arith.constant 0 : i32
    return %c0_i32, %c0_i32_0 : i32, i32
  }
  func.func @transform_12(%arg0: i32) -> (i32, i32) {
    %c0_i32 = arith.constant 0 : i32
    %c0_i32_0 = arith.constant 0 : i32
    %c0_i32_1 = arith.constant 0 : i32
    return %c0_i32, %c0_i32_0 : i32, i32
  }
  func.func @transform_13(%arg0: i32) -> (i32, i32) {
    %c0_i32 = arith.constant 0 : i32
    %c0_i32_0 = arith.constant 0 : i32
    %c0_i32_1 = arith.constant 0 : i32
    return %c0_i32, %c0_i32_0 : i32, i32
  }
  func.func @transform_14(%arg0: i32) -> (i32, i32) {
    %c0_i32 = arith.constant 0 : i32
    %c0_i32_0 = arith.constant 0 : i32
    return %arg0, %c0_i32 : i32, i32
  }
  func.func @transform_15(%arg0: i32) -> (i32, i32) {
    %c0_i32 = arith.constant 0 : i32
    %c0_i32_0 = arith.constant 0 : i32
    return %arg0, %c0_i32 : i32, i32
  }
  func.func @transform_16(%arg0: i32) -> (i32, i32) {
    %c0_i32 = arith.constant 0 : i32
    %c0_i32_0 = arith.constant 0 : i32
    return %arg0, %c0_i32 : i32, i32
  }
}

</mosaic_0001>

<bundles_post_ra>
// kernel: tpu_custom_call.1
= control target key start
LH: loop header
LB: loop body
LE: loop exit
PB: predicated region body
PF: predicated region fallthrough
CT: control target
= control target key end

     0   :  { %s7295_s0 = inlined_call_operand.hbm [shape: f32[2,1024], index: 0, kind: input, shape index: {}]   ;;  %s7296_s1 = inlined_call_operand.hbm [shape: f32[2,128], index: 1, kind: input, shape index: {}]   ;;  %s7297_s2 = inlined_call_operand.hbm [shape: bf16[1024,256], index: 2, kind: input, shape index: {}]   ;;  %s7298_s3 = inlined_call_operand.vmem [shape: f32[1,256], index: 3, kind: input, shape index: {}]   ;;  %s7299_s4 = inlined_call_operand.hbm [shape: bf16[256,128], index: 4, kind: input, shape index: {}]   ;;  %s7300_s5 = inlined_call_operand.hbm [shape: f32[1,128], index: 5, kind: input, shape index: {}]   ;;  %s7301_s6 = inlined_call_operand.hbm [shape: bf16[128,256], index: 6, kind: input, shape index: {}]   ;;  %s7302_s7 = inlined_call_operand.vmem [shape: f32[1,256], index: 7, kind: input, shape index: {}]   ;;  %s7303_s8 = inlined_call_operand.hbm [shape: bf16[128,128], index: 8, kind: input, shape index: {}]   ;;  %s7304_s9 = inlined_call_operand.vmem [shape: f32[1,128], index: 9, kind: input, shape index: {}]   ;;  %s7305_s10 = inlined_call_operand.hbm [shape: bf16[128,256], index: 10, kind: input, shape index: {}]   ;;  %s7306_s11 = inlined_call_operand.vmem [shape: f32[1,256], index: 11, kind: input, shape index: {}]   ;;  %s7307_s12 = inlined_call_operand.hbm [shape: bf16[256,2048], index: 12, kind: input, shape index: {}]   ;;  %s7308_s13 = inlined_call_operand.hbm [shape: f32[1,2048], index: 13, kind: input, shape index: {}]   ;;  %s7309_s14 = inlined_call_operand.hbm [shape: f32[2,384], index: 14, kind: output, shape index: {0}]   ;;  %s7310_s15 = inlined_call_operand.hbm [shape: bf16[2,1024], index: 15, kind: output, shape index: {1}]   ;;  %s7311_s16 = inlined_call_operand.hbm [shape: bf16[2,1024], index: 16, kind: output, shape index: {2}]  }
   0x1   :  { %7320 = sst [smem:[#allocation31_spill]] %s7295_s0 }
   0x2   :  { %7321 = sst [smem:[#allocation32_spill]] %s7311_s16 }
   0x3   :  { %22 = vsyncpa [#allocation3], 0 }
   0x4   :  { %23 = vsyncpa [#allocation6], 0 }
   0x5   :  { %24 = vsyncpa [#allocation9], 0 }
   0x6   :  { %25 = vsyncpa [#allocation12], 0 }
   0x7   :  { %26 = vsyncpa [#allocation15], 0 }
   0x8   :  { %27 = vsyncpa [#allocation18], 0 }
   0x9   :  { %28 = vsyncpa [#allocation4], 0 }
   0xa   :  { %29 = vsyncpa [#allocation21], 0 }
   0xb   :  { %33 = vsyncadd [#allocation3], 1792  ;;  %s7322_s23 = sld [smem:[#allocation31_spill]]  ;;  %s6811_s25 = smov [#allocation2]  }
   0xc   :  { %s36_s26 = sshll.u32 %s6811_s25, 4  ;;  %s6812_s27 = smov 256   ;;  %s37_s26 = int_to_ptr.vmem [resolvable:$true] %s36_s26 }
   0xd   :  { %s6813_s28 = smov 16  }
  0x11   :  { %s34_s24 = sshll.u32 %s7322_s23, 4  ;;  %s35_s24 = int_to_ptr.hbm [resolvable:$true] %s34_s24 }
  0x12   :  { %42 = dma.hbm_to_vmem [thread:$0]  %s35_s24, 256, %s37_s26, [#allocation3], %s6812_s27, %s6812_s27, %s6813_s28  }
  0x13   :  { %46 = vsyncadd [#allocation6], 224  ;;  %s47_s0 = sshll.u32 %s7296_s1, 4  ;;  %s6814_s17 = smov [#allocation5]   ;;  %s48_s0 = int_to_ptr.hbm [resolvable:$true] %s47_s0 }
  0x14   :  { %s49_s18 = sshll.u32 %s6814_s17, 4  ;;  %s75_s21 = sshll.u32 %s7299_s4, 4  ;;  %s50_s18 = int_to_ptr.vmem [resolvable:$true] %s49_s18  ;;  %s76_s21 = int_to_ptr.hbm [resolvable:$true] %s75_s21 }
  0x15   :  { %s6815_s22 = smov 32   ;;  %s6816_s23 = smov 2  }
  0x16   :  { %55 = dma.hbm_to_vmem [thread:$0]  %s48_s0, 32, %s50_s18, [#allocation6], %s6815_s22, %s6815_s22, %s6816_s23  }
  0x17   :  { %s6817_s25 = smov [#allocation8]   ;;  %s6818_s24 = smov 64  }
  0x18   :  { %s77_s16 = sshll.u32 %s6817_s25, 4  ;;  %s6819_s26 = smov 4   ;;  %s78_s16 = int_to_ptr.vmem [resolvable:$true] %s77_s16 }
  0x19   :  { %83 = dma.hbm_to_vmem [thread:$0]  %s76_s21, 2048, %s78_s16, [#allocation9], %s6818_s24, %s6818_s24, %s6819_s26  }
  0x1a   :  { %s99_s28 = sshll.u32 %s7301_s6, 4  ;;  %s6820_s29 = smov [#allocation11]   ;;  %s100_s28 = int_to_ptr.hbm [resolvable:$true] %s99_s28 }
  0x1b   :  { %s101_s4 = sshll.u32 %s6820_s29, 4  ;;  %s129_s17 = sshll.u32 %s7305_s10, 4  ;;  %s102_s4 = int_to_ptr.vmem [resolvable:$true] %s101_s4  ;;  %s130_s17 = int_to_ptr.hbm [resolvable:$true] %s129_s17 }
  0x1c   :  { %s6821_s18 = smov 128   ;;  %s6822_s19 = smov 8  }
  0x1d   :  { %107 = dma.hbm_to_vmem [thread:$0]  %s100_s28, 2048, %s102_s4, [#allocation12], %s6821_s18, %s6821_s18, %s6822_s19  }
  0x1e   :  { %s6823_s16 = smov [#allocation14]   ;;  %s60_s6 = sshll.u32 %s7297_s2, 4  ;;  %s61_s6 = int_to_ptr.hbm [resolvable:$true] %s60_s6 }
  0x1f   :  { %s131_s20 = sshll.u32 %s6823_s16, 4  ;;  %s89_s25 = sshll.u32 %s7300_s5, 4  ;;  %s132_s20 = int_to_ptr.vmem [resolvable:$true] %s131_s20  ;;  %s90_s25 = int_to_ptr.hbm [resolvable:$true] %s89_s25 }
  0x20   :  { %137 = dma.hbm_to_vmem [thread:$0]  %s130_s17, 2048, %s132_s20, [#allocation15], %s6821_s18, %s6821_s18, %s6822_s19  }
  0x21   :  { %s6824_s1 = smov [#allocation7]   ;;  %s6825_s28 = smov [#allocation10]  }
  0x22   :  { %s62_s27 = sshll.u32 %s6824_s1, 4  ;;  %s91_s2 = sshll.u32 %s6825_s28, 4  ;;  %s63_s27 = int_to_ptr.vmem [resolvable:$true] %s62_s27  ;;  %s92_s2 = int_to_ptr.vmem [resolvable:$true] %s91_s2 }
  0x23   :  { %68 = dma.hbm_to_vmem [thread:$0]  %s61_s6, 16384, %s63_s27, [#allocation6], %s6821_s18, %s6821_s18, %s6822_s19  }
  0x24   :  { %s114_s30 = sshll.u32 %s7303_s8, 4  ;;  %s144_s5 = sshll.u32 %s7307_s12, 4  ;;  %s115_s30 = int_to_ptr.hbm [resolvable:$true] %s114_s30  ;;  %s145_s5 = int_to_ptr.hbm [resolvable:$true] %s144_s5 }
  0x25   :  { %94 = dma.hbm_to_vmem [thread:$0]  %s90_s25, 16, %s92_s2, [#allocation9]  }
  0x26   :  { %s6826_s16 = smov [#allocation13]   ;;  %s6827_s21 = smov [#allocation16]  }
  0x27   :  { %s116_s20 = sshll.u32 %s6826_s16, 4  ;;  %s146_s22 = sshll.u32 %s6827_s21, 4  ;;  %s117_s20 = int_to_ptr.vmem [resolvable:$true] %s116_s20  ;;  %s147_s22 = int_to_ptr.vmem [resolvable:$true] %s146_s22 }
  0x28   :  { %122 = dma.hbm_to_vmem [thread:$0]  %s115_s30, 1024, %s117_s20, [#allocation12], %s6818_s24, %s6818_s24, %s6819_s26  }
  0x29   :  { %s158_s10 = sshll.u32 %s7308_s13, 4  ;;  %s6828_s23 = smov 1024   ;;  %s159_s10 = int_to_ptr.hbm [resolvable:$true] %s158_s10 }
  0x2a   :  { %152 = dma.hbm_to_vmem [thread:$0]  %s145_s5, 32768, %s147_s22, [#allocation15], %s6828_s23, %s6828_s23, %s6818_s24  }
  0x2b   :  { %s6829_s12 = smov [#allocation17]  }
  0x2c   :  { %s160_s25 = sshll.u32 %s6829_s12, 4  ;;  %s161_s25 = int_to_ptr.vmem [resolvable:$true] %s160_s25 }
  0x2d   :  { %163 = dma.hbm_to_vmem [thread:$0]  %s159_s10, 256, %s161_s25, [#allocation18]  }
  0x2e   :  { %6795 = dma.done.wait [#allocation3], 2048  }
  0x2f   :  { %6796 = vsyncadd [#allocation3], 4294965248 }
  0x30   :  { %6797 = dma.done.wait [#allocation6], 16640  }
  0x31   :  { %6798 = vsyncadd [#allocation6], 4294950656 }
  0x32   :  { %6799 = dma.done.wait [#allocation9], 2064  }
  0x33   :  { %6800 = vsyncadd [#allocation9], 4294965232 }
  0x34   :  { %6801 = dma.done.wait [#allocation12], 3072  }
  0x35   :  { %6802 = vsyncadd [#allocation12], 4294964224 }
  0x36   :  { %6803 = dma.done.wait [#allocation15], 34816  }
  0x37   :  { %6804 = vsyncadd [#allocation15], 4294932480 }
  0x38   :  { %6805 = dma.done.wait [#allocation18], 256  }
  0x39   :  { %6806 = vsyncadd [#allocation18], 4294967040  ;;  %v4311_v0 = vld [vmem:[#allocation7 + $0x70] sm:$0xf]  ;;  %v6028_v1 = vld [vmem:[#allocation7 + $0x74] sm:$0xf0] }
  0x3a   :  { %v4375_v2 = vld [vmem:[#allocation7 + $0xf0] sm:$0xf]  ;;  %v4312_v3 = vor.u32 %v6028_v1, %v4311_v0  ;;  %v6044_v4 = vld [vmem:[#allocation7 + $0xf4] sm:$0xf0]  ;;  %v4303_v11 = vld [vmem:[#allocation7 + $0x60] sm:$0xf] }
  0x3b   :  { %v4439_v5 = vld [vmem:[#allocation7 + $0x170] sm:$0xf]  ;;  %v6060_v6 = vld [vmem:[#allocation7 + $0x174] sm:$0xf0]  ;;  %v4376_v7 = vor.u32 %v6044_v4, %v4375_v2  ;;  %v6026_v13 = vld [vmem:[#allocation7 + $0x64] sm:$0xf0] }
  0x3c   :  { %v4440_v8 = vor.u32 %v6060_v6, %v4439_v5  ;;  %v4503_v9 = vld [vmem:[#allocation7 + $0x1f0] sm:$0xf]  ;;  %v6076_v10 = vld [vmem:[#allocation7 + $0x1f4] sm:$0xf0]  ;;  %1075 = vmatpush.bf16.msra.mxu0 %v4312_v3  ;;  %v4367_v14 = vld [vmem:[#allocation7 + $0xe0] sm:$0xf]  ;;  %v4304_v16 = vor.u32 %v6026_v13, %v4303_v11 }
  0x3d   :  { %v4504_v12 = vor.u32 %v6076_v10, %v4503_v9  ;;  %v6042_v15 = vld [vmem:[#allocation7 + $0xe4] sm:$0xf0]  ;;  %1089 = vmatpush.bf16.msra.mxu1 %v4376_v7  ;;  %v4431_v18 = vld [vmem:[#allocation7 + $0x160] sm:$0xf]  ;;  %v4295_v23 = vld [vmem:[#allocation7 + $0x50] sm:$0xf] }
  0x3e   :  { %1103 = vmatpush.bf16.msra.mxu2 %v4440_v8  ;;  %v4368_v17 = vor.u32 %v6042_v15, %v4367_v14  ;;  %v6058_v19 = vld [vmem:[#allocation7 + $0x164] sm:$0xf0]  ;;  %v4495_v20 = vld [vmem:[#allocation7 + $0x1e0] sm:$0xf]  ;;  %v6024_v24 = vld [vmem:[#allocation7 + $0x54] sm:$0xf0] }
  0x3f   :  { %1117 = vmatpush.bf16.msra.mxu3 %v4504_v12  ;;  %v4432_v21 = vor.u32 %v6058_v19, %v4431_v18  ;;  %v6074_v22 = vld [vmem:[#allocation7 + $0x1e4] sm:$0xf0]  ;;  %v4359_v26 = vld [vmem:[#allocation7 + $0xd0] sm:$0xf]  ;;  %v6040_v27 = vld [vmem:[#allocation7 + $0xd4] sm:$0xf0]  ;;  %v4296_v29 = vor.u32 %v6024_v24, %v4295_v23 }
  0x40   :  { %v4496_v25 = vor.u32 %v6074_v22, %v4495_v20  ;;  %v4423_v28 = vld [vmem:[#allocation7 + $0x150] sm:$0xf]  ;;  %1076 = vmatpush.bf16.msra.mxu0 %v4304_v16  ;;  %v6056_v30 = vld [vmem:[#allocation7 + $0x154] sm:$0xf0]  ;;  %v4360_v33 = vor.u32 %v6040_v27, %v4359_v26  ;;  %v4287_v35 = vld [vmem:[#allocation7 + $0x40] sm:$0xf] }
  0x41   :  { %v4487_v31 = vld [vmem:[#allocation7 + $0x1d0] sm:$0xf]  ;;  %v6072_v32 = vld [vmem:[#allocation7 + $0x1d4] sm:$0xf0]  ;;  %1090 = vmatpush.bf16.msra.mxu1 %v4368_v17  ;;  %v4424_v34 = vor.u32 %v6056_v30, %v4423_v28  ;;  %v6022_v36 = vld [vmem:[#allocation7 + $0x44] sm:$0xf0] }
  0x42   :  { %1104 = vmatpush.bf16.msra.mxu2 %v4432_v21  ;;  %v4351_v37 = vld [vmem:[#allocation7 + $0xc0] sm:$0xf]  ;;  %v4488_v38 = vor.u32 %v6072_v32, %v4487_v31  ;;  %v6038_v39 = vld [vmem:[#allocation7 + $0xc4] sm:$0xf0]  ;;  %v4288_v44 = vor.u32 %v6022_v36, %v4287_v35  ;;  %v4279_v47 = vld [vmem:[#allocation7 + $0x30] sm:$0xf] }
  0x43   :  { %1118 = vmatpush.bf16.msra.mxu3 %v4496_v25  ;;  %v4415_v40 = vld [vmem:[#allocation7 + $0x140] sm:$0xf]  ;;  %v6054_v41 = vld [vmem:[#allocation7 + $0x144] sm:$0xf0]  ;;  %v4352_v45 = vor.u32 %v6038_v39, %v4351_v37  ;;  %v6020_v48 = vld [vmem:[#allocation7 + $0x34] sm:$0xf0] }
  0x44   :  { %v4479_v42 = vld [vmem:[#allocation7 + $0x1c0] sm:$0xf]  ;;  %v6070_v43 = vld [vmem:[#allocation7 + $0x1c4] sm:$0xf0]  ;;  %1077 = vmatpush.bf16.msra.mxu0 %v4296_v29  ;;  %v4416_v46 = vor.u32 %v6054_v41, %v4415_v40  ;;  %v4343_v49 = vld [vmem:[#allocation7 + $0xb0] sm:$0xf]  ;;  %v4280_v56 = vor.u32 %v6020_v48, %v4279_v47 }
  0x45   :  { %1091 = vmatpush.bf16.msra.mxu1 %v4360_v33  ;;  %v4480_v50 = vor.u32 %v6070_v43, %v4479_v42  ;;  %v6036_v51 = vld [vmem:[#allocation7 + $0xb4] sm:$0xf0]  ;;  %v4407_v52 = vld [vmem:[#allocation7 + $0x130] sm:$0xf]  ;;  %v4271_v59 = vld [vmem:[#allocation7 + $0x20] sm:$0xf] }
  0x46   :  { %1105 = vmatpush.bf16.msra.mxu2 %v4424_v34  ;;  %v6052_v53 = vld [vmem:[#allocation7 + $0x134] sm:$0xf0]  ;;  %v4471_v54 = vld [vmem:[#allocation7 + $0x1b0] sm:$0xf]  ;;  %v4344_v57 = vor.u32 %v6036_v51, %v4343_v49  ;;  %v6018_v60 = vld [vmem:[#allocation7 + $0x24] sm:$0xf0] }
  0x47   :  { %1119 = vmatpush.bf16.msra.mxu3 %v4488_v38  ;;  %v6068_v55 = vld [vmem:[#allocation7 + $0x1b4] sm:$0xf0]  ;;  %v4408_v58 = vor.u32 %v6052_v53, %v4407_v52  ;;  %v4335_v61 = vld [vmem:[#allocation7 + $0xa0] sm:$0xf]  ;;  %v6034_v63 = vld [vmem:[#allocation7 + $0xa4] sm:$0xf0]  ;;  %v4272_v4 = vor.u32 %v6018_v60, %v4271_v59 }
  0x48   :  { %1078 = vmatpush.bf16.msra.mxu0 %v4288_v44  ;;  %v4472_v62 = vor.u32 %v6068_v55, %v4471_v54  ;;  %v4399_v0 = vld [vmem:[#allocation7 + $0x120] sm:$0xf]  ;;  %v6050_v1 = vld [vmem:[#allocation7 + $0x124] sm:$0xf0]  ;;  %v4336_v5 = vor.u32 %v6034_v63, %v4335_v61  ;;  %v4263_v7 = vld [vmem:[#allocation7 + $0x10] sm:$0xf] }
  0x49   :  { %1092 = vmatpush.bf16.msra.mxu1 %v4352_v45  ;;  %v4463_v2 = vld [vmem:[#allocation7 + $0x1a0] sm:$0xf]  ;;  %v6066_v3 = vld [vmem:[#allocation7 + $0x1a4] sm:$0xf0]  ;;  %v4400_v6 = vor.u32 %v6050_v1, %v4399_v0  ;;  %v6016_v8 = vld [vmem:[#allocation7 + $0x14] sm:$0xf0] }
  0x4a   :  { %1106 = vmatpush.bf16.msra.mxu2 %v4416_v46  ;;  %v4327_v9 = vld [vmem:[#allocation7 + $0x90] sm:$0xf]  ;;  %v4464_v10 = vor.u32 %v6066_v3, %v4463_v2  ;;  %v6032_v11 = vld [vmem:[#allocation7 + $0x94] sm:$0xf0]  ;;  %v4264_v16 = vor.u32 %v6016_v8, %v4263_v7  ;;  %v4255_v17 = vld [vmem:[#allocation7] sm:$0xf] }
  0x4b   :  { %1120 = vmatpush.bf16.msra.mxu3 %v4480_v50  ;;  %v4391_v12 = vld [vmem:[#allocation7 + $0x110] sm:$0xf]  ;;  %v6048_v13 = vld [vmem:[#allocation7 + $0x114] sm:$0xf0]  ;;  %v6014_v18 = vld [vmem:[#allocation7 + $0x4] sm:$0xf0]  ;;  %v4328_v19 = vor.u32 %v6032_v11, %v4327_v9 }
  0x4c   :  { %1079 = vmatpush.bf16.msra.mxu0 %v4280_v56  ;;  %v4455_v14 = vld [vmem:[#allocation7 + $0x190] sm:$0xf]  ;;  %v6064_v15 = vld [vmem:[#allocation7 + $0x194] sm:$0xf0]  ;;  %v4392_v20 = vor.u32 %v6048_v13, %v4391_v12  ;;  %v4319_v21 = vld [vmem:[#allocation7 + $0x80] sm:$0xf]  ;;  %v4256_v31 = vor.u32 %v6014_v18, %v4255_v17 }
  0x4d   :  { %1093 = vmatpush.bf16.msra.mxu1 %v4344_v57  ;;  %v6030_v22 = vld [vmem:[#allocation7 + $0x84] sm:$0xf0]  ;;  %v4383_v23 = vld [vmem:[#allocation7 + $0x100] sm:$0xf]  ;;  %v4456_v24 = vor.u32 %v6064_v15, %v4455_v14  ;;  %v4567_v28 = vld [vmem:[#allocation7 + $0x270] sm:$0xf] }
  0x4e   :  { %1107 = vmatpush.bf16.msra.mxu2 %v4408_v58  ;;  %v6046_v25 = vld [vmem:[#allocation7 + $0x104] sm:$0xf0]  ;;  %v4447_v26 = vld [vmem:[#allocation7 + $0x180] sm:$0xf]  ;;  %v6092_v29 = vld [vmem:[#allocation7 + $0x274] sm:$0xf0]  ;;  %v4320_v35 = vor.u32 %v6030_v22, %v4319_v21 }
  0x4f   :  { %1121 = vmatpush.bf16.msra.mxu3 %v4472_v62  ;;  %v6062_v27 = vld [vmem:[#allocation7 + $0x184] sm:$0xf0]  ;;  %v4631_v30 = vld [vmem:[#allocation7 + $0x2f0] sm:$0xf]  ;;  %v6108_v32 = vld [vmem:[#allocation7 + $0x2f4] sm:$0xf0]  ;;  %v4384_v36 = vor.u32 %v6046_v25, %v4383_v23  ;;  %v4568_v40 = vor.u32 %v6092_v29, %v4567_v28 }
  0x50   :  { %1080 = vmatpush.bf16.msra.mxu0 %v4272_v4  ;;  %v4695_v33 = vld [vmem:[#allocation7 + $0x370] sm:$0xf]  ;;  %v6124_v34 = vld [vmem:[#allocation7 + $0x374] sm:$0xf0]  ;;  %v4448_v39 = vor.u32 %v6062_v27, %v4447_v26  ;;  %v4559_v41 = vld [vmem:[#allocation7 + $0x260] sm:$0xf]  ;;  %v4632_v43 = vor.u32 %v6108_v32, %v4631_v30 }
  0x51   :  { %1094 = vmatpush.bf16.msra.mxu1 %v4336_v5  ;;  %v4759_v37 = vld [vmem:[#allocation7 + $0x3f0] sm:$0xf]  ;;  %v6140_v38 = vld [vmem:[#allocation7 + $0x3f4] sm:$0xf0]  ;;  %v6090_v42 = vld [vmem:[#allocation7 + $0x264] sm:$0xf0]  ;;  %v4696_v44 = vor.u32 %v6124_v34, %v4695_v33 }
  0x52   :  { %1108 = vmatpush.bf16.msra.mxu2 %v4400_v6  ;;  %v4623_v45 = vld [vmem:[#allocation7 + $0x2e0] sm:$0xf]  ;;  %v6106_v46 = vld [vmem:[#allocation7 + $0x2e4] sm:$0xf0]  ;;  %v4760_v48 = vor.u32 %v6140_v38, %v4759_v37  ;;  %v4551_v52 = vld [vmem:[#allocation7 + $0x250] sm:$0xf]  ;;  %v4560_v56 = vor.u32 %v6090_v42, %v4559_v41 }
  0x53   :  { %1122 = vmatpush.bf16.msra.mxu3 %v4464_v10  ;;  %v4687_v47 = vld [vmem:[#allocation7 + $0x360] sm:$0xf]  ;;  %v6122_v49 = vld [vmem:[#allocation7 + $0x364] sm:$0xf0]  ;;  %v204_v53 = vld [vmem:[#allocation2] sm:$0xff]  ;;  %v4624_v59 = vor.u32 %v6106_v46, %v4623_v45  ;;  %vm3944_vm0 = vcmask 1040384  }
  0x54   :  { %1081 = vmatpush.bf16.msra.mxu0 %v4264_v16  ;;  %v4751_v50 = vld [vmem:[#allocation7 + $0x3e0] sm:$0xf]  ;;  %v6138_v51 = vld [vmem:[#allocation7 + $0x3e4] sm:$0xf0]  ;;  %v208_v55 = vld [vmem:[#allocation2 + $0x20] sm:$0xff]  ;;  %v4688_v60 = vor.u32 %v6122_v49, %v4687_v47  ;;  %vm3948_vm1 = vcmask 1042434  }
  0x55   :  { %1095 = vmatpush.bf16.msra.mxu1 %v4328_v19  ;;  %v206_v54 = vld [vmem:[#allocation2 + $0x10] sm:$0xff]  ;;  %v6088_v57 = vld [vmem:[#allocation7 + $0x254] sm:$0xf0]  ;;  %236 = vst [vmem:[#allocation1] ss:$4 sm:$0xff] %v204_v53  ;;  %v4752_v63 = vor.u32 %v6138_v51, %v4751_v50  ;;  %v212_v16 = vld [vmem:[#allocation2 + $0x40] sm:$0xff] }
  0x56   :  { %1109 = vmatpush.bf16.msra.mxu2 %v4392_v20  ;;  %v210_v58 = vld [vmem:[#allocation2 + $0x30] sm:$0xff]  ;;  %v4615_v61 = vld [vmem:[#allocation7 + $0x2d0] sm:$0xf]  ;;  %v6104_v62 = vld [vmem:[#allocation7 + $0x2d4] sm:$0xf0]  ;;  %v4552_v4 = vor.u32 %v6088_v57, %v4551_v52  ;;  %vm3966_vm2 = vcmask 1041409  }
  0x57   :  { %1123 = vmatpush.bf16.msra.mxu3 %v4456_v24  ;;  %238 = vst [vmem:[#allocation1 + $0x1] ss:$4 sm:$0xff] %v206_v54  ;;  %v4679_v0 = vld [vmem:[#allocation7 + $0x350] sm:$0xf]  ;;  %v6120_v1 = vld [vmem:[#allocation7 + $0x354] sm:$0xf0]  ;;  %v4616_v7 = vor.u32 %v6104_v62, %v4615_v61 }
  0x58   :  { %1082 = vmatpush.bf16.msra.mxu0 %v4256_v31  ;;  %240 = vst [vmem:[#allocation1 + $0x2] ss:$4 sm:$0xff] %v208_v55  ;;  %v4743_v2 = vld [vmem:[#allocation7 + $0x3d0] sm:$0xf]  ;;  %v6136_v3 = vld [vmem:[#allocation7 + $0x3d4] sm:$0xf0]  ;;  %v4680_v8 = vor.u32 %v6120_v1, %v4679_v0 }
  0x59   :  { %1096 = vmatpush.bf16.msra.mxu1 %v4320_v35  ;;  %242 = vst [vmem:[#allocation1 + $0x3] ss:$4 sm:$0xff] %v210_v58  ;;  %v4543_v5 = vld [vmem:[#allocation7 + $0x240] sm:$0xf]  ;;  %v6086_v6 = vld [vmem:[#allocation7 + $0x244] sm:$0xf0]  ;;  %v4744_v12 = vor.u32 %v6136_v3, %v4743_v2 }
  0x5a   :  { %1110 = vmatpush.bf16.msra.mxu2 %v4384_v36  ;;  %v4607_v9 = vld [vmem:[#allocation7 + $0x2c0] sm:$0xf]  ;;  %v6102_v10 = vld [vmem:[#allocation7 + $0x2c4] sm:$0xf0]  ;;  %v4535_v17 = vld [vmem:[#allocation7 + $0x230] sm:$0xf]  ;;  %v4544_v19 = vor.u32 %v6086_v6, %v4543_v5 }
  0x5b   :  { %1124 = vmatpush.bf16.msra.mxu3 %v4448_v39  ;;  %v4671_v11 = vld [vmem:[#allocation7 + $0x340] sm:$0xf]  ;;  %v6118_v13 = vld [vmem:[#allocation7 + $0x344] sm:$0xf0]  ;;  %v6084_v18 = vld [vmem:[#allocation7 + $0x234] sm:$0xf0]  ;;  %v4608_v24 = vor.u32 %v6102_v10, %v4607_v9 }
  0x5c   :  { %1131 = vmatpush.bf16.msrb.mxu0 %v4568_v40  ;;  %v4735_v14 = vld [vmem:[#allocation7 + $0x3c0] sm:$0xf]  ;;  %v6134_v15 = vld [vmem:[#allocation7 + $0x3c4] sm:$0xf0]  ;;  %v4599_v21 = vld [vmem:[#allocation7 + $0x2b0] sm:$0xf]  ;;  %v4672_v25 = vor.u32 %v6118_v13, %v4671_v11  ;;  %v4536_v36 = vor.u32 %v6084_v18, %v4535_v17 }
  0x5d   :  { %1145 = vmatpush.bf16.msrb.mxu1 %v4632_v43  ;;  %v214_v20 = vld [vmem:[#allocation2 + $0x50] sm:$0xff]  ;;  %v6100_v22 = vld [vmem:[#allocation7 + $0x2b4] sm:$0xf0]  ;;  %v4663_v23 = vld [vmem:[#allocation7 + $0x330] sm:$0xf]  ;;  %v4736_v30 = vor.u32 %v6134_v15, %v4735_v14  ;;  %vm3968_vm3 = vcmask 1043459  }
  0x5e   :  { %1159 = vmatpush.bf16.msrb.mxu2 %v4696_v44  ;;  %v216_v26 = vld [vmem:[#allocation2 + $0x60] sm:$0xff]  ;;  %v6116_v27 = vld [vmem:[#allocation7 + $0x334] sm:$0xf0]  ;;  %v218_v31 = vld [vmem:[#allocation2 + $0x70] sm:$0xff]  ;;  %v4600_v39 = vor.u32 %v6100_v22, %v4599_v21  ;;  %vm7315_vm4 = vcmask 1041408   ;;  %vm3954_vm5 = vcmask 1044484  }
  0x5f   :  { %1173 = vmatpush.bf16.msrb.mxu3 %v4760_v48  ;;  %v4727_v28 = vld [vmem:[#allocation7 + $0x3b0] sm:$0xf]  ;;  %v6132_v29 = vld [vmem:[#allocation7 + $0x3b4] sm:$0xf0]  ;;  %v4527_v37 = vld [vmem:[#allocation7 + $0x220] sm:$0xf]  ;;  %v4664_v40 = vor.u32 %v6116_v27, %v4663_v23 }
  0x60   :  { %1132 = vmatpush.bf16.msrb.mxu0 %v4560_v56  ;;  %v251_v32 = vld.sshfl [vmem:[#allocation1] sm:$0xff pattern:$0x73625140]  ;;  %v6966_v33 = vld.sshfl [vmem:[#allocation1 + $0x8] sm:$0xff pattern:$0x73625140]  ;;  %v4728_v43 = vor.u32 %v6132_v29, %v4727_v28 }
  0x61   :  { %1146 = vmatpush.bf16.msrb.mxu1 %v4624_v59  ;;  %v253_v34 = vld.sshfl [vmem:[#allocation1 + $0x10] sm:$0xff pattern:$0x73625140]  ;;  %v6968_v35 = vld.sshfl [vmem:[#allocation1 + $0x18] sm:$0xff pattern:$0x73625140] }
  0x62   :  { %1160 = vmatpush.bf16.msrb.mxu2 %v4688_v60  ;;  %259 = vst [vmem:[#allocation1] ss:$4 sm:$0xff] %v212_v16  ;;  %v6082_v38 = vld [vmem:[#allocation7 + $0x224] sm:$0xf0]  ;;  %v4591_v41 = vld [vmem:[#allocation7 + $0x2a0] sm:$0xf] }
  0x63   :  { %1174 = vmatpush.bf16.msrb.mxu3 %v4752_v63  ;;  %260 = vst [vmem:[#allocation1 + $0x1] ss:$4 sm:$0xff] %v214_v20  ;;  %v6098_v42 = vld [vmem:[#allocation7 + $0x2a4] sm:$0xf0]  ;;  %v4655_v44 = vld [vmem:[#allocation7 + $0x320] sm:$0xf]  ;;  %v4528_v48 = vor.u32 %v6082_v38, %v4527_v37 }
  0x64   :  { %1133 = vmatpush.bf16.msrb.mxu0 %v4552_v4  ;;  %261 = vst [vmem:[#allocation1 + $0x2] ss:$4 sm:$0xff] %v216_v26  ;;  %v6114_v45 = vld [vmem:[#allocation7 + $0x324] sm:$0xf0]  ;;  %v4719_v46 = vld [vmem:[#allocation7 + $0x3a0] sm:$0xf]  ;;  %v4592_v50 = vor.u32 %v6098_v42, %v4591_v41 }
  0x65   :  { %1147 = vmatpush.bf16.msrb.mxu1 %v4616_v7  ;;  %262 = vst [vmem:[#allocation1 + $0x3] ss:$4 sm:$0xff] %v218_v31  ;;  %v6130_v47 = vld [vmem:[#allocation7 + $0x3a4] sm:$0xf0]  ;;  %v4519_v49 = vld [vmem:[#allocation7 + $0x210] sm:$0xf]  ;;  %v4656_v51 = vor.u32 %v6114_v45, %v4655_v44 }
  0x66   :  { %1161 = vmatpush.bf16.msrb.mxu2 %v4680_v8  ;;  %v6080_v52 = vld [vmem:[#allocation7 + $0x214] sm:$0xf0]  ;;  %v4583_v53 = vld [vmem:[#allocation7 + $0x290] sm:$0xf]  ;;  %v4720_v55 = vor.u32 %v6130_v47, %v4719_v46  ;;  %v4511_v60 = vld [vmem:[#allocation7 + $0x200] sm:$0xf] }
  0x67   :  { %1175 = vmatpush.bf16.msrb.mxu3 %v4744_v12  ;;  %v6096_v54 = vld [vmem:[#allocation7 + $0x294] sm:$0xf0]  ;;  %v4647_v56 = vld [vmem:[#allocation7 + $0x310] sm:$0xf]  ;;  %v207_v62 = vld [vmem:[#allocation2 + $0x18] sm:$0xff]  ;;  %v4520_v63 = vor.u32 %v6080_v52, %v4519_v49  ;;  %vm7314_vm6 = vcmask 1042433  }
  0x68   :  { %1134 = vmatpush.bf16.msrb.mxu0 %v4544_v19  ;;  %v6112_v57 = vld [vmem:[#allocation7 + $0x314] sm:$0xf0]  ;;  %v4711_v58 = vld [vmem:[#allocation7 + $0x390] sm:$0xf]  ;;  %v6078_v0 = vld [vmem:[#allocation7 + $0x204] sm:$0xf0]  ;;  %v4584_v7 = vor.u32 %v6096_v54, %v4583_v53 }
  0x69   :  { %1148 = vmatpush.bf16.msrb.mxu1 %v4608_v24  ;;  %v6128_v59 = vld [vmem:[#allocation7 + $0x394] sm:$0xf0]  ;;  %v6027_v1 = vld [vmem:[#allocation7 + $0x74] sm:$0xf]  ;;  %v4313_v2 = vld [vmem:[#allocation7 + $0x78] sm:$0xf0]  ;;  %v4648_v16 = vor.u32 %v6112_v57, %v4647_v56  ;;  %v4512_v21 = vor.u32 %v6078_v0, %v4511_v60 }
  0x6a   :  { %1162 = vmatpush.bf16.msrb.mxu2 %v4672_v25  ;;  %v205_v61 = vld [vmem:[#allocation2 + $0x8] sm:$0xff]  ;;  %v211_v4 = vld [vmem:[#allocation2 + $0x38] sm:$0xff]  ;;  %246 = vst [vmem:[#allocation1 + $0x21] ss:$4 sm:$0xff] %v207_v62  ;;  %v4575_v8 = vld [vmem:[#allocation7 + $0x280] sm:$0xf]  ;;  %v4712_v17 = vor.u32 %v6128_v59, %v4711_v58  ;;  %v4316_v24 = vor.u32 %v6027_v1, %v4313_v2 }
  0x6b   :  { %1176 = vmatpush.bf16.msrb.mxu3 %v4736_v30  ;;  %244 = vst [vmem:[#allocation1 + $0x20] ss:$4 sm:$0xff] %v205_v61  ;;  %v209_v3 = vld [vmem:[#allocation2 + $0x28] sm:$0xff]  ;;  %v6094_v9 = vld [vmem:[#allocation7 + $0x284] sm:$0xf0]  ;;  %vm3972_vm7 = vcmask 1045509  }
  0x6c   :  { %1135 = vmatpush.bf16.msrb.mxu0 %v4536_v36  ;;  %v267_v5 = vld.sshfl [vmem:[#allocation1] sm:$0xff pattern:$0x73625140]  ;;  %v269_v6 = vld.sshfl [vmem:[#allocation1 + $0x10] sm:$0xff pattern:$0x73625140]  ;;  %v4576_v30 = vor.u32 %v6094_v9, %v4575_v8 }
  0x6d   :  { %1149 = vmatpush.bf16.msrb.mxu1 %v4600_v39  ;;  %v4639_v10 = vld [vmem:[#allocation7 + $0x300] sm:$0xf]  ;;  %v6110_v11 = vld [vmem:[#allocation7 + $0x304] sm:$0xf0]  ;;  %v6970_v12 = vpack.c.bf16 %v267_v5, %v251_v32  ;;  %v6972_v13 = vpack.c.bf16 %v269_v6, %v253_v34  ;;  %v6043_v23 = vld [vmem:[#allocation7 + $0xf4] sm:$0xf] }
  0x6e   :  { %1163 = vmatpush.bf16.msrb.mxu2 %v4664_v40  ;;  %v268_v14 = vld.sshfl [vmem:[#allocation1 + $0x8] sm:$0xff pattern:$0x73625140]  ;;  %v270_v15 = vld.sshfl [vmem:[#allocation1 + $0x18] sm:$0xff pattern:$0x73625140]  ;;  %v4640_v31 = vor.u32 %v6110_v11, %v4639_v10 }
  0x6f   :  { %1177 = vmatpush.bf16.msrb.mxu3 %v4728_v43  ;;  %v4703_v18 = vld [vmem:[#allocation7 + $0x380] sm:$0xf]  ;;  %v6975_v19 = vpack.c.bf16 %v268_v14, %v6966_v33  ;;  %v6978_v20 = vpack.c.bf16 %v270_v15, %v6968_v35  ;;  %v6126_v22 = vld [vmem:[#allocation7 + $0x384] sm:$0xf0]  ;;  %248 = vst [vmem:[#allocation1 + $0x22] ss:$4 sm:$0xff] %v209_v3  ;;  %1083 = vmatmul.bf16.vlgmr.msra.gmra.mxu0 %v6970_v12 }
  0x70   :  { %1136 = vmatpush.bf16.msrb.mxu0 %v4528_v48  ;;  %1111 = vmatmul.bf16.vlgmr.msra.gmra.mxu2 %v6972_v13  ;;  %v4377_v25 = vld [vmem:[#allocation7 + $0xf8] sm:$0xf0]  ;;  %v6059_v26 = vld [vmem:[#allocation7 + $0x174] sm:$0xf]  ;;  %250 = vst [vmem:[#allocation1 + $0x23] ss:$4 sm:$0xff] %v211_v4  ;;  %v4704_v34 = vor.u32 %v6126_v22, %v4703_v18 }
  0x71   :  { %1150 = vmatpush.bf16.msrb.mxu1 %v4592_v50  ;;  %1125 = vmatmul.bf16.vlgmr.msra.gmra.mxu3 %v6978_v20  ;;  %v4441_v27 = vld [vmem:[#allocation7 + $0x178] sm:$0xf0]  ;;  %v6075_v28 = vld [vmem:[#allocation7 + $0x1f4] sm:$0xf]  ;;  %v6025_v32 = vld [vmem:[#allocation7 + $0x64] sm:$0xf]  ;;  %v4380_v35 = vor.u32 %v6043_v23, %v4377_v25 }
  0x72   :  { %1164 = vmatpush.bf16.msrb.mxu2 %v4656_v51  ;;  %1097 = vmatmul.bf16.vlgmr.msra.gmra.mxu1 %v6975_v19  ;;  %v4505_v29 = vld [vmem:[#allocation7 + $0x1f8] sm:$0xf0]  ;;  %v4305_v33 = vld [vmem:[#allocation7 + $0x68] sm:$0xf0]  ;;  %v6041_v36 = vld [vmem:[#allocation7 + $0xe4] sm:$0xf]  ;;  %v4444_v37 = vor.u32 %v6059_v26, %v4441_v27 }
  0x73   :  { %1178 = vmatpush.bf16.msrb.mxu3 %v4720_v55  ;;  %v4508_v38 = vor.u32 %v6075_v28, %v4505_v29  ;;  %v213_v39 = vld [vmem:[#allocation2 + $0x48] sm:$0xff]  ;;  %v4369_v40 = vld [vmem:[#allocation7 + $0xe8] sm:$0xf0]  ;;  %v6057_v41 = vld [vmem:[#allocation7 + $0x164] sm:$0xf]  ;;  %v4308_v44 = vor.u32 %v6025_v32, %v4305_v33  ;;  %vm7313_vm8 = vcmask 1043458  }
  0x74   :  { %1137 = vmatpush.bf16.msrb.mxu0 %v4520_v63  ;;  %v4433_v42 = vld [vmem:[#allocation7 + $0x168] sm:$0xf0]  ;;  %v6073_v45 = vld [vmem:[#allocation7 + $0x1e4] sm:$0xf]  ;;  %v6023_v47 = vld [vmem:[#allocation7 + $0x54] sm:$0xf]  ;;  %v4372_v55 = vor.u32 %v6041_v36, %v4369_v40 }
  0x75   :  { %1151 = vmatpush.bf16.msrb.mxu1 %v4584_v7  ;;  %v215_v43 = vld [vmem:[#allocation2 + $0x58] sm:$0xff]  ;;  %v217_v48 = vld [vmem:[#allocation2 + $0x68] sm:$0xff]  ;;  %v6039_v50 = vld [vmem:[#allocation7 + $0xd4] sm:$0xf]  ;;  %v4436_v60 = vor.u32 %v6057_v41, %v4433_v42  ;;  %vm7312_vm9 = vcmask 1044483   ;;  %vm3958_vm10 = vcmask 1046534  }
  0x76   :  { %1165 = vmatpush.bf16.msrb.mxu2 %v4648_v16  ;;  %v4497_v46 = vld [vmem:[#allocation7 + $0x1e8] sm:$0xf0]  ;;  %v4297_v49 = vld [vmem:[#allocation7 + $0x58] sm:$0xf0]  ;;  %v6055_v56 = vld [vmem:[#allocation7 + $0x154] sm:$0xf] }
  0x77   :  { %1179 = vmatpush.bf16.msrb.mxu3 %v4712_v17  ;;  %v4361_v51 = vld [vmem:[#allocation7 + $0xd8] sm:$0xf0]  ;;  %v219_v52 = vld [vmem:[#allocation2 + $0x78] sm:$0xff]  ;;  %v6984_v54 = vld.sshfl [vmem:[#allocation1 + $0x28] sm:$0xff pattern:$0x73625140]  ;;  %v4500_v61 = vor.u32 %v6073_v45, %v4497_v46  ;;  %v4300_v62 = vor.u32 %v6023_v47, %v4297_v49 }
  0x78   :  { %1138 = vmatpush.bf16.msrb.mxu0 %v4512_v21  ;;  %v255_v53 = vld.sshfl [vmem:[#allocation1 + $0x20] sm:$0xff pattern:$0x73625140]  ;;  %v4425_v57 = vld [vmem:[#allocation7 + $0x158] sm:$0xf0]  ;;  %v4364_v3 = vor.u32 %v6039_v50, %v4361_v51  ;;  %vm3974_vm11 = vcmask 1046528  }
  0x79   :  { %1152 = vmatpush.bf16.msrb.mxu1 %v4576_v30  ;;  %v257_v58 = vld.sshfl [vmem:[#allocation1 + $0x30] sm:$0xff pattern:$0x73625140]  ;;  %v258_v59 = vld.sshfl [vmem:[#allocation1 + $0x38] sm:$0xff pattern:$0x73625140]  ;;  %v4428_v5 = vor.u32 %v6055_v56, %v4425_v57 }
  0x7a   :  { %1166 = vmatpush.bf16.msrb.mxu2 %v4640_v31  ;;  %263 = vst [vmem:[#allocation1 + $0x20] ss:$4 sm:$0xff] %v213_v39  ;;  %v6071_v63 = vld [vmem:[#allocation7 + $0x1d4] sm:$0xf]  ;;  %v4489_v0 = vld [vmem:[#allocation7 + $0x1d8] sm:$0xf0] }
  0x7b   :  { %1180 = vmatpush.bf16.msrb.mxu3 %v4704_v34  ;;  %264 = vst [vmem:[#allocation1 + $0x21] ss:$4 sm:$0xff] %v215_v43  ;;  %v6021_v1 = vld [vmem:[#allocation7 + $0x44] sm:$0xf]  ;;  %v4289_v2 = vld [vmem:[#allocation7 + $0x48] sm:$0xf0]  ;;  %v4492_v6 = vor.u32 %v6071_v63, %v4489_v0 }
  0x7c   :  { %1187 = vmatpush.bf16.msra.mxu0 %v4316_v24  ;;  %265 = vst [vmem:[#allocation1 + $0x22] ss:$4 sm:$0xff] %v217_v48  ;;  %v6037_v4 = vld [vmem:[#allocation7 + $0xc4] sm:$0xf]  ;;  %v4353_v7 = vld [vmem:[#allocation7 + $0xc8] sm:$0xf0]  ;;  %v4292_v9 = vor.u32 %v6021_v1, %v4289_v2 }
  0x7d   :  { %1201 = vmatpush.bf16.msra.mxu1 %v4380_v35  ;;  %266 = vst [vmem:[#allocation1 + $0x23] ss:$4 sm:$0xff] %v219_v52  ;;  %v6053_v8 = vld [vmem:[#allocation7 + $0x144] sm:$0xf]  ;;  %v4417_v10 = vld [vmem:[#allocation7 + $0x148] sm:$0xf0]  ;;  %v4356_v17 = vor.u32 %v6037_v4, %v4353_v7 }
  0x7e   :  { %1215 = vmatpush.bf16.msra.mxu2 %v4444_v37  ;;  %v6069_v11 = vld [vmem:[#allocation7 + $0x1c4] sm:$0xf]  ;;  %v4481_v14 = vld [vmem:[#allocation7 + $0x1c8] sm:$0xf0]  ;;  %v6019_v15 = vld [vmem:[#allocation7 + $0x34] sm:$0xf]  ;;  %v4420_v18 = vor.u32 %v6053_v8, %v4417_v10 }
  0x7f   :  { %1229 = vmatpush.bf16.msra.mxu3 %v4508_v38  ;;  %v4281_v16 = vld [vmem:[#allocation7 + $0x38] sm:$0xf0]  ;;  %v4484_v21 = vor.u32 %v6069_v11, %v4481_v14  ;;  %v6035_v22 = vld [vmem:[#allocation7 + $0xb4] sm:$0xf]  ;;  %v6017_v29 = vld [vmem:[#allocation7 + $0x24] sm:$0xf] }
  0x80   :  { %1188 = vmatpush.bf16.msra.mxu0 %v4308_v44  ;;  %v4345_v23 = vld [vmem:[#allocation7 + $0xb8] sm:$0xf0]  ;;  %v4284_v24 = vor.u32 %v6019_v15, %v4281_v16  ;;  %v6051_v25 = vld [vmem:[#allocation7 + $0x134] sm:$0xf]  ;;  %v4273_v30 = vld [vmem:[#allocation7 + $0x28] sm:$0xf0] }
  0x81   :  { %1202 = vmatpush.bf16.msra.mxu1 %v4372_v55  ;;  %v4409_v26 = vld [vmem:[#allocation7 + $0x138] sm:$0xf0]  ;;  %v6067_v27 = vld [vmem:[#allocation7 + $0x1b4] sm:$0xf]  ;;  %v4348_v33 = vor.u32 %v6035_v22, %v4345_v23  ;;  %v6033_v34 = vld [vmem:[#allocation7 + $0xa4] sm:$0xf]  ;;  %v4276_v44 = vor.u32 %v6017_v29, %v4273_v30 }
  0x82   :  { %1216 = vmatpush.bf16.msra.mxu2 %v4436_v60  ;;  %v4473_v28 = vld [vmem:[#allocation7 + $0x1b8] sm:$0xf0]  ;;  %v4337_v35 = vld [vmem:[#allocation7 + $0xa8] sm:$0xf0]  ;;  %v4412_v40 = vor.u32 %v6051_v25, %v4409_v26  ;;  %v6049_v45 = vld [vmem:[#allocation7 + $0x124] sm:$0xf] }
  0x83   :  { %1230 = vmatpush.bf16.msra.mxu3 %v4500_v61  ;;  %v4476_v43 = vor.u32 %v6067_v27, %v4473_v28  ;;  %v4401_v46 = vld [vmem:[#allocation7 + $0x128] sm:$0xf0]  ;;  %v6065_v47 = vld [vmem:[#allocation7 + $0x1a4] sm:$0xf]  ;;  %v6015_v49 = vld [vmem:[#allocation7 + $0x14] sm:$0xf]  ;;  %v4340_v51 = vor.u32 %v6033_v34, %v4337_v35 }
  0x84   :  { %1189 = vmatpush.bf16.msra.mxu0 %v4300_v62  ;;  %v271_v31 = vld.sshfl [vmem:[#allocation1 + $0x20] sm:$0xff pattern:$0x73625140]  ;;  %v273_v32 = vld.sshfl [vmem:[#allocation1 + $0x30] sm:$0xff pattern:$0x73625140]  ;;  %v4404_v52 = vor.u32 %v6049_v45, %v4401_v46 }
  0x85   :  { %1203 = vmatpush.bf16.msra.mxu1 %v4364_v3  ;;  %v6986_v36 = vpack.c.bf16 %v271_v31, %v255_v53  ;;  %v6988_v37 = vpack.c.bf16 %v273_v32, %v257_v58  ;;  %v272_v38 = vld.sshfl [vmem:[#allocation1 + $0x28] sm:$0xff pattern:$0x73625140]  ;;  %v274_v39 = vld.sshfl [vmem:[#allocation1 + $0x38] sm:$0xff pattern:$0x73625140] }
  0x86   :  { %1217 = vmatpush.bf16.msra.mxu2 %v4428_v5  ;;  %v6991_v41 = vpack.c.bf16 %v272_v38, %v6984_v54  ;;  %v6993_v42 = vpack.c.bf16 %v274_v39, %v258_v59  ;;  %v4465_v48 = vld [vmem:[#allocation7 + $0x1a8] sm:$0xf0]  ;;  %v4265_v50 = vld [vmem:[#allocation7 + $0x18] sm:$0xf0]  ;;  %v6031_v53 = vld [vmem:[#allocation7 + $0x94] sm:$0xf] }
  0x87   :  { %1231 = vmatpush.bf16.msra.mxu3 %v4492_v6  ;;  %1139 = vmatmul.bf16.vlgmr.msrb.gmra.mxu0 %v6986_v36  ;;  %v4329_v54 = vld [vmem:[#allocation7 + $0x98] sm:$0xf0]  ;;  %v4468_v55 = vor.u32 %v6065_v47, %v4465_v48  ;;  %v4268_v56 = vor.u32 %v6015_v49, %v4265_v50  ;;  %v6047_v57 = vld [vmem:[#allocation7 + $0x114] sm:$0xf]  ;;  %v6013_v61 = vld [vmem:[#allocation7 + $0x4] sm:$0xf] }
  0x88   :  { %1190 = vmatpush.bf16.msra.mxu0 %v4292_v9  ;;  %1167 = vmatmul.bf16.vlgmr.msrb.gmra.mxu2 %v6988_v37  ;;  %v4393_v58 = vld [vmem:[#allocation7 + $0x118] sm:$0xf0]  ;;  %v6063_v59 = vld [vmem:[#allocation7 + $0x194] sm:$0xf]  ;;  %v4257_v62 = vld [vmem:[#allocation7 + $0x8] sm:$0xf0]  ;;  %v4332_v1 = vor.u32 %v6031_v53, %v4329_v54 }
  0x89   :  { %1204 = vmatpush.bf16.msra.mxu1 %v4356_v17  ;;  %1181 = vmatmul.bf16.vlgmr.msrb.gmra.mxu3 %v6993_v42  ;;  %v4457_v60 = vld [vmem:[#allocation7 + $0x198] sm:$0xf0]  ;;  %v6091_v63 = vld [vmem:[#allocation7 + $0x274] sm:$0xf]  ;;  %v4396_v2 = vor.u32 %v6047_v57, %v4393_v58  ;;  %v6029_v3 = vld [vmem:[#allocation7 + $0x84] sm:$0xf]  ;;  %v4260_v7 = vor.u32 %v6013_v61, %v4257_v62 }
  0x8a   :  { %1218 = vmatpush.bf16.msra.mxu2 %v4420_v18  ;;  %1153 = vmatmul.bf16.vlgmr.msrb.gmra.mxu1 %v6991_v41  ;;  %v4569_v0 = vld [vmem:[#allocation7 + $0x278] sm:$0xf0]  ;;  %v4321_v4 = vld [vmem:[#allocation7 + $0x88] sm:$0xf0]  ;;  %v6045_v5 = vld [vmem:[#allocation7 + $0x104] sm:$0xf]  ;;  %v4460_v6 = vor.u32 %v6063_v59, %v4457_v60 }
  0x8b   :  { %1232 = vmatpush.bf16.msra.mxu3 %v4484_v21  ;;  %v4385_v8 = vld [vmem:[#allocation7 + $0x108] sm:$0xf0]  ;;  %v6061_v9 = vld [vmem:[#allocation7 + $0x184] sm:$0xf]  ;;  %v4572_v11 = vor.u32 %v6091_v63, %v4569_v0  ;;  %v6107_v14 = vld [vmem:[#allocation7 + $0x2f4] sm:$0xf]  ;;  %v4324_v22 = vor.u32 %v6029_v3, %v4321_v4 }
  0x8c   :  { %1191 = vmatpush.bf16.msra.mxu0 %v4284_v24  ;;  %v4449_v10 = vld [vmem:[#allocation7 + $0x188] sm:$0xf0]  ;;  %v4633_v15 = vld [vmem:[#allocation7 + $0x2f8] sm:$0xf0]  ;;  %v6123_v16 = vld [vmem:[#allocation7 + $0x374] sm:$0xf]  ;;  %v4388_v23 = vor.u32 %v6045_v5, %v4385_v8 }
  0x8d   :  { %1205 = vmatpush.bf16.msra.mxu1 %v4348_v33  ;;  %v4697_v17 = vld [vmem:[#allocation7 + $0x378] sm:$0xf0]  ;;  %v6139_v18 = vld [vmem:[#allocation7 + $0x3f4] sm:$0xf]  ;;  %v6089_v24 = vld [vmem:[#allocation7 + $0x264] sm:$0xf]  ;;  %v4452_v26 = vor.u32 %v6061_v9, %v4449_v10  ;;  %v4636_v27 = vor.u32 %v6107_v14, %v4633_v15 }
  0x8e   :  { %1219 = vmatpush.bf16.msra.mxu2 %v4412_v40  ;;  %v4761_v21 = vld [vmem:[#allocation7 + $0x3f8] sm:$0xf0]  ;;  %v4561_v25 = vld [vmem:[#allocation7 + $0x268] sm:$0xf0]  ;;  %v4700_v28 = vor.u32 %v6123_v16, %v4697_v17  ;;  %v6105_v30 = vld [vmem:[#allocation7 + $0x2e4] sm:$0xf] }
  0x8f   :  { %1233 = vmatpush.bf16.msra.mxu3 %v4476_v43  ;;  %v4764_v29 = vor.u32 %v6139_v18, %v4761_v21  ;;  %v4625_v31 = vld [vmem:[#allocation7 + $0x2e8] sm:$0xf0]  ;;  %v6121_v32 = vld [vmem:[#allocation7 + $0x364] sm:$0xf]  ;;  %v4564_v33 = vor.u32 %v6089_v24, %v4561_v25  ;;  %v6087_v39 = vld [vmem:[#allocation7 + $0x254] sm:$0xf] }
  0x90   :  { %1192 = vmatpush.bf16.msra.mxu0 %v4276_v44  ;;  %v4689_v34 = vld [vmem:[#allocation7 + $0x368] sm:$0xf0]  ;;  %v6137_v35 = vld [vmem:[#allocation7 + $0x3e4] sm:$0xf]  ;;  %v4553_v40 = vld [vmem:[#allocation7 + $0x258] sm:$0xf0]  ;;  %v4628_v43 = vor.u32 %v6105_v30, %v4625_v31 }
  0x91   :  { %1206 = vmatpush.bf16.msra.mxu1 %v4340_v51  ;;  %v4753_v38 = vld [vmem:[#allocation7 + $0x3e8] sm:$0xf0]  ;;  %v4692_v44 = vor.u32 %v6121_v32, %v4689_v34  ;;  %v6103_v46 = vld [vmem:[#allocation7 + $0x2d4] sm:$0xf]  ;;  %v4617_v47 = vld [vmem:[#allocation7 + $0x2d8] sm:$0xf0]  ;;  %v4556_v49 = vor.u32 %v6087_v39, %v4553_v40 }
  0x92   :  { %1220 = vmatpush.bf16.msra.mxu2 %v4404_v52  ;;  %v4756_v45 = vor.u32 %v6137_v35, %v4753_v38  ;;  %v6119_v48 = vld [vmem:[#allocation7 + $0x354] sm:$0xf]  ;;  %v4681_v50 = vld [vmem:[#allocation7 + $0x358] sm:$0xf0]  ;;  %v6085_v53 = vld [vmem:[#allocation7 + $0x244] sm:$0xf] }
  0x93   :  { %1234 = vmatpush.bf16.msra.mxu3 %v4468_v55  ;;  %v6135_v51 = vld [vmem:[#allocation7 + $0x3d4] sm:$0xf]  ;;  %v4745_v52 = vld [vmem:[#allocation7 + $0x3d8] sm:$0xf0]  ;;  %v4545_v54 = vld [vmem:[#allocation7 + $0x248] sm:$0xf0]  ;;  %v4620_v55 = vor.u32 %v6103_v46, %v4617_v47 }
  0x94   :  { %1193 = vmatpush.bf16.msra.mxu0 %v4268_v56  ;;  %v4684_v56 = vor.u32 %v6119_v48, %v4681_v50  ;;  %v4748_v57 = vor.u32 %v6135_v51, %v4745_v52  ;;  %v6101_v58 = vld [vmem:[#allocation7 + $0x2c4] sm:$0xf]  ;;  %v4609_v59 = vld [vmem:[#allocation7 + $0x2c8] sm:$0xf0]  ;;  %v6083_v63 = vld [vmem:[#allocation7 + $0x234] sm:$0xf] }
  0x95   :  { %1207 = vmatpush.bf16.msra.mxu1 %v4332_v1  ;;  %v6117_v60 = vld [vmem:[#allocation7 + $0x344] sm:$0xf]  ;;  %v4673_v61 = vld [vmem:[#allocation7 + $0x348] sm:$0xf0]  ;;  %v4612_v0 = vor.u32 %v6101_v58, %v4609_v59  ;;  %v6099_v3 = vld [vmem:[#allocation7 + $0x2b4] sm:$0xf] }
  0x96   :  { %1221 = vmatpush.bf16.msra.mxu2 %v4396_v2  ;;  %v6133_v62 = vld [vmem:[#allocation7 + $0x3c4] sm:$0xf]  ;;  %v4676_v1 = vor.u32 %v6117_v60, %v4673_v61  ;;  %v4601_v4 = vld [vmem:[#allocation7 + $0x2b8] sm:$0xf0]  ;;  %v6115_v5 = vld [vmem:[#allocation7 + $0x334] sm:$0xf] }
  0x97   :  { %1235 = vmatpush.bf16.msra.mxu3 %v4460_v6  ;;  %v6131_v8 = vld [vmem:[#allocation7 + $0x3b4] sm:$0xf]  ;;  %v6081_v9 = vld [vmem:[#allocation7 + $0x224] sm:$0xf]  ;;  %v4529_v10 = vld [vmem:[#allocation7 + $0x228] sm:$0xf0] }
  0x98   :  { %1194 = vmatpush.bf16.msra.mxu0 %v4260_v7  ;;  %v4665_v7 = vld [vmem:[#allocation7 + $0x338] sm:$0xf0]  ;;  %v6097_v16 = vld [vmem:[#allocation7 + $0x2a4] sm:$0xf]  ;;  %v4593_v17 = vld [vmem:[#allocation7 + $0x2a8] sm:$0xf0]  ;;  %v4532_v21 = vor.u32 %v6081_v9, %v4529_v10 }
  0x99   :  { %1208 = vmatpush.bf16.msra.mxu1 %v4324_v22  ;;  %v4668_v14 = vor.u32 %v6115_v5, %v4665_v7  ;;  %v6113_v18 = vld [vmem:[#allocation7 + $0x324] sm:$0xf]  ;;  %v4657_v22 = vld [vmem:[#allocation7 + $0x328] sm:$0xf0]  ;;  %v6079_v25 = vld [vmem:[#allocation7 + $0x214] sm:$0xf] }
  0x9a   :  { %1222 = vmatpush.bf16.msra.mxu2 %v4388_v23  ;;  %v6129_v23 = vld [vmem:[#allocation7 + $0x3a4] sm:$0xf]  ;;  %v4721_v24 = vld [vmem:[#allocation7 + $0x3a8] sm:$0xf0]  ;;  %v6095_v30 = vld [vmem:[#allocation7 + $0x294] sm:$0xf] }
  0x9b   :  { %1236 = vmatpush.bf16.msra.mxu3 %v4452_v26  ;;  %1195 = vmatmul.bf16.vlgmr.msra.gmra.mxu0 %v6970_v12  ;;  %v4737_v12 = vld [vmem:[#allocation7 + $0x3c8] sm:$0xf0]  ;;  %v4521_v26 = vld [vmem:[#allocation7 + $0x218] sm:$0xf0]  ;;  %v6111_v32 = vld [vmem:[#allocation7 + $0x314] sm:$0xf] }
  0x9c   :  { %1243 = vmatpush.bf16.msrb.mxu0 %v4572_v11  ;;  %1209 = vmatmul.bf16.vlgmr.msra.gmra.mxu1 %v6975_v19  ;;  %v4740_v2 = vor.u32 %v6133_v62, %v4737_v12  ;;  %v4729_v19 = vld [vmem:[#allocation7 + $0x3b8] sm:$0xf0]  ;;  %v4604_v11 = vor.u32 %v6099_v3, %v4601_v4  ;;  %v6127_v35 = vld [vmem:[#allocation7 + $0x394] sm:$0xf]  ;;  %v6077_v39 = vld [vmem:[#allocation7 + $0x204] sm:$0xf] }
  0x9d   :  { %1257 = vmatpush.bf16.msrb.mxu1 %v4636_v27  ;;  %1223 = vmatmul.bf16.vlgmr.msra.gmra.mxu2 %v6972_v13  ;;  %v4548_v13 = vor.u32 %v6085_v53, %v4545_v54  ;;  %v4732_v15 = vor.u32 %v6131_v8, %v4729_v19  ;;  %v4596_v27 = vor.u32 %v6097_v16, %v4593_v17  ;;  %v4585_v31 = vld [vmem:[#allocation7 + $0x298] sm:$0xf0]  ;;  %v4513_v40 = vld [vmem:[#allocation7 + $0x208] sm:$0xf0]  ;;  %v6093_v46 = vld [vmem:[#allocation7 + $0x284] sm:$0xf] }
  0x9e   :  { %1271 = vmatpush.bf16.msrb.mxu2 %v4700_v28  ;;  %1237 = vmatmul.bf16.vlgmr.msra.gmra.mxu3 %v6978_v20  ;;  %v4537_v20 = vld [vmem:[#allocation7 + $0x238] sm:$0xf0]  ;;  %v4660_v28 = vor.u32 %v6113_v18, %v4657_v22  ;;  %v4577_v47 = vld [vmem:[#allocation7 + $0x288] sm:$0xf0]  ;;  %v6109_v48 = vld [vmem:[#allocation7 + $0x304] sm:$0xf] }
  0x9f   :  { %1285 = vmatpush.bf16.msrb.mxu3 %v4764_v29  ;;  %v4540_v6 = vor.u32 %v6083_v63, %v4537_v20  ;;  %v4724_v29 = vor.u32 %v6129_v23, %v4721_v24  ;;  %v4649_v34 = vld [vmem:[#allocation7 + $0x318] sm:$0xf0]  ;;  %v4641_v50 = vld [vmem:[#allocation7 + $0x308] sm:$0xf0]  ;;  %v6125_v51 = vld [vmem:[#allocation7 + $0x384] sm:$0xf]  ;;  %v4580_v53 = vor.u32 %v6093_v46, %v4577_v47 }
  0xa0   :  { %1244 = vmatpush.bf16.msrb.mxu0 %v4564_v33  ;;  %v4524_v33 = vor.u32 %v6079_v25, %v4521_v26  ;;  %v4713_v38 = vld [vmem:[#allocation7 + $0x398] sm:$0xf0]  ;;  %v4705_v52 = vld [vmem:[#allocation7 + $0x388] sm:$0xf0]  ;;  %v4644_v54 = vor.u32 %v6109_v48, %v4641_v50  ;;  %v6145_v59 = vld [vmem:[#allocation8 + $0x20] sm:$0xff]  ;;  %vm3962_vm12 = vcmask 1045508  }
  0xa1   :  { %1258 = vmatpush.bf16.msrb.mxu1 %v4628_v43  ;;  %v4588_v43 = vor.u32 %v6095_v30, %v4585_v31  ;;  %v6146_v58 = vld [vmem:[#allocation8 + $0x28] sm:$0xff]  ;;  %v6144_v60 = vld [vmem:[#allocation8 + $0x18] sm:$0xff]  ;;  %v6141_v12 = vld [vmem:[#allocation8] sm:$0xff]  ;;  %vm7319_vm13 = vcmask 1043456   ;;  %vm3976_vm14 = vcmask 1046533   ;;  %vm7318_vm15 = vcmask 1044481  }
  0xa2   :  { %1272 = vmatpush.bf16.msrb.mxu2 %v4692_v44  ;;  %v4652_v44 = vor.u32 %v6111_v32, %v4649_v34  ;;  %v6154_v31 = vld [vmem:[#allocation8 + $0x68] sm:$0xff] }
  0xa3   :  { %1286 = vmatpush.bf16.msrb.mxu3 %v4756_v45  ;;  %v4716_v45 = vor.u32 %v6127_v35, %v4713_v38  ;;  %v6150_v48 = vld [vmem:[#allocation8 + $0x48] sm:$0xff] }
  0xa4   :  { %1245 = vmatpush.bf16.msrb.mxu0 %v4556_v49  ;;  %v4516_v49 = vor.u32 %v6077_v39, %v4513_v40  ;;  %v6152_v39 = vld [vmem:[#allocation8 + $0x58] sm:$0xff] }
  0xa5   :  { %1259 = vmatpush.bf16.msrb.mxu1 %v4620_v55  ;;  %v4708_v55 = vor.u32 %v6125_v51, %v4705_v52  ;;  %v6149_v51 = vld [vmem:[#allocation8 + $0x40] sm:$0xff] }
  0xa6   :  { %1273 = vmatpush.bf16.msrb.mxu2 %v4684_v56  ;;  %v6148_v56 = vld [vmem:[#allocation8 + $0x38] sm:$0xff] }
  0xa7   :  { %1287 = vmatpush.bf16.msrb.mxu3 %v4748_v57  ;;  %v6147_v57 = vld [vmem:[#allocation8 + $0x30] sm:$0xff] }
  0xa8   :  { %1246 = vmatpush.bf16.msrb.mxu0 %v4548_v13  ;;  %v6143_v13 = vld [vmem:[#allocation8 + $0x10] sm:$0xff] }
  0xa9   :  { %1260 = vmatpush.bf16.msrb.mxu1 %v4612_v0 }
  0xaa   :  { %1274 = vmatpush.bf16.msrb.mxu2 %v4676_v1 }
  0xab   :  { %1288 = vmatpush.bf16.msrb.mxu3 %v4740_v2 }
  0xac   :  { %1247 = vmatpush.bf16.msrb.mxu0 %v4540_v6 }
  0xad   :  { %1261 = vmatpush.bf16.msrb.mxu1 %v4604_v11  ;;  %v6156_v11 = vld [vmem:[#allocation8 + $0x78] sm:$0xff] }
  0xae   :  { %1275 = vmatpush.bf16.msrb.mxu2 %v4668_v14 }
  0xaf   :  { %1289 = vmatpush.bf16.msrb.mxu3 %v4732_v15  ;;  %v6155_v15 = vld [vmem:[#allocation8 + $0x70] sm:$0xff] }
  0xb0   :  { %1248 = vmatpush.bf16.msrb.mxu0 %v4532_v21 }
  0xb1   :  { %1262 = vmatpush.bf16.msrb.mxu1 %v4596_v27 }
  0xb2   :  { %1276 = vmatpush.bf16.msrb.mxu2 %v4660_v28 }
  0xb3   :  { %1290 = vmatpush.bf16.msrb.mxu3 %v4724_v29 }
  0xb4   :  { %1249 = vmatpush.bf16.msrb.mxu0 %v4524_v33  ;;  %v6153_v33 = vld [vmem:[#allocation8 + $0x60] sm:$0xff] }
  0xb5   :  { %1263 = vmatpush.bf16.msrb.mxu1 %v4588_v43  ;;  %v6151_v43 = vld [vmem:[#allocation8 + $0x50] sm:$0xff] }
  0xb6   :  { %1277 = vmatpush.bf16.msrb.mxu2 %v4652_v44 }
  0xb7   :  { %1291 = vmatpush.bf16.msrb.mxu3 %v4716_v45 }
  0xb8   :  { %1250 = vmatpush.bf16.msrb.mxu0 %v4516_v49 }
  0xb9   :  { %1264 = vmatpush.bf16.msrb.mxu1 %v4580_v53 }
  0xba   :  { %1278 = vmatpush.bf16.msrb.mxu2 %v4644_v54 }
  0xbb   :  { %1292 = vmatpush.bf16.msrb.mxu3 %v4708_v55  ;;  %1251 = vmatmul.bf16.vlgmr.msrb.gmra.mxu0 %v6986_v36  ;;  %v7010_v36 = vld [vmem:[%s7298_s3] sm:$0x3] }
  0xbc   :  { %1265 = vmatmul.bf16.vlgmr.msrb.gmra.mxu1 %v6991_v41  ;;  %1437 = vmatpush.bf16.msra.mxu0 %v6148_v56  ;;  %v431_v61 = vperm.slane %v7010_v36, 0  ;;  %v432_v45 = vperm.slane %v7010_v36, 1 }
  0xbd   :  { %1279 = vmatmul.bf16.vlgmr.msrb.gmra.mxu2 %v6988_v37  ;;  %1451 = vmatpush.bf16.msra.mxu1 %v6156_v11  ;;  %v6171_v11 = vld [vmem:[#allocation11 + $0x74] sm:$0xf] }
  0xbe   :  { %1293 = vmatmul.bf16.vlgmr.msrb.gmra.mxu3 %v6993_v42  ;;  %v6142_v42 = vld [vmem:[#allocation8 + $0x8] sm:$0xff] }
  0xc0   :  { %1438 = vmatpush.bf16.msra.mxu0 %v6147_v57 }
  0xc1   :  { %1452 = vmatpush.bf16.msra.mxu1 %v6155_v15  ;;  %v4889_v15 = vld [vmem:[#allocation11 + $0x78] sm:$0xf0] }
  0xc4   :  { %1439 = vmatpush.bf16.msra.mxu0 %v6146_v58 }
  0xc5   :  { %1453 = vmatpush.bf16.msra.mxu1 %v6154_v31  ;;  %v4863_v31 = vld [vmem:[#allocation11 + $0x40] sm:$0xf] }
  0xc8   :  { %1440 = vmatpush.bf16.msra.mxu0 %v6145_v59 }
  0xc9   :  { %1454 = vmatpush.bf16.msra.mxu1 %v6153_v33  ;;  %v6165_v33 = vld [vmem:[#allocation11 + $0x44] sm:$0xf] }
  0xcc   :  { %1441 = vmatpush.bf16.msra.mxu0 %v6144_v60 }
  0xcd   :  { %1455 = vmatpush.bf16.msra.mxu1 %v6152_v39  ;;  %v4855_v39 = vld [vmem:[#allocation11 + $0x30] sm:$0xf] }
  0xd0   :  { %1442 = vmatpush.bf16.msra.mxu0 %v6143_v13 }
  0xd1   :  { %1456 = vmatpush.bf16.msra.mxu1 %v6151_v43  ;;  %v6163_v43 = vld [vmem:[#allocation11 + $0x34] sm:$0xf] }
  0xd4   :  { %1443 = vmatpush.bf16.msra.mxu0 %v6142_v42 }
  0xd5   :  { %1457 = vmatpush.bf16.msra.mxu1 %v6150_v48 }
  0xd8   :  { %1444 = vmatpush.bf16.msra.mxu0 %v6141_v12 }
  0xd9   :  { %1458 = vmatpush.bf16.msra.mxu1 %v6149_v51 }
  0xec   :  { %v1084_v41 = vpop.f32.mrf.mxu0 }
  0xed   :  { %v1085_v63 = vadd.f32 %v1084_v41, %v431_v61 }
  0xef   :  { %v1098_v37 = vpop.f32.mrf.mxu1 }
  0xf0   :  { %v1099_v1 = vadd.f32 %v1098_v37, %v1085_v63 }
  0xf3   :  { %v1112_v62 = vpop.f32.mrf.mxu2 }
  0xf4   :  { %v1126_v20 = vpop.f32.mrf.mxu3  ;;  %v1086_v0 = vpop.f32.mrf.mxu0  ;;  %v1113_v4 = vadd.f32 %v1112_v62, %v1099_v1 }
  0xf5   :  { %v1087_v3 = vadd.f32 %v1086_v0, %v431_v61 }
  0xf6   :  { %v1127_v8 = vadd.f32 %v1126_v20, %v1113_v4 }
  0xf7   :  { %v1100_v2 = vpop.f32.mrf.mxu1 }
  0xf8   :  { %v1101_v6 = vadd.f32 %v1100_v2, %v1087_v3 }
  0xfb   :  { %v1114_v5 = vpop.f32.mrf.mxu2 }
  0xfc   :  { %v1128_v7 = vpop.f32.mrf.mxu3  ;;  %v1115_v9 = vadd.f32 %v1114_v5, %v1101_v6 }
  0xfe   :  { %v1129_v16 = vadd.f32 %v1128_v7, %v1115_v9  ;;  %v4887_v9 = vld [vmem:[#allocation11 + $0x70] sm:$0xf] }
 0x104   :  { %v1140_v19 = vpop.f32.mrf.mxu0 }
 0x105   :  { %v1141_v14 = vadd.f32 %v1140_v19, %v1127_v8 }
 0x107   :  { %v1154_v10 = vpop.f32.mrf.mxu1 }
 0x108   :  { %v1155_v18 = vadd.f32 %v1154_v10, %v1141_v14  ;;  %v6172_v10 = vld [vmem:[#allocation11 + $0x74] sm:$0xf0] }
 0x109   :  { %v4888_v14 = vor.u32 %v6172_v10, %v4887_v9  ;;  %v6176_v9 = vld [vmem:[#allocation13 + $0x18] sm:$0xff]  ;;  %v6175_v10 = vld [vmem:[#allocation13 + $0x10] sm:$0xff] }
 0x10b   :  { %v1168_v17 = vpop.f32.mrf.mxu2  ;;  %1570 = vmatpush.bf16.msra.mxu2 %v4888_v14  ;;  %v6174_v14 = vld [vmem:[#allocation13 + $0x8] sm:$0xff] }
 0x10c   :  { %v1182_v21 = vpop.f32.mrf.mxu3  ;;  %v1142_v22 = vpop.f32.mrf.mxu0  ;;  %v1169_v25 = vadd.f32 %v1168_v17, %v1155_v18  ;;  %v6170_v17 = vld [vmem:[#allocation11 + $0x64] sm:$0xf0]  ;;  %v4892_v18 = vor.u32 %v6171_v11, %v4889_v15  ;;  %v1484_v11 = vld [vmem:[%s7302_s7] sm:$0x3] }
 0x10d   :  { %v1143_v23 = vadd.f32 %v1142_v22, %v1129_v16  ;;  %v4879_v16 = vld [vmem:[#allocation11 + $0x60] sm:$0xf]  ;;  %v4881_v22 = vld [vmem:[#allocation11 + $0x68] sm:$0xf0]  ;;  %v1486_v15 = vperm.slane %v1484_v11, 0 }
 0x10e   :  { %v1183_v28 = vadd.f32 %v1182_v21, %v1169_v25  ;;  %v6169_v21 = vld [vmem:[#allocation11 + $0x64] sm:$0xf]  ;;  %1584 = vmatpush.bf16.msra.mxu3 %v4892_v18  ;;  %v4871_v25 = vld [vmem:[#allocation11 + $0x50] sm:$0xf] }
 0x10f   :  { %v1156_v24 = vpop.f32.mrf.mxu1  ;;  %v4983_v18 = vld [vmem:[#allocation14 + $0x70] sm:$0xf] }
 0x110   :  { %v1157_v26 = vadd.f32 %v1156_v24, %v1143_v23  ;;  %v1299_v34 = vmax.f32 %v1183_v28, 0.0  ;;  %v4880_v23 = vor.u32 %v6170_v17, %v4879_v16  ;;  %v4884_v24 = vor.u32 %v6169_v21, %v4881_v22  ;;  %v4873_v28 = vld [vmem:[#allocation11 + $0x58] sm:$0xf0]  ;;  %v6173_v17 = vld [vmem:[#allocation13] sm:$0xff]  ;;  %v6196_v21 = vld [vmem:[#allocation14 + $0x74] sm:$0xf0] }
 0x111   :  { %v1487_v16 = vperm.slane %v1484_v11, 1  ;;  %v6195_v22 = vld [vmem:[#allocation14 + $0x74] sm:$0xf] }
 0x112   :  { %1571 = vmatpush.bf16.msra.mxu2 %v4880_v23  ;;  %1585 = vmatpush.bf16.msra.mxu3 %v4884_v24  ;;  %v4984_v23 = vor.u32 %v6196_v21, %v4983_v18  ;;  %v4985_v24 = vld [vmem:[#allocation14 + $0x78] sm:$0xf0] }
 0x113   :  { %v1170_v27 = vpop.f32.mrf.mxu2  ;;  %v4953_v21 = vld [vmem:[#allocation14 + $0x38] sm:$0xf0] }
 0x114   :  { %v1171_v29 = vadd.f32 %v1170_v27, %v1157_v26  ;;  %v1184_v30 = vpop.f32.mrf.mxu3  ;;  %v6168_v26 = vld [vmem:[#allocation11 + $0x54] sm:$0xf0]  ;;  %v6167_v27 = vld [vmem:[#allocation11 + $0x54] sm:$0xf]  ;;  %1794 = vmatpush.bf16.msrb.mxu1 %v4984_v23  ;;  %v6186_v23 = vld [vmem:[#allocation14 + $0x24] sm:$0xf0] }
 0x116   :  { %v1185_v32 = vadd.f32 %v1184_v30, %v1171_v29  ;;  %v4872_v29 = vor.u32 %v6168_v26, %v4871_v25  ;;  %v4876_v30 = vor.u32 %v6167_v27, %v4873_v28  ;;  %v4975_v25 = vld [vmem:[#allocation14 + $0x60] sm:$0xf]  ;;  %v6194_v26 = vld [vmem:[#allocation14 + $0x64] sm:$0xf0]  ;;  %v4988_v27 = vor.u32 %v6195_v22, %v4985_v24  ;;  %v6193_v28 = vld [vmem:[#allocation14 + $0x64] sm:$0xf] }
 0x117   :  { %v4943_v22 = vld [vmem:[#allocation14 + $0x20] sm:$0xf] }
 0x118   :  { %v1301_v35 = vmax.f32 %v1185_v32, 0.0  ;;  %v1196_v40 = vpop.f32.mrf.mxu0  ;;  %v6166_v32 = vld [vmem:[#allocation11 + $0x44] sm:$0xf0]  ;;  %1572 = vmatpush.bf16.msra.mxu2 %v4872_v29  ;;  %1586 = vmatpush.bf16.msra.mxu3 %v4876_v30  ;;  %v4977_v29 = vld [vmem:[#allocation14 + $0x68] sm:$0xf0] }
 0x119   :  { %v1210_v44 = vpop.f32.mrf.mxu1  ;;  %v1197_v50 = vadd.f32 %v1196_v40, %v432_v45  ;;  %v6164_v40 = vld [vmem:[#allocation11 + $0x34] sm:$0xf0] }
 0x11a   :  { %v1303_v38 = vpack.c.bf16 %v1301_v35, %v1299_v34  ;;  %v4865_v34 = vld [vmem:[#allocation11 + $0x48] sm:$0xf0]  ;;  %v4864_v35 = vor.u32 %v6166_v32, %v4863_v31  ;;  %v4976_v32 = vor.u32 %v6194_v26, %v4975_v25  ;;  %v6185_v25 = vld [vmem:[#allocation14 + $0x24] sm:$0xf] }
 0x11b   :  { %v1211_v53 = vadd.f32 %v1210_v44, %v1197_v50  ;;  %v4856_v44 = vor.u32 %v6164_v40, %v4855_v39  ;;  %v4849_v50 = vld [vmem:[#allocation11 + $0x28] sm:$0xf0]  ;;  %v6192_v39 = vld [vmem:[#allocation14 + $0x54] sm:$0xf0]  ;;  %v6191_v40 = vld [vmem:[#allocation14 + $0x54] sm:$0xf] }
 0x11c   :  { %1445 = vmatmul.bf16.vlgmr.msra.gmra.mxu0 %v1303_v38  ;;  %v4868_v38 = vor.u32 %v6165_v33, %v4865_v34  ;;  %1573 = vmatpush.bf16.msra.mxu2 %v4864_v35  ;;  %v4980_v35 = vor.u32 %v6193_v28, %v4977_v29  ;;  %v4945_v26 = vld [vmem:[#allocation14 + $0x28] sm:$0xf0]  ;;  %v4935_v29 = vld [vmem:[#allocation14 + $0x10] sm:$0xf] }
 0x11d   :  { %1795 = vmatpush.bf16.msrb.mxu1 %v4976_v32  ;;  %v4948_v28 = vor.u32 %v6185_v25, %v4945_v26  ;;  %v6245_v25 = vld [vmem:[#allocation16 + $0x184] sm:$0xf] }
 0x11e   :  { %1587 = vmatpush.bf16.msra.mxu3 %v4868_v38  ;;  %v4967_v38 = vld [vmem:[#allocation14 + $0x50] sm:$0xf]  ;;  %v5185_v26 = vld [vmem:[#allocation16 + $0x1c0] sm:$0xf0] }
 0x120   :  { %v1224_v46 = vpop.f32.mrf.mxu2  ;;  %v1198_v49 = vpop.f32.mrf.mxu0  ;;  %1574 = vmatpush.bf16.msra.mxu2 %v4856_v44 }
 0x121   :  { %v1238_v47 = vpop.f32.mrf.mxu3  ;;  %v1212_v52 = vpop.f32.mrf.mxu1  ;;  %v1199_v54 = vadd.f32 %v1198_v49, %v432_v45  ;;  %v1225_v58 = vadd.f32 %v1224_v46, %v1211_v53  ;;  %v4857_v45 = vld [vmem:[#allocation11 + $0x38] sm:$0xf0]  ;;  %v4847_v46 = vld [vmem:[#allocation11 + $0x20] sm:$0xf]  ;;  %v6161_v49 = vld [vmem:[#allocation11 + $0x24] sm:$0xf] }
 0x122   :  { %v4860_v48 = vor.u32 %v6163_v43, %v4857_v45  ;;  %v4839_v53 = vld [vmem:[#allocation11 + $0x10] sm:$0xf]  ;;  %v4969_v43 = vld [vmem:[#allocation14 + $0x58] sm:$0xf0] }
 0x123   :  { %v1213_v59 = vadd.f32 %v1212_v52, %v1199_v54  ;;  %v1239_v13 = vadd.f32 %v1238_v47, %v1225_v58  ;;  %v6162_v47 = vld [vmem:[#allocation11 + $0x24] sm:$0xf0]  ;;  %v4852_v52 = vor.u32 %v6161_v49, %v4849_v50  ;;  %v6160_v54 = vld [vmem:[#allocation11 + $0x14] sm:$0xf0]  ;;  %v4831_v58 = vld [vmem:[#allocation11] sm:$0xf] }
 0x124   :  { %v4848_v51 = vor.u32 %v6162_v47, %v4847_v46  ;;  %1588 = vmatpush.bf16.msra.mxu3 %v4860_v48  ;;  %v4959_v47 = vld [vmem:[#allocation14 + $0x40] sm:$0xf]  ;;  %v6190_v48 = vld [vmem:[#allocation14 + $0x44] sm:$0xf0] }
 0x126   :  { %1575 = vmatpush.bf16.msra.mxu2 %v4848_v51  ;;  %v4968_v51 = vor.u32 %v6192_v39, %v4967_v38  ;;  %v6181_v39 = vld [vmem:[#allocation14 + $0x4] sm:$0xf] }
 0x128   :  { %v1226_v55 = vpop.f32.mrf.mxu2  ;;  %1589 = vmatpush.bf16.msra.mxu3 %v4852_v52  ;;  %1796 = vmatpush.bf16.msrb.mxu1 %v4968_v51  ;;  %v5375_v51 = vld [vmem:[#allocation16 + $0x300] sm:$0xf] }
 0x129   :  { %v1240_v56 = vpop.f32.mrf.mxu3  ;;  %v1227_v41 = vadd.f32 %v1226_v55, %v1213_v59  ;;  %v6159_v55 = vld [vmem:[#allocation11 + $0x14] sm:$0xf]  ;;  %v6158_v59 = vld [vmem:[#allocation11 + $0x4] sm:$0xf0] }
 0x12b   :  { %v1241_v61 = vadd.f32 %v1240_v56, %v1227_v41  ;;  %v4840_v56 = vor.u32 %v6160_v54, %v4839_v53  ;;  %v4833_v41 = vld [vmem:[#allocation11 + $0x8] sm:$0xf0]  ;;  %v4972_v53 = vor.u32 %v6191_v40, %v4969_v43  ;;  %v6189_v54 = vld [vmem:[#allocation14 + $0x44] sm:$0xf]  ;;  %v5439_v43 = vld [vmem:[#allocation16 + $0x380] sm:$0xf] }
 0x12c   :  { %v4929_v40 = vld [vmem:[#allocation14 + $0x8] sm:$0xf0] }
 0x12d   :  { %1576 = vmatpush.bf16.msra.mxu2 %v4840_v56  ;;  %v4961_v56 = vld [vmem:[#allocation14 + $0x48] sm:$0xf0] }
 0x138   :  { %v1252_v57 = vpop.f32.mrf.mxu0 }
 0x139   :  { %v1266_v60 = vpop.f32.mrf.mxu1  ;;  %v1253_v36 = vadd.f32 %v1252_v57, %v1239_v13  ;;  %v4841_v57 = vld [vmem:[#allocation11 + $0x18] sm:$0xf0]  ;;  %v6157_v13 = vld [vmem:[#allocation11 + $0x4] sm:$0xf] }
 0x13b   :  { %v1267_v12 = vadd.f32 %v1266_v60, %v1253_v36  ;;  %v4844_v60 = vor.u32 %v6159_v55, %v4841_v57  ;;  %v6180_v36 = vld [vmem:[#allocation13 + $0x38] sm:$0xff] }
 0x13c   :  { %1675 = vmatpush.bf16.msrb.mxu0 %v6180_v36  ;;  %v299_v36 = vld [vmem:[#allocation5] sm:$0xff] }
 0x13d   :  { %1590 = vmatpush.bf16.msra.mxu3 %v4844_v60 }
 0x140   :  { %v1280_v37 = vpop.f32.mrf.mxu2  ;;  %v1254_v62 = vpop.f32.mrf.mxu0 }
 0x141   :  { %v1294_v42 = vpop.f32.mrf.mxu3  ;;  %v1255_v63 = vadd.f32 %v1254_v62, %v1241_v61  ;;  %v1281_v20 = vadd.f32 %v1280_v37, %v1267_v12  ;;  %v1268_v0 = vpop.f32.mrf.mxu1  ;;  %v4832_v37 = vor.u32 %v6158_v59, %v4831_v58  ;;  %v6179_v61 = vld [vmem:[#allocation13 + $0x30] sm:$0xff]  ;;  %v4960_v59 = vor.u32 %v6190_v48, %v4959_v47  ;;  %v5441_v47 = vld [vmem:[#allocation16 + $0x3c0] sm:$0xf0] }
 0x142   :  { %1676 = vmatpush.bf16.msrb.mxu0 %v6179_v61  ;;  %v4932_v48 = vor.u32 %v6181_v39, %v4929_v40  ;;  %v6478_v39 = vld [vmem:[%s7304_s9] ss:$0 sm:$0xff]  ;;  %v5188_v40 = vor.u32 %v6245_v25, %v5185_v26  ;;  %v5383_v25 = vld [vmem:[#allocation16 + $0x308] sm:$0xf] }
 0x143   :  { %v1269_v1 = vadd.f32 %v1268_v0, %v1255_v63  ;;  %v1295_v3 = vadd.f32 %v1294_v42, %v1281_v20  ;;  %v4836_v42 = vor.u32 %v6157_v13, %v4833_v41  ;;  %1577 = vmatpush.bf16.msra.mxu2 %v4832_v37  ;;  %v6477_v63 = vld [vmem:[#allocation10] ss:$0 sm:$0xff]  ;;  %v4964_v41 = vor.u32 %v6189_v54, %v4961_v56  ;;  %v5377_v54 = vld [vmem:[#allocation16 + $0x340] sm:$0xf0]  ;;  %v6445_v56 = vld [vmem:[#allocation16 + $0x7bc] sm:$0xf0] }
 0x144   :  { %1797 = vmatpush.bf16.msrb.mxu1 %v4960_v59  ;;  %v6437_v59 = vld [vmem:[#allocation16 + $0x784] sm:$0xf]  ;;  %v6302_v26 = vld [vmem:[#allocation16 + $0x344] sm:$0xf0] }
 0x145   :  { %v1300_v7 = vmax.f32 %v1295_v3, 0.0  ;;  %1591 = vmatpush.bf16.msra.mxu3 %v4836_v42 }
 0x147   :  { %1808 = vmatpush.bf16.msrb.mxu2 %v4988_v27  ;;  %v4944_v27 = vor.u32 %v6186_v23, %v4943_v22  ;;  %v5183_v22 = vld [vmem:[#allocation16 + $0x180] sm:$0xf] }
 0x148   :  { %v1282_v2 = vpop.f32.mrf.mxu2  ;;  %v6253_v23 = vld [vmem:[#allocation16 + $0x1bc] sm:$0xf0] }
 0x149   :  { %v1283_v4 = vadd.f32 %v1282_v2, %v1269_v1  ;;  %v1296_v5 = vpop.f32.mrf.mxu3 }
 0x14b   :  { %v1297_v6 = vadd.f32 %v1296_v5, %v1283_v4  ;;  %1809 = vmatpush.bf16.msrb.mxu2 %v4980_v35  ;;  %v6182_v35 = vld [vmem:[#allocation14 + $0x4] sm:$0xf0] }
 0x14d   :  { %v1302_v8 = vmax.f32 %v1297_v6, 0.0 }
 0x14f   :  { %v1304_v19 = vpack.c.bf16 %v1302_v8, %v1300_v7  ;;  %v6178_v8 = vld [vmem:[#allocation13 + $0x28] sm:$0xff]  ;;  %1810 = vmatpush.bf16.msrb.mxu2 %v4972_v53  ;;  %v6293_v53 = vld [vmem:[#allocation16 + $0x304] sm:$0xf] }
 0x150   :  { %1677 = vmatpush.bf16.msrb.mxu0 %v6178_v8 }
 0x151   :  { %1459 = vmatmul.bf16.vlgmr.msra.gmra.mxu1 %v1304_v19  ;;  %v6177_v19 = vld [vmem:[#allocation13 + $0x20] sm:$0xff] }
 0x153   :  { %1811 = vmatpush.bf16.msrb.mxu2 %v4964_v41  ;;  %v5311_v41 = vld [vmem:[#allocation16 + $0x280] sm:$0xf] }
 0x154   :  { %1678 = vmatpush.bf16.msrb.mxu0 %v6177_v19 }
 0x158   :  { %1679 = vmatpush.bf16.msrb.mxu0 %v6176_v9 }
 0x15c   :  { %1680 = vmatpush.bf16.msrb.mxu0 %v6175_v10 }
 0x160   :  { %1681 = vmatpush.bf16.msrb.mxu0 %v6174_v14 }
 0x164   :  { %1682 = vmatpush.bf16.msrb.mxu0 %v6173_v17  ;;  %v6187_v17 = vld [vmem:[#allocation14 + $0x34] sm:$0xf] }
 0x165   :  { %v4956_v24 = vor.u32 %v6187_v17, %v4953_v21  ;;  %v6397_v17 = vld [vmem:[#allocation16 + $0x63c] sm:$0xf0]  ;;  %v5761_v21 = vld [vmem:[#allocation16 + $0x640] sm:$0xf0] }
 0x167   :  { %1812 = vmatpush.bf16.msrb.mxu2 %v4956_v24 }
 0x16b   :  { %1813 = vmatpush.bf16.msrb.mxu2 %v4948_v28 }
 0x199   :  { %v1446_v62 = vpop.f32.mrf.mxu0 }
 0x19a   :  { %v1447_v0 = vadd.f32 %v6477_v63, %v1446_v62 }
 0x1a1   :  { %v1448_v20 = vpop.f32.mrf.mxu0 }
 0x1a2   :  { %v1449_v1 = vadd.f32 %v6477_v63, %v1448_v20 }
 0x1ce   :  { %v1460_v12 = vpop.f32.mrf.mxu1 }
 0x1cf   :  { %v1461_v2 = vadd.f32 %v1460_v12, %v1447_v0 }
 0x1d1   :  { %v1465_v5 = vmax.f32 %v1461_v2, 0.0 }
 0x1d6   :  { %v1462_v3 = vpop.f32.mrf.mxu1 }
 0x1d7   :  { %v1463_v4 = vadd.f32 %v1462_v3, %v1449_v1 }
 0x1d9   :  { %v1466_v6 = vmax.f32 %v1463_v4, 0.0 }
 0x1db   :  { %v1467_v7 = vpack.c.bf16 %v1466_v6, %v1465_v5  ;;  %v300_v5 = vld [vmem:[#allocation5 + $0x8] sm:$0xff] }
 0x1dd   :  { %1578 = vmatmul.bf16.vlgmr.msra.gmra.mxu2 %v1467_v7  ;;  %1592 = vmatmul.bf16.vlgmr.msra.gmra.mxu3 %v1467_v7 }
 0x260   :  { %v1579_v30 = vpop.f32.mrf.mxu2  ;;  %v1593_v31 = vpop.f32.mrf.mxu3 }
 0x261   :  { %v1580_v33 = vadd.f32 %v1579_v30, %v1486_v15  ;;  %v1594_v34 = vadd.f32 %v1593_v31, %v1487_v16  ;;  %v6184_v30 = vld [vmem:[#allocation14 + $0x14] sm:$0xf0]  ;;  %v6183_v31 = vld [vmem:[#allocation14 + $0x14] sm:$0xf] }
 0x262   :  { %v4936_v32 = vor.u32 %v6184_v30, %v4935_v29  ;;  %v5695_v29 = vld [vmem:[#allocation16 + $0x580] sm:$0xf]  ;;  %v5184_v30 = vor.u32 %v6253_v23, %v5183_v22  ;;  %v6438_v22 = vld [vmem:[#allocation16 + $0x78c] sm:$0xf] }
 0x263   :  { %v3850_v44 = vrot.slane %v1580_v33, 2  ;;  %v3851_v45 = vrot.slane %v1580_v33, 4  ;;  %v3852_v46 = vrot.slane %v1580_v33, 6  ;;  %3862 = vst [vmem:[#allocation19] sm:$0x3] %v1580_v33  ;;  %v3872_v50 = vrot.slane %v1594_v34, 2 }
 0x264   :  { %v1598_v49 = vmul.f32 1.442695, %v1594_v34  ;;  %3884 = vst [vmem:[#allocation19 + $0x2] sm:$0x3] %v1594_v34  ;;  %v3873_v52 = vrot.slane %v1594_v34, 4  ;;  %v3874_v55 = vrot.slane %v1594_v34, 6 }
 0x265   :  { %3863 = vst [vmem:[#allocation19 + $0x6] sm:$0x3] %v3850_v44  ;;  %v4927_v34 = vld [vmem:[#allocation14] sm:$0xf]  ;;  %v5961_v23 = vld [vmem:[#allocation16 + $0x7c8] sm:$0xf0] }
 0x266   :  { %3864 = vst [vmem:[#allocation19 + $0xc] sm:$0x3] %v3851_v45  ;;  %6479 = vpow2.f32 %v1598_v49  ;;  %v4928_v44 = vor.u32 %v6182_v35, %v4927_v34  ;;  %v6317_v45 = vld [vmem:[#allocation16 + $0x3bc] sm:$0xf0] }
 0x267   :  { %3865 = vst [vmem:[#allocation19 + $0x12] sm:$0x3] %v3852_v46  ;;  %v6309_v46 = vld [vmem:[#allocation16 + $0x384] sm:$0xf]  ;;  %v5440_v49 = vor.u32 %v6317_v45, %v5439_v43  ;;  %v5119_v35 = vld [vmem:[#allocation16 + $0x100] sm:$0xf] }
 0x268   :  { %3885 = vst [vmem:[#allocation19 + $0x8] sm:$0x3] %v3872_v50  ;;  %v1581_v57 = vpop.f32.mrf.mxu2  ;;  %v1595_v58 = vpop.f32.mrf.mxu3  ;;  %v5444_v50 = vor.u32 %v6309_v46, %v5441_v47  ;;  %v6229_v43 = vld [vmem:[#allocation16 + $0x104] sm:$0xf]  ;;  %v5631_v47 = vld [vmem:[#allocation16 + $0x500] sm:$0xf] }
 0x269   :  { %3886 = vst [vmem:[#allocation19 + $0xe] sm:$0x3] %v3873_v52  ;;  %v1582_v60 = vadd.f32 %v1581_v57, %v1486_v15  ;;  %v1596_v13 = vadd.f32 %v1595_v58, %v1487_v16  ;;  %v4951_v15 = vld [vmem:[#allocation14 + $0x30] sm:$0xf]  ;;  %v6188_v16 = vld [vmem:[#allocation14 + $0x34] sm:$0xf0]  ;;  %3400 = vmatpush.bf16.msrb.mxu3 %v5440_v49 }
 0x26a   :  { %3887 = vst [vmem:[#allocation19 + $0x14] sm:$0x3] %v3874_v55  ;;  %v4952_v18 = vor.u32 %v6188_v16, %v4951_v15  ;;  %v6301_v52 = vld [vmem:[#allocation16 + $0x33c] sm:$0xf0] }
 0x26b   :  { %v3853_v37 = vrot.slane %v1582_v60, 2  ;;  %v3854_v42 = vrot.slane %v1582_v60, 4  ;;  %v3855_v61 = vrot.slane %v1582_v60, 6  ;;  %3866 = vst [vmem:[#allocation19 + $0x18] sm:$0x3] %v1582_v60  ;;  %v3875_v63 = vrot.slane %v1596_v13, 2 }
 0x26c   :  { %v6480_v62 = vpop.eup %6479  ;;  %v1600_v12 = vmul.f32 1.442695, %v1596_v13  ;;  %3888 = vst [vmem:[#allocation19 + $0x1a] sm:$0x3] %v1596_v13  ;;  %v3876_v0 = vrot.slane %v1596_v13, 4  ;;  %v3877_v1 = vrot.slane %v1596_v13, 6  ;;  %1798 = vmatpush.bf16.msrb.mxu1 %v4952_v18  ;;  %v5376_v57 = vor.u32 %v6301_v52, %v5375_v51 }
 0x26d   :  { %v1602_v20 = vmul.f32 %v6480_v62, %v299_v36  ;;  %3867 = vst [vmem:[#allocation19 + $0x1e] sm:$0x3] %v3853_v37  ;;  %v5951_v55 = vld [vmem:[#allocation16 + $0x780] sm:$0xf]  ;;  %v5380_v37 = vor.u32 %v6293_v53, %v5377_v54  ;;  %v6421_v62 = vld [vmem:[#allocation16 + $0x704] sm:$0xf] }
 0x26e   :  { %3868 = vst [vmem:[#allocation19 + $0x24] sm:$0x3] %v3854_v42  ;;  %6481 = vpow2.f32 %v1600_v12  ;;  %v5952_v58 = vor.u32 %v6445_v56, %v5951_v55  ;;  %v6285_v36 = vld [vmem:[#allocation16 + $0x2bc] sm:$0xf0]  ;;  %v6277_v12 = vld [vmem:[#allocation16 + $0x284] sm:$0xf]  ;;  %3401 = vmatpush.bf16.msrb.mxu3 %v5376_v57 }
 0x26f   :  { %3869 = vst [vmem:[#allocation19 + $0x2a] sm:$0x3] %v3855_v61  ;;  %v1604_v2 = vadd.f32 %v1602_v20, %v1580_v33  ;;  %v4937_v33 = vld [vmem:[#allocation14 + $0x18] sm:$0xf0]  ;;  %v5887_v42 = vld [vmem:[#allocation16 + $0x700] sm:$0xf] }
 0x270   :  { %3889 = vst [vmem:[#allocation19 + $0x20] sm:$0x3] %v3875_v63  ;;  %1799 = vmatpush.bf16.msrb.mxu1 %v4944_v27  ;;  %v4940_v38 = vor.u32 %v6183_v31, %v4937_v33  ;;  %v6429_v61 = vld [vmem:[#allocation16 + $0x73c] sm:$0xf0]  ;;  %3414 = vmatpush.bf16.msra.mxu0 %v5952_v58  ;;  %v5313_v63 = vld [vmem:[#allocation16 + $0x2c0] sm:$0xf0] }
 0x271   :  { %3890 = vst [vmem:[#allocation19 + $0x26] sm:$0x3] %v3876_v0  ;;  %v3894_v3 = vrot.slane %v1604_v2, 2  ;;  %v3895_v4 = vrot.slane %v1604_v2, 4  ;;  %v3896_v6 = vrot.slane %v1604_v2, 6  ;;  %v5888_v20 = vor.u32 %v6429_v61, %v5887_v42 }
 0x272   :  { %3891 = vst [vmem:[#allocation19 + $0x2c] sm:$0x3] %v3877_v1  ;;  %1814 = vmatpush.bf16.msrb.mxu2 %v4940_v38  ;;  %v5889_v0 = vld [vmem:[#allocation16 + $0x740] sm:$0xf0]  ;;  %v5312_v1 = vor.u32 %v6285_v36, %v5311_v41  ;;  %v5759_v15 = vld [vmem:[#allocation16 + $0x600] sm:$0xf] }
 0x273   :  { %3906 = vst [vmem:[#allocation19 + $0x4] sm:$0x3] %v1604_v2  ;;  %v6389_v18 = vld [vmem:[#allocation16 + $0x604] sm:$0xf]  ;;  %v5760_v27 = vor.u32 %v6397_v17, %v5759_v15  ;;  %v6381_v31 = vld [vmem:[#allocation16 + $0x5bc] sm:$0xf0] }
 0x274   :  { %v6482_v7 = vpop.eup %6481  ;;  %3907 = vst [vmem:[#allocation19 + $0xa] sm:$0x3] %v3894_v3  ;;  %1800 = vmatpush.bf16.msrb.mxu1 %v4936_v32  ;;  %v5247_v3 = vld [vmem:[#allocation16 + $0x200] sm:$0xf]  ;;  %3415 = vmatpush.bf16.msra.mxu0 %v5888_v20  ;;  %v5764_v28 = vor.u32 %v6389_v18, %v5761_v21  ;;  %v6373_v32 = vld [vmem:[#allocation16 + $0x584] sm:$0xf]  ;;  %v5696_v45 = vor.u32 %v6381_v31, %v5695_v29 }
 0x275   :  { %v1603_v8 = vmul.f32 %v6482_v7, %v300_v5  ;;  %3908 = vst [vmem:[#allocation19 + $0x10] sm:$0x3] %v3895_v4  ;;  %v6269_v4 = vld [vmem:[#allocation16 + $0x23c] sm:$0xf0]  ;;  %v6405_v7 = vld [vmem:[#allocation16 + $0x684] sm:$0xf]  ;;  %3402 = vmatpush.bf16.msrb.mxu3 %v5312_v1 }
 0x276   :  { %3909 = vst [vmem:[#allocation19 + $0x16] sm:$0x3] %v3896_v6  ;;  %1815 = vmatpush.bf16.msrb.mxu2 %v4932_v48  ;;  %v5823_v5 = vld [vmem:[#allocation16 + $0x680] sm:$0xf]  ;;  %v5248_v16 = vor.u32 %v6269_v4, %v5247_v3  ;;  %v5697_v33 = vld [vmem:[#allocation16 + $0x5c0] sm:$0xf0] }
 0x277   :  { %v1605_v19 = vadd.f32 %v1603_v8, %v1582_v60  ;;  %v5953_v60 = vld [vmem:[#allocation16 + $0x7c0] sm:$0xf0]  ;;  %v6413_v6 = vld [vmem:[#allocation16 + $0x6bc] sm:$0xf0]  ;;  %v5700_v46 = vor.u32 %v6373_v32, %v5697_v33  ;;  %v5447_v1 = vld [vmem:[#allocation16 + $0x388] sm:$0xf]  ;;  %v5964_v32 = vor.u32 %v6438_v22, %v5961_v23 }
 0x278   :  { %1801 = vmatpush.bf16.msrb.mxu1 %v4928_v44  ;;  %v5956_v13 = vor.u32 %v6437_v59, %v5953_v60  ;;  %v5825_v8 = vld [vmem:[#allocation16 + $0x6c0] sm:$0xf0]  ;;  %v6237_v38 = vld [vmem:[#allocation16 + $0x13c] sm:$0xf0]  ;;  %v6310_v3 = vld [vmem:[#allocation16 + $0x38c] sm:$0xf] }
 0x279   :  { %v1606_v9 = vpack.c.bf16 %v1605_v19, %v1604_v2  ;;  %v3897_v10 = vrot.slane %v1605_v19, 2  ;;  %v3898_v11 = vrot.slane %v1605_v19, 4  ;;  %v3899_v14 = vrot.slane %v1605_v19, 6  ;;  %3910 = vst [vmem:[#allocation19 + $0x1c] sm:$0x3] %v1605_v19  ;;  %3403 = vmatpush.bf16.msrb.mxu3 %v5248_v16 }
 0x27a   :  { %3442 = vmatpush.bf16.msra.mxu2 %v5956_v13  ;;  %v5892_v2 = vor.u32 %v6421_v62, %v5889_v0  ;;  %v5316_v19 = vor.u32 %v6277_v12, %v5313_v63  ;;  %v5121_v44 = vld [vmem:[#allocation16 + $0x140] sm:$0xf0]  ;;  %v5120_v48 = vor.u32 %v6237_v38, %v5119_v35  ;;  %v6365_v49 = vld [vmem:[#allocation16 + $0x53c] sm:$0xf0]  ;;  %v5449_v4 = vld [vmem:[#allocation16 + $0x3c8] sm:$0xf0]  ;;  %v5384_v35 = vor.u32 %v6302_v26, %v5383_v25 }
 0x27b   :  { %1683 = vmatmul.bf16.vlgmr.msrb.gmra.mxu0 %v1606_v9  ;;  %3911 = vst [vmem:[#allocation19 + $0x22] sm:$0x3] %v3897_v10  ;;  %v6261_v9 = vld [vmem:[#allocation16 + $0x204] sm:$0xf]  ;;  %v5055_v52 = vld [vmem:[#allocation16 + $0x80] sm:$0xf]  ;;  %v5124_v54 = vor.u32 %v6229_v43, %v5121_v44  ;;  %v5632_v57 = vor.u32 %v6365_v49, %v5631_v47 }
 0x27c   :  { %3912 = vst [vmem:[#allocation19 + $0x28] sm:$0x3] %v3898_v11  ;;  %3428 = vmatpush.bf16.msra.mxu1 %v5444_v50  ;;  %v5249_v10 = vld [vmem:[#allocation16 + $0x240] sm:$0xf0]  ;;  %v5824_v11 = vor.u32 %v6413_v6, %v5823_v5  ;;  %v6221_v53 = vld [vmem:[#allocation16 + $0xbc] sm:$0xf0] }
 0x27d   :  { %3913 = vst [vmem:[#allocation19 + $0x2e] sm:$0x3] %v3899_v14  ;;  %v5828_v14 = vor.u32 %v6405_v7, %v5825_v8  ;;  %v5252_v24 = vor.u32 %v6261_v9, %v5249_v10  ;;  %3404 = vmatpush.bf16.msrb.mxu3 %v5184_v30  ;;  %v6357_v50 = vld [vmem:[#allocation16 + $0x504] sm:$0xf]  ;;  %v5567_v59 = vld [vmem:[#allocation16 + $0x480] sm:$0xf]  ;;  %v5056_v13 = vor.u32 %v6221_v53, %v5055_v52 }
 0x27e   :  { %3443 = vmatpush.bf16.msra.mxu2 %v5892_v2  ;;  %3416 = vmatpush.bf16.msra.mxu0 %v5824_v11  ;;  %v5633_v51 = vld [vmem:[#allocation16 + $0x540] sm:$0xf0]  ;;  %v6349_v41 = vld [vmem:[#allocation16 + $0x4bc] sm:$0xf0]  ;;  %v6318_v2 = vld [vmem:[#allocation16 + $0x3c4] sm:$0xf0] }
 0x27f   :  { %v6213_v55 = vld [vmem:[#allocation16 + $0x84] sm:$0xf]  ;;  %v5636_v58 = vor.u32 %v6357_v50, %v5633_v51  ;;  %v4991_v61 = vld [vmem:[#allocation16] sm:$0xf]  ;;  %v5568_v5 = vor.u32 %v6349_v41, %v5567_v59  ;;  %v5959_v15 = vld [vmem:[#allocation16 + $0x788] sm:$0xf]  ;;  %v5448_v21 = vor.u32 %v6318_v2, %v5447_v1 }
 0x280   :  { %3429 = vmatpush.bf16.msra.mxu1 %v5380_v37  ;;  %v5057_v56 = vld [vmem:[#allocation16 + $0xc0] sm:$0xf0]  ;;  %v6205_v62 = vld [vmem:[#allocation16 + $0x3c] sm:$0xf0]  ;;  %v6446_v16 = vld [vmem:[#allocation16 + $0x7c4] sm:$0xf0] }
 0x281   :  { %3405 = vmatpush.bf16.msrb.mxu3 %v5120_v48  ;;  %v6341_v36 = vld [vmem:[#allocation16 + $0x484] sm:$0xf]  ;;  %v5060_v20 = vor.u32 %v6213_v55, %v5057_v56  ;;  %v5503_v7 = vld [vmem:[#allocation16 + $0x400] sm:$0xf]  ;;  %v4992_v11 = vor.u32 %v6205_v62, %v4991_v61  ;;  %v5385_v29 = vld [vmem:[#allocation16 + $0x348] sm:$0xf0]  ;;  %v5960_v31 = vor.u32 %v6446_v16, %v5959_v15 }
 0x282   :  { %3444 = vmatpush.bf16.msra.mxu2 %v5828_v14  ;;  %3417 = vmatpush.bf16.msra.mxu0 %v5760_v27  ;;  %v5569_v37 = vld [vmem:[#allocation16 + $0x4c0] sm:$0xf0]  ;;  %v6333_v9 = vld [vmem:[#allocation16 + $0x43c] sm:$0xf0]  ;;  %v5895_v33 = vld [vmem:[#allocation16 + $0x708] sm:$0xf] }
 0x283   :  { %v6197_v12 = vld [vmem:[#allocation16 + $0x4] sm:$0xf]  ;;  %v5572_v6 = vor.u32 %v6341_v36, %v5569_v37  ;;  %v5504_v27 = vor.u32 %v6333_v9, %v5503_v7  ;;  %v6422_v38 = vld [vmem:[#allocation16 + $0x70c] sm:$0xf]  ;;  %v5319_v43 = vld [vmem:[#allocation16 + $0x288] sm:$0xf] }
 0x284   :  { %3430 = vmatpush.bf16.msra.mxu1 %v5316_v19  ;;  %v4993_v0 = vld [vmem:[#allocation16 + $0x40] sm:$0xf0]  ;;  %v6286_v44 = vld [vmem:[#allocation16 + $0x2c4] sm:$0xf0]  ;;  %v6262_v53 = vld [vmem:[#allocation16 + $0x20c] sm:$0xf] }
 0x285   :  { %3406 = vmatpush.bf16.msrb.mxu3 %v5056_v13  ;;  %v6325_v10 = vld [vmem:[#allocation16 + $0x404] sm:$0xf]  ;;  %v4996_v18 = vor.u32 %v6197_v12, %v4993_v0  ;;  %v5320_v49 = vor.u32 %v6286_v44, %v5319_v43  ;;  %v5255_v51 = vld [vmem:[#allocation16 + $0x208] sm:$0xf]  ;;  %v6406_v59 = vld [vmem:[#allocation16 + $0x68c] sm:$0xf] }
 0x286   :  { %3445 = vmatpush.bf16.msra.mxu2 %v5764_v28  ;;  %3418 = vmatpush.bf16.msra.mxu0 %v5696_v45  ;;  %v5505_v14 = vld [vmem:[#allocation16 + $0x440] sm:$0xf0]  ;;  %v6294_v28 = vld [vmem:[#allocation16 + $0x30c] sm:$0xf]  ;;  %v6270_v52 = vld [vmem:[#allocation16 + $0x244] sm:$0xf0] }
 0x287   :  { %v5508_v30 = vor.u32 %v6325_v10, %v5505_v14  ;;  %v6278_v45 = vld [vmem:[#allocation16 + $0x28c] sm:$0xf]  ;;  %v5256_v55 = vor.u32 %v6270_v52, %v5255_v51  ;;  %v5191_v41 = vld [vmem:[#allocation16 + $0x188] sm:$0xf] }
 0x288   :  { %3431 = vmatpush.bf16.msra.mxu1 %v5252_v24  ;;  %v5452_v24 = vor.u32 %v6310_v3, %v5449_v4  ;;  %v5833_v13 = vld [vmem:[#allocation16 + $0x6c8] sm:$0xf0]  ;;  %v6254_v36 = vld [vmem:[#allocation16 + $0x1c4] sm:$0xf0] }
 0x289   :  { %3407 = vmatpush.bf16.msrb.mxu3 %v4992_v11  ;;  %v5836_v37 = vor.u32 %v6406_v59, %v5833_v13  ;;  %v6246_v61 = vld [vmem:[#allocation16 + $0x18c] sm:$0xf]  ;;  %v5767_v12 = vld [vmem:[#allocation16 + $0x608] sm:$0xf] }
 0x28a   :  { %3446 = vmatpush.bf16.msra.mxu2 %v5700_v46  ;;  %3419 = vmatpush.bf16.msra.mxu0 %v5632_v57  ;;  %v5321_v46 = vld [vmem:[#allocation16 + $0x2c8] sm:$0xf0]  ;;  %v5831_v57 = vld [vmem:[#allocation16 + $0x688] sm:$0xf] }
 0x28b   :  { %v5324_v50 = vor.u32 %v6278_v45, %v5321_v46  ;;  %v5193_v62 = vld [vmem:[#allocation16 + $0x1c8] sm:$0xf0]  ;;  %v5127_v4 = vld [vmem:[#allocation16 + $0x108] sm:$0xf] }
 0x28c   :  { %3432 = vmatpush.bf16.msra.mxu1 %v5188_v40  ;;  %v5388_v40 = vor.u32 %v6294_v28, %v5385_v29  ;;  %v6390_v0 = vld [vmem:[#allocation16 + $0x60c] sm:$0xf]  ;;  %v5703_v9 = vld [vmem:[#allocation16 + $0x588] sm:$0xf] }
 0x28d   :  { %3456 = vmatpush.bf16.msra.mxu3 %v5448_v21  ;;  %v5769_v1 = vld [vmem:[#allocation16 + $0x648] sm:$0xf0]  ;;  %v6382_v10 = vld [vmem:[#allocation16 + $0x5c4] sm:$0xf0] }
 0x28e   :  { %3447 = vmatpush.bf16.msra.mxu2 %v5636_v58  ;;  %3420 = vmatpush.bf16.msra.mxu0 %v5568_v5  ;;  %v6414_v58 = vld [vmem:[#allocation16 + $0x6c4] sm:$0xf0]  ;;  %v5772_v3 = vor.u32 %v6390_v0, %v5769_v1  ;;  %v6374_v11 = vld [vmem:[#allocation16 + $0x58c] sm:$0xf]  ;;  %v5704_v14 = vor.u32 %v6382_v10, %v5703_v9  ;;  %v6303_v1 = vld [vmem:[#allocation16 + $0x34c] sm:$0xf0] }
 0x28f   :  { %v6238_v5 = vld [vmem:[#allocation16 + $0x144] sm:$0xf0]  ;;  %v5705_v15 = vld [vmem:[#allocation16 + $0x5c8] sm:$0xf0] }
 0x290   :  { %3433 = vmatpush.bf16.msra.mxu1 %v5124_v54  ;;  %v5257_v54 = vld [vmem:[#allocation16 + $0x248] sm:$0xf0]  ;;  %v5128_v7 = vor.u32 %v6238_v5, %v5127_v4  ;;  %v5063_v16 = vld [vmem:[#allocation16 + $0x88] sm:$0xf]  ;;  %v5967_v5 = vld [vmem:[#allocation16 + $0x790] sm:$0xf] }
 0x291   :  { %3457 = vmatpush.bf16.msra.mxu3 %v5384_v35  ;;  %v5260_v56 = vor.u32 %v6262_v53, %v5257_v54  ;;  %v6214_v22 = vld [vmem:[#allocation16 + $0x8c] sm:$0xf]  ;;  %v6366_v26 = vld [vmem:[#allocation16 + $0x544] sm:$0xf0]  ;;  %v1708_v53 = vld [vmem:[%s7306_s11] sm:$0x3] }
 0x292   :  { %3448 = vmatpush.bf16.msra.mxu2 %v5572_v6  ;;  %3421 = vmatpush.bf16.msra.mxu0 %v5504_v27  ;;  %v6230_v6 = vld [vmem:[#allocation16 + $0x10c] sm:$0xf] }
 0x293   :  { %v5065_v23 = vld [vmem:[#allocation16 + $0xc8] sm:$0xf0] }
 0x294   :  { %3434 = vmatpush.bf16.msra.mxu1 %v5060_v20  ;;  %v6398_v20 = vld [vmem:[#allocation16 + $0x644] sm:$0xf0]  ;;  %v5068_v25 = vor.u32 %v6214_v22, %v5065_v23  ;;  %v6358_v27 = vld [vmem:[#allocation16 + $0x50c] sm:$0xf]  ;;  %v5903_v23 = vld [vmem:[#allocation16 + $0x710] sm:$0xf] }
 0x295   :  { %3458 = vmatpush.bf16.msra.mxu3 %v5320_v49  ;;  %v5768_v2 = vor.u32 %v6398_v20, %v5767_v12  ;;  %v5641_v28 = vld [vmem:[#allocation16 + $0x548] sm:$0xf0] }
 0x296   :  { %3449 = vmatpush.bf16.msra.mxu2 %v5508_v30  ;;  %3470 = vmatpush.bf16.msrb.mxu0 %v5960_v31  ;;  %v5644_v30 = vor.u32 %v6358_v27, %v5641_v28  ;;  %v4999_v31 = vld [vmem:[#allocation16 + $0x8] sm:$0xf]  ;;  %v5001_v35 = vld [vmem:[#allocation16 + $0x48] sm:$0xf0]  ;;  %v5905_v27 = vld [vmem:[#allocation16 + $0x750] sm:$0xf0] }
 0x297   :  { %v6342_v43 = vld [vmem:[#allocation16 + $0x48c] sm:$0xf] }
 0x298   :  { %3435 = vmatpush.bf16.msra.mxu1 %v4996_v18  ;;  %v5708_v18 = vor.u32 %v6374_v11, %v5705_v15  ;;  %v5577_v44 = vld [vmem:[#allocation16 + $0x4c8] sm:$0xf0]  ;;  %v5327_v11 = vld [vmem:[#allocation16 + $0x290] sm:$0xf] }
 0x299   :  { %3459 = vmatpush.bf16.msra.mxu3 %v5256_v55  ;;  %v5580_v46 = vor.u32 %v6342_v43, %v5577_v44  ;;  %v5513_v51 = vld [vmem:[#allocation16 + $0x448] sm:$0xf0]  ;;  %v1710_v55 = vperm.slane %v1708_v53, 0  ;;  %v5841_v43 = vld [vmem:[#allocation16 + $0x6d0] sm:$0xf0] }
 0x2f8   :  { %v1684_v34 = vpop.f32.mrf.mxu0 }
 0x2f9   :  { %v1685_v60 = vadd.f32 %v6478_v39, %v1684_v34  ;;  %v6430_v34 = vld [vmem:[#allocation16 + $0x744] sm:$0xf0] }
 0x2fa   :  { %v5896_v47 = vor.u32 %v6430_v34, %v5895_v33  ;;  %v6198_v33 = vld [vmem:[#allocation16 + $0xc] sm:$0xf] }
 0x2fb   :  { %v1689_v8 = vmax.f32 %v1685_v60, 0.0  ;;  %v5832_v60 = vor.u32 %v6414_v58, %v5831_v57  ;;  %v1711_v58 = vperm.slane %v1708_v53, 1  ;;  %v6399_v53 = vld [vmem:[#allocation16 + $0x64c] sm:$0xf0] }
 0x2fc   :  { %3471 = vmatpush.bf16.msrb.mxu0 %v5896_v47  ;;  %v5511_v47 = vld [vmem:[#allocation16 + $0x408] sm:$0xf] }
 0x300   :  { %v1686_v42 = vpop.f32.mrf.mxu0  ;;  %3472 = vmatpush.bf16.msrb.mxu0 %v5832_v60  ;;  %v5455_v60 = vld [vmem:[#allocation16 + $0x390] sm:$0xf] }
 0x301   :  { %v1687_v63 = vadd.f32 %v6478_v39, %v1686_v42  ;;  %v5897_v39 = vld [vmem:[#allocation16 + $0x748] sm:$0xf0]  ;;  %v5192_v42 = vor.u32 %v6254_v36, %v5191_v41  ;;  %v6319_v41 = vld [vmem:[#allocation16 + $0x3cc] sm:$0xf0]  ;;  %v6311_v36 = vld [vmem:[#allocation16 + $0x394] sm:$0xf] }
 0x302   :  { %v5900_v48 = vor.u32 %v6422_v38, %v5897_v39  ;;  %v5004_v38 = vor.u32 %v6198_v33, %v5001_v35  ;;  %v5575_v39 = vld [vmem:[#allocation16 + $0x488] sm:$0xf]  ;;  %v5265_v33 = vld [vmem:[#allocation16 + $0x250] sm:$0xf0] }
 0x303   :  { %v1690_v19 = vmax.f32 %v1687_v63, 0.0  ;;  %v5196_v63 = vor.u32 %v6246_v61, %v5193_v62  ;;  %3460 = vmatpush.bf16.msra.mxu3 %v5192_v42  ;;  %v5456_v62 = vor.u32 %v6319_v41, %v5455_v60  ;;  %v6231_v60 = vld [vmem:[#allocation16 + $0x114] sm:$0xf] }
 0x304   :  { %3473 = vmatpush.bf16.msrb.mxu0 %v5768_v2  ;;  %v6295_v2 = vld [vmem:[#allocation16 + $0x314] sm:$0xf] }
 0x305   :  { %v1691_v17 = vpack.c.bf16 %v1690_v19, %v1689_v8  ;;  %v5129_v8 = vld [vmem:[#allocation16 + $0x148] sm:$0xf0] }
 0x306   :  { %v5132_v19 = vor.u32 %v6230_v6, %v5129_v8  ;;  %v6439_v8 = vld [vmem:[#allocation16 + $0x794] sm:$0xf] }
 0x307   :  { %1802 = vmatmul.bf16.vlgmr.msrb.gmra.mxu1 %v1691_v17  ;;  %1816 = vmatmul.bf16.vlgmr.msrb.gmra.mxu2 %v1691_v17  ;;  %v6222_v17 = vld [vmem:[#allocation16 + $0xc4] sm:$0xf0] }
 0x308   :  { %3484 = vmatpush.bf16.msrb.mxu1 %v5452_v24  ;;  %3498 = vmatpush.bf16.msrb.mxu2 %v5964_v32  ;;  %v5064_v21 = vor.u32 %v6222_v17, %v5063_v16  ;;  %v5639_v24 = vld [vmem:[#allocation16 + $0x508] sm:$0xf]  ;;  %v6279_v17 = vld [vmem:[#allocation16 + $0x294] sm:$0xf] }
 0x309   :  { %3461 = vmatpush.bf16.msra.mxu3 %v5128_v7  ;;  %3474 = vmatpush.bf16.msrb.mxu0 %v5704_v14  ;;  %v5640_v29 = vor.u32 %v6366_v26, %v5639_v24  ;;  %v6206_v32 = vld [vmem:[#allocation16 + $0x44] sm:$0xf0]  ;;  %v6447_v7 = vld [vmem:[#allocation16 + $0x7cc] sm:$0xf0]  ;;  %v6423_v26 = vld [vmem:[#allocation16 + $0x714] sm:$0xf] }
 0x30a   :  { %v5000_v34 = vor.u32 %v6206_v32, %v4999_v31  ;;  %v6287_v14 = vld [vmem:[#allocation16 + $0x2cc] sm:$0xf0]  ;;  %v6263_v32 = vld [vmem:[#allocation16 + $0x214] sm:$0xf]  ;;  %v5908_v35 = vor.u32 %v6423_v26, %v5905_v27 }
 0x30b   :  { %v5328_v28 = vor.u32 %v6287_v14, %v5327_v11  ;;  %v6271_v31 = vld [vmem:[#allocation16 + $0x24c] sm:$0xf0] }
 0x30c   :  { %3485 = vmatpush.bf16.msrb.mxu1 %v5388_v40  ;;  %3499 = vmatpush.bf16.msrb.mxu2 %v5900_v48  ;;  %v6350_v40 = vld [vmem:[#allocation16 + $0x4c4] sm:$0xf0]  ;;  %v5007_v11 = vld [vmem:[#allocation16 + $0x10] sm:$0xf] }
 0x30d   :  { %3462 = vmatpush.bf16.msra.mxu3 %v5064_v21  ;;  %3475 = vmatpush.bf16.msrb.mxu0 %v5640_v29  ;;  %v5576_v45 = vor.u32 %v6350_v40, %v5575_v39  ;;  %v6334_v48 = vld [vmem:[#allocation16 + $0x444] sm:$0xf0]  ;;  %v5968_v21 = vor.u32 %v6447_v7, %v5967_v5  ;;  %v6415_v39 = vld [vmem:[#allocation16 + $0x6cc] sm:$0xf0]  ;;  %v6407_v40 = vld [vmem:[#allocation16 + $0x694] sm:$0xf] }
 0x30e   :  { %v5512_v49 = vor.u32 %v6334_v48, %v5511_v47  ;;  %v6255_v47 = vld [vmem:[#allocation16 + $0x1cc] sm:$0xf0]  ;;  %v6247_v48 = vld [vmem:[#allocation16 + $0x194] sm:$0xf] }
 0x30f   :  { %v6367_v7 = vld [vmem:[#allocation16 + $0x54c] sm:$0xf0] }
 0x310   :  { %3486 = vmatpush.bf16.msrb.mxu1 %v5324_v50  ;;  %3500 = vmatpush.bf16.msrb.mxu2 %v5836_v37  ;;  %v6326_v50 = vld [vmem:[#allocation16 + $0x40c] sm:$0xf]  ;;  %v5457_v37 = vld [vmem:[#allocation16 + $0x3d0] sm:$0xf0]  ;;  %v6207_v14 = vld [vmem:[#allocation16 + $0x4c] sm:$0xf0] }
 0x311   :  { %3463 = vmatpush.bf16.msra.mxu3 %v5000_v34  ;;  %3476 = vmatpush.bf16.msrb.mxu0 %v5576_v45  ;;  %v5516_v52 = vor.u32 %v6326_v50, %v5513_v51  ;;  %v5460_v12 = vor.u32 %v6311_v36, %v5457_v37  ;;  %v5268_v45 = vor.u32 %v6263_v32, %v5265_v33  ;;  %v5711_v37 = vld [vmem:[#allocation16 + $0x590] sm:$0xf] }
 0x312   :  { %v5844_v51 = vor.u32 %v6407_v40, %v5841_v43  ;;  %v5583_v26 = vld [vmem:[#allocation16 + $0x490] sm:$0xf]  ;;  %v5401_v43 = vld [vmem:[#allocation16 + $0x358] sm:$0xf0] }
 0x313   :  { %v6351_v27 = vld [vmem:[#allocation16 + $0x4cc] sm:$0xf0] }
 0x314   :  { %3487 = vmatpush.bf16.msrb.mxu1 %v5260_v56  ;;  %3501 = vmatpush.bf16.msrb.mxu2 %v5772_v3  ;;  %v5393_v3 = vld [vmem:[#allocation16 + $0x350] sm:$0xf0] }
 0x315   :  { %3477 = vmatpush.bf16.msrb.mxu0 %v5512_v49  ;;  %v5396_v10 = vor.u32 %v6295_v2, %v5393_v3  ;;  %v5201_v49 = vld [vmem:[#allocation16 + $0x1d0] sm:$0xf0] }
 0x316   :  { %v6215_v2 = vld [vmem:[#allocation16 + $0x94] sm:$0xf] }
 0x317   :  { %v5073_v3 = vld [vmem:[#allocation16 + $0xd0] sm:$0xf0] }
 0x318   :  { %3488 = vmatpush.bf16.msrb.mxu1 %v5196_v63  ;;  %3502 = vmatpush.bf16.msrb.mxu2 %v5708_v18  ;;  %v5391_v63 = vld [vmem:[#allocation16 + $0x310] sm:$0xf]  ;;  %v5329_v18 = vld [vmem:[#allocation16 + $0x2d0] sm:$0xf0] }
 0x319   :  { %v5392_v9 = vor.u32 %v6303_v1, %v5391_v63  ;;  %v5332_v29 = vor.u32 %v6279_v17, %v5329_v18  ;;  %v6223_v1 = vld [vmem:[#allocation16 + $0xcc] sm:$0xf0]  ;;  %v5463_v17 = vld [vmem:[#allocation16 + $0x398] sm:$0xf] }
 0x31a   :  { %v6320_v18 = vld [vmem:[#allocation16 + $0x3d4] sm:$0xf0] }
 0x31b   :  { %v5464_v32 = vor.u32 %v6320_v18, %v5463_v17  ;;  %v5783_v17 = vld [vmem:[#allocation16 + $0x618] sm:$0xf] }
 0x31c   :  { %3489 = vmatpush.bf16.msrb.mxu1 %v5132_v19  ;;  %3503 = vmatpush.bf16.msrb.mxu2 %v5644_v30  ;;  %v5969_v19 = vld [vmem:[#allocation16 + $0x7d0] sm:$0xf0]  ;;  %v5263_v30 = vld [vmem:[#allocation16 + $0x210] sm:$0xf]  ;;  %v6400_v18 = vld [vmem:[#allocation16 + $0x654] sm:$0xf0] }
 0x31d   :  { %v5972_v22 = vor.u32 %v6439_v8, %v5969_v19  ;;  %v5264_v44 = vor.u32 %v6271_v31, %v5263_v30  ;;  %v6359_v8 = vld [vmem:[#allocation16 + $0x514] sm:$0xf]  ;;  %v5008_v30 = vor.u32 %v6207_v14, %v5007_v11  ;;  %v6248_v11 = vld [vmem:[#allocation16 + $0x19c] sm:$0xf] }
 0x31e   :  { %v5649_v19 = vld [vmem:[#allocation16 + $0x550] sm:$0xf0]  ;;  %v5209_v14 = vld [vmem:[#allocation16 + $0x1d8] sm:$0xf0] }
 0x320   :  { %3490 = vmatpush.bf16.msrb.mxu1 %v5068_v25  ;;  %3504 = vmatpush.bf16.msrb.mxu2 %v5580_v46  ;;  %v6431_v25 = vld [vmem:[#allocation16 + $0x74c] sm:$0xf0] }
 0x321   :  { %v5904_v34 = vor.u32 %v6431_v25, %v5903_v23  ;;  %v5199_v46 = vld [vmem:[#allocation16 + $0x190] sm:$0xf]  ;;  %v6312_v23 = vld [vmem:[#allocation16 + $0x39c] sm:$0xf] }
 0x322   :  { %v5465_v25 = vld [vmem:[#allocation16 + $0x3d8] sm:$0xf0] }
 0x323   :  { %v5468_v33 = vor.u32 %v6312_v23, %v5465_v25  ;;  %v5212_v25 = vor.u32 %v6248_v11, %v5209_v14  ;;  %v5983_v11 = vld [vmem:[#allocation16 + $0x7a0] sm:$0xf] }
 0x324   :  { %3491 = vmatpush.bf16.msrb.mxu1 %v5004_v38  ;;  %3505 = vmatpush.bf16.msrb.mxu2 %v5516_v52  ;;  %v5839_v38 = vld [vmem:[#allocation16 + $0x690] sm:$0xf]  ;;  %v6449_v14 = vld [vmem:[#allocation16 + $0x7dc] sm:$0xf0] }
 0x325   :  { %v5840_v50 = vor.u32 %v6415_v39, %v5839_v38  ;;  %v5775_v52 = vld [vmem:[#allocation16 + $0x610] sm:$0xf]  ;;  %v6296_v38 = vld [vmem:[#allocation16 + $0x31c] sm:$0xf]  ;;  %v5584_v39 = vor.u32 %v6351_v27, %v5583_v26  ;;  %v5143_v26 = vld [vmem:[#allocation16 + $0x118] sm:$0xf] }
 0x326   :  { %v5776_v41 = vor.u32 %v6399_v53, %v5775_v52  ;;  %v5404_v53 = vor.u32 %v6296_v38, %v5401_v43  ;;  %v6240_v27 = vld [vmem:[#allocation16 + $0x154] sm:$0xf0] }
 0x327   :  { %v5144_v38 = vor.u32 %v6240_v27, %v5143_v26  ;;  %v6224_v43 = vld [vmem:[#allocation16 + $0xd4] sm:$0xf0]  ;;  %v5984_v26 = vor.u32 %v6449_v14, %v5983_v11  ;;  %v5663_v11 = vld [vmem:[#allocation16 + $0x520] sm:$0xf] }
 0x328   :  { %v6369_v14 = vld [vmem:[#allocation16 + $0x55c] sm:$0xf0] }
 0x384   :  { %v1803_v54 = vpop.f32.mrf.mxu1 }
 0x385   :  { %v1804_v57 = vadd.f32 %v1803_v54, %v1710_v55  ;;  %v6391_v54 = vld [vmem:[#allocation16 + $0x614] sm:$0xf] }
 0x387   :  { %v1822_v42 = vmax.f32 %v1804_v57, 0.0  ;;  %v5204_v57 = vor.u32 %v6247_v48, %v5201_v49  ;;  %v5975_v48 = vld [vmem:[#allocation16 + $0x798] sm:$0xf] }
 0x388   :  { %v6448_v49 = vld [vmem:[#allocation16 + $0x7d4] sm:$0xf0] }
 0x38a   :  { %v1817_v56 = vpop.f32.mrf.mxu2 }
 0x38b   :  { %v1818_v20 = vadd.f32 %v1817_v56, %v1711_v58  ;;  %v5200_v56 = vor.u32 %v6255_v47, %v5199_v46  ;;  %v6327_v46 = vld [vmem:[#allocation16 + $0x414] sm:$0xf] }
 0x38c   :  { %v1805_v59 = vpop.f32.mrf.mxu1  ;;  %v5521_v47 = vld [vmem:[#allocation16 + $0x450] sm:$0xf0] }
 0x38d   :  { %v1806_v13 = vadd.f32 %v1805_v59, %v1710_v55  ;;  %v1823_v15 = vmax.f32 %v1818_v20, 0.0  ;;  %v5777_v55 = vld [vmem:[#allocation16 + $0x650] sm:$0xf0]  ;;  %v6239_v59 = vld [vmem:[#allocation16 + $0x14c] sm:$0xf0] }
 0x38e   :  { %v5780_v36 = vor.u32 %v6391_v54, %v5777_v55  ;;  %v5071_v20 = vld [vmem:[#allocation16 + $0x90] sm:$0xf]  ;;  %v5335_v54 = vld [vmem:[#allocation16 + $0x298] sm:$0xf] }
 0x38f   :  { %v1824_v61 = vmax.f32 %v1806_v13, 0.0  ;;  %v5137_v13 = vld [vmem:[#allocation16 + $0x150] sm:$0xf0] }
 0x390   :  { %v5140_v63 = vor.u32 %v6231_v60, %v5137_v13  ;;  %v5976_v60 = vor.u32 %v6448_v49, %v5975_v48  ;;  %v5655_v48 = vld [vmem:[#allocation16 + $0x518] sm:$0xf] }
 0x391   :  { %v7023_v0 = vpack.c.bf16 %v1824_v61, %v1822_v42  ;;  %v6383_v42 = vld [vmem:[#allocation16 + $0x5cc] sm:$0xf0]  ;;  %v6375_v61 = vld [vmem:[#allocation16 + $0x594] sm:$0xf]  ;;  %v6368_v49 = vld [vmem:[#allocation16 + $0x554] sm:$0xf0] }
 0x392   :  { %v1819_v4 = vpop.f32.mrf.mxu2 }
 0x393   :  { %v1820_v6 = vadd.f32 %v1819_v4, %v1711_v58  ;;  %3408 = vmatmul.bf16.vlgmr.msrb.gmra.mxu3 %v7023_v0  ;;  %3436 = vmatmul.bf16.vlgmr.msra.gmra.mxu1 %v7023_v0  ;;  %v5135_v58 = vld [vmem:[#allocation16 + $0x110] sm:$0xf]  ;;  %v5712_v4 = vor.u32 %v6383_v42, %v5711_v37  ;;  %v6424_v37 = vld [vmem:[#allocation16 + $0x71c] sm:$0xf] }
 0x394   :  { %3512 = vmatpush.bf16.msrb.mxu3 %v5456_v62  ;;  %3540 = vmatpush.bf16.msra.mxu1 %v5460_v12  ;;  %v5713_v62 = vld [vmem:[#allocation16 + $0x5d0] sm:$0xf0]  ;;  %v5136_v12 = vor.u32 %v6239_v59, %v5135_v58  ;;  %v6280_v58 = vld [vmem:[#allocation16 + $0x29c] sm:$0xf] }
 0x395   :  { %v1825_v16 = vmax.f32 %v1820_v6, 0.0  ;;  %v5716_v5 = vor.u32 %v6375_v61, %v5713_v62  ;;  %v5647_v6 = vld [vmem:[#allocation16 + $0x510] sm:$0xf]  ;;  %v5337_v59 = vld [vmem:[#allocation16 + $0x2d8] sm:$0xf0] }
 0x396   :  { %v5913_v42 = vld [vmem:[#allocation16 + $0x758] sm:$0xf0]  ;;  %v5340_v62 = vor.u32 %v6280_v58, %v5337_v59  ;;  %v5471_v58 = vld [vmem:[#allocation16 + $0x3a0] sm:$0xf] }
 0x397   :  { %v7027_v24 = vpack.c.bf16 %v1825_v16, %v1823_v15  ;;  %v6199_v15 = vld [vmem:[#allocation16 + $0x14] sm:$0xf]  ;;  %v6321_v59 = vld [vmem:[#allocation16 + $0x3dc] sm:$0xf0] }
 0x398   :  { %3513 = vmatpush.bf16.msrb.mxu3 %v5392_v9  ;;  %3541 = vmatpush.bf16.msra.mxu1 %v5396_v10  ;;  %v5072_v9 = vor.u32 %v6223_v1, %v5071_v20  ;;  %v5076_v10 = vor.u32 %v6215_v2, %v5073_v3  ;;  %v5009_v16 = vld [vmem:[#allocation16 + $0x50] sm:$0xf0]  ;;  %v6264_v20 = vld [vmem:[#allocation16 + $0x21c] sm:$0xf]  ;;  %v5916_v3 = vor.u32 %v6424_v37, %v5913_v42  ;;  %v5591_v37 = vld [vmem:[#allocation16 + $0x498] sm:$0xf] }
 0x399   :  { %3422 = vmatmul.bf16.vlgmr.msra.gmra.mxu0 %v7027_v24  ;;  %3450 = vmatmul.bf16.vlgmr.msra.gmra.mxu2 %v7027_v24  ;;  %v5012_v31 = vor.u32 %v6199_v15, %v5009_v16  ;;  %v5273_v1 = vld [vmem:[#allocation16 + $0x258] sm:$0xf0]  ;;  %v6352_v42 = vld [vmem:[#allocation16 + $0x4d4] sm:$0xf0] }
 0x39a   :  { %3526 = vmatpush.bf16.msra.mxu0 %v5968_v21  ;;  %3554 = vmatpush.bf16.msra.mxu2 %v5972_v22  ;;  %v5648_v21 = vor.u32 %v6367_v7, %v5647_v6  ;;  %v5652_v22 = vor.u32 %v6359_v8, %v5649_v19  ;;  %v6408_v6 = vld [vmem:[#allocation16 + $0x69c] sm:$0xf]  ;;  %v5276_v19 = vor.u32 %v6264_v20, %v5273_v1 }
 0x39b   :  { %v5849_v7 = vld [vmem:[#allocation16 + $0x6d8] sm:$0xf0]  ;;  %v5472_v20 = vor.u32 %v6321_v59, %v5471_v58  ;;  %v5791_v58 = vld [vmem:[#allocation16 + $0x620] sm:$0xf] }
 0x39c   :  { %3514 = vmatpush.bf16.msrb.mxu3 %v5328_v28  ;;  %3542 = vmatpush.bf16.msra.mxu1 %v5332_v29  ;;  %v6343_v28 = vld [vmem:[#allocation16 + $0x494] sm:$0xf]  ;;  %v5852_v16 = vor.u32 %v6408_v6, %v5849_v7  ;;  %v5409_v7 = vld [vmem:[#allocation16 + $0x360] sm:$0xf0]  ;;  %v6401_v59 = vld [vmem:[#allocation16 + $0x65c] sm:$0xf0] }
 0x39d   :  { %v5585_v29 = vld [vmem:[#allocation16 + $0x4d0] sm:$0xf0] }
 0x39e   :  { %3527 = vmatpush.bf16.msra.mxu0 %v5904_v34  ;;  %3555 = vmatpush.bf16.msra.mxu2 %v5908_v35  ;;  %v5399_v34 = vld [vmem:[#allocation16 + $0x318] sm:$0xf]  ;;  %v5588_v40 = vor.u32 %v6343_v28, %v5585_v29  ;;  %v6232_v28 = vld [vmem:[#allocation16 + $0x11c] sm:$0xf] }
 0x39f   :  { %v6304_v35 = vld [vmem:[#allocation16 + $0x354] sm:$0xf0]  ;;  %v5145_v29 = vld [vmem:[#allocation16 + $0x158] sm:$0xf0] }
 0x3a0   :  { %3515 = vmatpush.bf16.msrb.mxu3 %v5264_v44  ;;  %3543 = vmatpush.bf16.msra.mxu1 %v5268_v45  ;;  %v5519_v44 = vld [vmem:[#allocation16 + $0x410] sm:$0xf]  ;;  %v5400_v52 = vor.u32 %v6304_v35, %v5399_v34  ;;  %v6376_v34 = vld [vmem:[#allocation16 + $0x59c] sm:$0xf] }
 0x3a1   :  { %v6335_v45 = vld [vmem:[#allocation16 + $0x44c] sm:$0xf0]  ;;  %v5721_v35 = vld [vmem:[#allocation16 + $0x5d8] sm:$0xf0] }
 0x3a2   :  { %3528 = vmatpush.bf16.msra.mxu0 %v5840_v50  ;;  %3556 = vmatpush.bf16.msra.mxu2 %v5844_v51  ;;  %v6440_v50 = vld [vmem:[#allocation16 + $0x79c] sm:$0xf]  ;;  %v5520_v55 = vor.u32 %v6335_v45, %v5519_v44 }
 0x3a3   :  { %3464 = vmatmul.bf16.vlgmr.msra.gmra.mxu3 %v7023_v0  ;;  %3492 = vmatmul.bf16.vlgmr.msrb.gmra.mxu1 %v7023_v0  ;;  %v5977_v51 = vld [vmem:[#allocation16 + $0x7d8] sm:$0xf0] }
 0x3a4   :  { %3516 = vmatpush.bf16.msrb.mxu3 %v5200_v56  ;;  %3544 = vmatpush.bf16.msra.mxu1 %v5204_v57  ;;  %v5524_v56 = vor.u32 %v6327_v46, %v5521_v47  ;;  %v6288_v57 = vld [vmem:[#allocation16 + $0x2d4] sm:$0xf0]  ;;  %v5980_v13 = vor.u32 %v6440_v50, %v5977_v51  ;;  %v6216_v44 = vld [vmem:[#allocation16 + $0x9c] sm:$0xf]  ;;  %v5724_v47 = vor.u32 %v6376_v34, %v5721_v35 }
 0x3a5   :  { %v5336_v61 = vor.u32 %v6288_v57, %v5335_v54  ;;  %v5081_v45 = vld [vmem:[#allocation16 + $0xd8] sm:$0xf0]  ;;  %v5015_v54 = vld [vmem:[#allocation16 + $0x18] sm:$0xf] }
 0x3a6   :  { %3529 = vmatpush.bf16.msra.mxu0 %v5776_v41  ;;  %3557 = vmatpush.bf16.msra.mxu2 %v5780_v36  ;;  %v5911_v41 = vld [vmem:[#allocation16 + $0x718] sm:$0xf]  ;;  %v6360_v50 = vld [vmem:[#allocation16 + $0x51c] sm:$0xf] }
 0x3a7   :  { %v6432_v36 = vld [vmem:[#allocation16 + $0x754] sm:$0xf0]  ;;  %v5657_v51 = vld [vmem:[#allocation16 + $0x558] sm:$0xf0] }
 0x3a8   :  { %3517 = vmatpush.bf16.msrb.mxu3 %v5136_v12  ;;  %3545 = vmatpush.bf16.msra.mxu1 %v5140_v63  ;;  %v5271_v12 = vld [vmem:[#allocation16 + $0x218] sm:$0xf]  ;;  %v5912_v2 = vor.u32 %v6432_v36, %v5911_v41  ;;  %v5017_v57 = vld [vmem:[#allocation16 + $0x58] sm:$0xf0]  ;;  %v6313_v41 = vld [vmem:[#allocation16 + $0x3a4] sm:$0xf] }
 0x3a9   :  { %3478 = vmatmul.bf16.vlgmr.msrb.gmra.mxu0 %v7027_v24  ;;  %3506 = vmatmul.bf16.vlgmr.msrb.gmra.mxu2 %v7027_v24  ;;  %v6272_v63 = vld [vmem:[#allocation16 + $0x254] sm:$0xf0]  ;;  %v5473_v36 = vld [vmem:[#allocation16 + $0x3e0] sm:$0xf0] }
 0x3aa   :  { %3530 = vmatpush.bf16.msra.mxu0 %v5712_v4  ;;  %3558 = vmatpush.bf16.msra.mxu2 %v5716_v5  ;;  %v5847_v4 = vld [vmem:[#allocation16 + $0x698] sm:$0xf]  ;;  %v5272_v8 = vor.u32 %v6272_v63, %v5271_v12  ;;  %v5476_v1 = vor.u32 %v6313_v41, %v5473_v36 }
 0x3ab   :  { %v6416_v5 = vld [vmem:[#allocation16 + $0x6d4] sm:$0xf0] }
 0x3ac   :  { %3518 = vmatpush.bf16.msrb.mxu3 %v5072_v9  ;;  %3546 = vmatpush.bf16.msra.mxu1 %v5076_v10  ;;  %v5207_v9 = vld [vmem:[#allocation16 + $0x198] sm:$0xf]  ;;  %v5848_v15 = vor.u32 %v6416_v5, %v5847_v4  ;;  %v6297_v4 = vld [vmem:[#allocation16 + $0x324] sm:$0xf]  ;;  %v5592_v5 = vor.u32 %v6352_v42, %v5591_v37  ;;  %v5151_v37 = vld [vmem:[#allocation16 + $0x120] sm:$0xf] }
 0x3ad   :  { %v6256_v10 = vld [vmem:[#allocation16 + $0x1d4] sm:$0xf0]  ;;  %v6241_v42 = vld [vmem:[#allocation16 + $0x15c] sm:$0xf0] }
 0x3ae   :  { %3531 = vmatpush.bf16.msra.mxu0 %v5648_v21  ;;  %3559 = vmatpush.bf16.msra.mxu2 %v5652_v22  ;;  %v6392_v21 = vld [vmem:[#allocation16 + $0x61c] sm:$0xf]  ;;  %v5208_v23 = vor.u32 %v6256_v10, %v5207_v9 }
 0x3af   :  { %v5785_v22 = vld [vmem:[#allocation16 + $0x658] sm:$0xf0] }
 0x3b0   :  { %3519 = vmatpush.bf16.msrb.mxu3 %v5008_v30  ;;  %3547 = vmatpush.bf16.msra.mxu1 %v5012_v31  ;;  %v5784_v30 = vor.u32 %v6400_v18, %v5783_v17  ;;  %v5788_v31 = vor.u32 %v6392_v21, %v5785_v22  ;;  %v6328_v9 = vld [vmem:[#allocation16 + $0x41c] sm:$0xf]  ;;  %v5412_v18 = vor.u32 %v6297_v4, %v5409_v7  ;;  %v6225_v7 = vld [vmem:[#allocation16 + $0xdc] sm:$0xf0] }
 0x3b1   :  { %v5529_v10 = vld [vmem:[#allocation16 + $0x458] sm:$0xf0]  ;;  %v5152_v4 = vor.u32 %v6241_v42, %v5151_v37 }
 0x3b2   :  { %3532 = vmatpush.bf16.msra.mxu0 %v5584_v39  ;;  %3560 = vmatpush.bf16.msra.mxu2 %v5588_v40  ;;  %v5148_v39 = vor.u32 %v6232_v28, %v5145_v29  ;;  %v5079_v40 = vld [vmem:[#allocation16 + $0x98] sm:$0xf]  ;;  %v5532_v22 = vor.u32 %v6328_v9, %v5529_v10  ;;  %v6281_v28 = vld [vmem:[#allocation16 + $0x2a4] sm:$0xf] }
 0x3b3   :  { %3520 = vmatmul.bf16.vlgmr.msrb.gmra.mxu3 %v7023_v0  ;;  %3548 = vmatmul.bf16.vlgmr.msra.gmra.mxu1 %v7023_v0  ;;  %v5345_v29 = vld [vmem:[#allocation16 + $0x2e0] sm:$0xf0] }
 0x3b4   :  { %3568 = vmatpush.bf16.msra.mxu3 %v5464_v32  ;;  %3596 = vmatpush.bf16.msrb.mxu1 %v5468_v33  ;;  %v5719_v32 = vld [vmem:[#allocation16 + $0x598] sm:$0xf]  ;;  %v5348_v35 = vor.u32 %v6281_v28, %v5345_v29  ;;  %v6217_v9 = vld [vmem:[#allocation16 + $0xa4] sm:$0xf]  ;;  %v5479_v28 = vld [vmem:[#allocation16 + $0x3a8] sm:$0xf] }
 0x3b5   :  { %v6384_v33 = vld [vmem:[#allocation16 + $0x5d4] sm:$0xf0]  ;;  %v5089_v10 = vld [vmem:[#allocation16 + $0xe0] sm:$0xf0]  ;;  %v6322_v29 = vld [vmem:[#allocation16 + $0x3e4] sm:$0xf0] }
 0x3b6   :  { %3533 = vmatpush.bf16.msra.mxu0 %v5520_v55  ;;  %3561 = vmatpush.bf16.msra.mxu2 %v5524_v56  ;;  %v5720_v46 = vor.u32 %v6384_v33, %v5719_v32  ;;  %v6208_v55 = vld [vmem:[#allocation16 + $0x54] sm:$0xf0]  ;;  %v6200_v56 = vld [vmem:[#allocation16 + $0x1c] sm:$0xf]  ;;  %v6425_v32 = vld [vmem:[#allocation16 + $0x724] sm:$0xf] }
 0x3b7   :  { %v5016_v12 = vor.u32 %v6208_v55, %v5015_v54  ;;  %v5020_v63 = vor.u32 %v6200_v56, %v5017_v57  ;;  %v5921_v33 = vld [vmem:[#allocation16 + $0x760] sm:$0xf0] }
 0x3b8   :  { %3569 = vmatpush.bf16.msra.mxu3 %v5400_v52  ;;  %3597 = vmatpush.bf16.msrb.mxu1 %v5404_v53  ;;  %v5080_v52 = vor.u32 %v6224_v43, %v5079_v40  ;;  %v5084_v53 = vor.u32 %v6216_v44, %v5081_v45  ;;  %v5924_v43 = vor.u32 %v6425_v32, %v5921_v33  ;;  %v6265_v44 = vld [vmem:[#allocation16 + $0x224] sm:$0xf]  ;;  %v5599_v32 = vld [vmem:[#allocation16 + $0x4a0] sm:$0xf] }
 0x3b9   :  { %3534 = vmatmul.bf16.vlgmr.msra.gmra.mxu0 %v7027_v24  ;;  %3562 = vmatmul.bf16.vlgmr.msra.gmra.mxu2 %v7027_v24  ;;  %v5281_v45 = vld [vmem:[#allocation16 + $0x260] sm:$0xf0]  ;;  %v6353_v33 = vld [vmem:[#allocation16 + $0x4dc] sm:$0xf0] }
 0x3ba   :  { %3582 = vmatpush.bf16.msrb.mxu0 %v5976_v60  ;;  %3610 = vmatpush.bf16.msrb.mxu2 %v5980_v13  ;;  %v5656_v60 = vor.u32 %v6368_v49, %v5655_v48  ;;  %v5660_v13 = vor.u32 %v6360_v50, %v5657_v51  ;;  %v6409_v48 = vld [vmem:[#allocation16 + $0x6a4] sm:$0xf]  ;;  %v5284_v51 = vor.u32 %v6265_v44, %v5281_v45  ;;  %v5415_v44 = vld [vmem:[#allocation16 + $0x328] sm:$0xf] }
 0x3bb   :  { %v5857_v49 = vld [vmem:[#allocation16 + $0x6e0] sm:$0xf0]  ;;  %v6306_v45 = vld [vmem:[#allocation16 + $0x364] sm:$0xf0] }
 0x3bc   :  { %3570 = vmatpush.bf16.msra.mxu3 %v5336_v61  ;;  %3598 = vmatpush.bf16.msrb.mxu1 %v5340_v62  ;;  %v6344_v61 = vld [vmem:[#allocation16 + $0x49c] sm:$0xf]  ;;  %v5860_v55 = vor.u32 %v6409_v48, %v5857_v49  ;;  %v6249_v56 = vld [vmem:[#allocation16 + $0x1a4] sm:$0xf]  ;;  %v5417_v49 = vld [vmem:[#allocation16 + $0x368] sm:$0xf0] }
 0x3bd   :  { %v5593_v62 = vld [vmem:[#allocation16 + $0x4d8] sm:$0xf0]  ;;  %v5217_v57 = vld [vmem:[#allocation16 + $0x1e0] sm:$0xf0] }
 0x3be   :  { %3583 = vmatpush.bf16.msrb.mxu0 %v5912_v2  ;;  %3611 = vmatpush.bf16.msrb.mxu2 %v5916_v3  ;;  %v5407_v2 = vld [vmem:[#allocation16 + $0x320] sm:$0xf]  ;;  %v5596_v6 = vor.u32 %v6344_v61, %v5593_v62  ;;  %v5220_v36 = vor.u32 %v6249_v56, %v5217_v57  ;;  %v5792_v61 = vor.u32 %v6401_v59, %v5791_v58  ;;  %v6442_v56 = vld [vmem:[#allocation16 + $0x7ac] sm:$0xf] }
 0x3bf   :  { %v6305_v3 = vld [vmem:[#allocation16 + $0x35c] sm:$0xf0]  ;;  %v5993_v57 = vld [vmem:[#allocation16 + $0x7e8] sm:$0xf0]  ;;  %v5416_v58 = vor.u32 %v6306_v45, %v5415_v44 }
 0x3c0   :  { %3571 = vmatpush.bf16.msra.mxu3 %v5272_v8  ;;  %3599 = vmatpush.bf16.msrb.mxu1 %v5276_v19  ;;  %v5527_v8 = vld [vmem:[#allocation16 + $0x418] sm:$0xf]  ;;  %v5408_v17 = vor.u32 %v6305_v3, %v5407_v2  ;;  %v6377_v2 = vld [vmem:[#allocation16 + $0x5a4] sm:$0xf]  ;;  %v5996_v42 = vor.u32 %v6442_v56, %v5993_v57  ;;  %v6378_v44 = vld [vmem:[#allocation16 + $0x5ac] sm:$0xf] }
 0x3c1   :  { %v6336_v19 = vld [vmem:[#allocation16 + $0x454] sm:$0xf0]  ;;  %v5729_v3 = vld [vmem:[#allocation16 + $0x5e0] sm:$0xf0]  ;;  %v5737_v45 = vld [vmem:[#allocation16 + $0x5e8] sm:$0xf0] }
 0x3c2   :  { %3584 = vmatpush.bf16.msrb.mxu0 %v5848_v15  ;;  %3612 = vmatpush.bf16.msrb.mxu2 %v5852_v16  ;;  %v6441_v15 = vld [vmem:[#allocation16 + $0x7a4] sm:$0xf]  ;;  %v5528_v21 = vor.u32 %v6336_v19, %v5527_v8  ;;  %v5732_v19 = vor.u32 %v6377_v2, %v5729_v3  ;;  %v6362_v56 = vld [vmem:[#allocation16 + $0x52c] sm:$0xf] }
 0x3c3   :  { %v5985_v16 = vld [vmem:[#allocation16 + $0x7e0] sm:$0xf0]  ;;  %v5673_v57 = vld [vmem:[#allocation16 + $0x568] sm:$0xf0] }
 0x3c4   :  { %3572 = vmatpush.bf16.msra.mxu3 %v5208_v23  ;;  %3600 = vmatpush.bf16.msrb.mxu1 %v5212_v25  ;;  %v5343_v23 = vld [vmem:[#allocation16 + $0x2a0] sm:$0xf]  ;;  %v5988_v27 = vor.u32 %v6441_v15, %v5985_v16  ;;  %v6361_v15 = vld [vmem:[#allocation16 + $0x524] sm:$0xf] }
 0x3c5   :  { %v6289_v25 = vld [vmem:[#allocation16 + $0x2dc] sm:$0xf0]  ;;  %v5665_v16 = vld [vmem:[#allocation16 + $0x560] sm:$0xf0] }
 0x3c6   :  { %3585 = vmatpush.bf16.msrb.mxu0 %v5784_v30  ;;  %3613 = vmatpush.bf16.msrb.mxu2 %v5788_v31  ;;  %v5919_v30 = vld [vmem:[#allocation16 + $0x720] sm:$0xf]  ;;  %v5344_v34 = vor.u32 %v6289_v25, %v5343_v23  ;;  %v6201_v23 = vld [vmem:[#allocation16 + $0x24] sm:$0xf]  ;;  %v5664_v25 = vor.u32 %v6369_v14, %v5663_v11  ;;  %v6410_v11 = vld [vmem:[#allocation16 + $0x6ac] sm:$0xf] }
 0x3c7   :  { %v6433_v31 = vld [vmem:[#allocation16 + $0x75c] sm:$0xf0]  ;;  %v5865_v14 = vld [vmem:[#allocation16 + $0x6e8] sm:$0xf0] }
 0x3c8   :  { %3573 = vmatpush.bf16.msra.mxu3 %v5144_v38  ;;  %3601 = vmatpush.bf16.msrb.mxu1 %v5148_v39  ;;  %v5279_v38 = vld [vmem:[#allocation16 + $0x220] sm:$0xf]  ;;  %v5920_v40 = vor.u32 %v6433_v31, %v5919_v30  ;;  %v6314_v30 = vld [vmem:[#allocation16 + $0x3ac] sm:$0xf] }
 0x3c9   :  { %v6273_v39 = vld [vmem:[#allocation16 + $0x25c] sm:$0xf0]  ;;  %v5481_v31 = vld [vmem:[#allocation16 + $0x3e8] sm:$0xf0] }
 0x3ca   :  { %3586 = vmatpush.bf16.msrb.mxu0 %v5720_v46  ;;  %3614 = vmatpush.bf16.msrb.mxu2 %v5724_v47  ;;  %v5855_v46 = vld [vmem:[#allocation16 + $0x6a0] sm:$0xf]  ;;  %v5280_v50 = vor.u32 %v6273_v39, %v5279_v38 }
 0x3cb   :  { %v6417_v47 = vld [vmem:[#allocation16 + $0x6dc] sm:$0xf0] }
 0x3cc   :  { %3574 = vmatpush.bf16.msra.mxu3 %v5080_v52  ;;  %3602 = vmatpush.bf16.msrb.mxu1 %v5084_v53  ;;  %v5215_v52 = vld [vmem:[#allocation16 + $0x1a0] sm:$0xf]  ;;  %v5856_v54 = vor.u32 %v6417_v47, %v5855_v46  ;;  %v6298_v46 = vld [vmem:[#allocation16 + $0x32c] sm:$0xf]  ;;  %v5600_v47 = vor.u32 %v6353_v33, %v5599_v32  ;;  %v5159_v32 = vld [vmem:[#allocation16 + $0x128] sm:$0xf] }
 0x3cd   :  { %v6257_v53 = vld [vmem:[#allocation16 + $0x1dc] sm:$0xf0]  ;;  %v5420_v59 = vor.u32 %v6298_v46, %v5417_v49  ;;  %v6242_v33 = vld [vmem:[#allocation16 + $0x164] sm:$0xf0] }
 0x3ce   :  { %3587 = vmatpush.bf16.msrb.mxu0 %v5656_v60  ;;  %3615 = vmatpush.bf16.msrb.mxu2 %v5660_v13  ;;  %v6393_v60 = vld [vmem:[#allocation16 + $0x624] sm:$0xf]  ;;  %v5216_v41 = vor.u32 %v6257_v53, %v5215_v52  ;;  %v5160_v46 = vor.u32 %v6242_v33, %v5159_v32  ;;  %v6226_v49 = vld [vmem:[#allocation16 + $0xe4] sm:$0xf0] }
 0x3cf   :  { %v5793_v13 = vld [vmem:[#allocation16 + $0x660] sm:$0xf0] }
 0x3d0   :  { %3575 = vmatpush.bf16.msra.mxu3 %v5016_v12  ;;  %3603 = vmatpush.bf16.msrb.mxu1 %v5020_v63  ;;  %v5796_v62 = vor.u32 %v6393_v60, %v5793_v13  ;;  %v6233_v12 = vld [vmem:[#allocation16 + $0x124] sm:$0xf] }
 0x3d1   :  { %v5153_v63 = vld [vmem:[#allocation16 + $0x160] sm:$0xf0] }
 0x3d2   :  { %3588 = vmatpush.bf16.msrb.mxu0 %v5592_v5  ;;  %3616 = vmatpush.bf16.msrb.mxu2 %v5596_v6  ;;  %v5156_v5 = vor.u32 %v6233_v12, %v5153_v63  ;;  %v5087_v6 = vld [vmem:[#allocation16 + $0xa0] sm:$0xf]  ;;  %v6329_v52 = vld [vmem:[#allocation16 + $0x424] sm:$0xf]  ;;  %v5927_v12 = vld [vmem:[#allocation16 + $0x728] sm:$0xf] }
 0x3d3   :  { %3576 = vmatmul.bf16.vlgmr.msra.gmra.mxu3 %v7023_v0  ;;  %3604 = vmatmul.bf16.vlgmr.msrb.gmra.mxu1 %v7023_v0  ;;  %v5537_v53 = vld [vmem:[#allocation16 + $0x460] sm:$0xf0]  ;;  %v6434_v63 = vld [vmem:[#allocation16 + $0x764] sm:$0xf0] }
 0x3d4   :  { %3624 = vmatpush.bf16.msrb.mxu3 %v5472_v20  ;;  %3652 = vmatpush.bf16.msra.mxu1 %v5476_v1  ;;  %v5727_v20 = vld [vmem:[#allocation16 + $0x5a0] sm:$0xf]  ;;  %v5540_v13 = vor.u32 %v6329_v52, %v5537_v53  ;;  %v6218_v52 = vld [vmem:[#allocation16 + $0xac] sm:$0xf] }
 0x3d5   :  { %v6385_v1 = vld [vmem:[#allocation16 + $0x5dc] sm:$0xf0]  ;;  %v5097_v53 = vld [vmem:[#allocation16 + $0xe8] sm:$0xf0] }
 0x3d6   :  { %3589 = vmatpush.bf16.msrb.mxu0 %v5528_v21  ;;  %3617 = vmatpush.bf16.msrb.mxu2 %v5532_v22  ;;  %v5728_v8 = vor.u32 %v6385_v1, %v5727_v20  ;;  %v5023_v21 = vld [vmem:[#allocation16 + $0x20] sm:$0xf]  ;;  %v6426_v20 = vld [vmem:[#allocation16 + $0x72c] sm:$0xf] }
 0x3d7   :  { %v6209_v22 = vld [vmem:[#allocation16 + $0x5c] sm:$0xf0]  ;;  %v5929_v1 = vld [vmem:[#allocation16 + $0x768] sm:$0xf0] }
 0x3d8   :  { %3625 = vmatpush.bf16.msrb.mxu3 %v5408_v17  ;;  %3653 = vmatpush.bf16.msra.mxu1 %v5412_v18  ;;  %v5088_v17 = vor.u32 %v6225_v7, %v5087_v6  ;;  %v5092_v18 = vor.u32 %v6217_v9, %v5089_v10  ;;  %v5024_v38 = vor.u32 %v6209_v22, %v5023_v21  ;;  %v5863_v9 = vld [vmem:[#allocation16 + $0x6a8] sm:$0xf] }
 0x3d9   :  { %3590 = vmatmul.bf16.vlgmr.msrb.gmra.mxu0 %v7027_v24  ;;  %3618 = vmatmul.bf16.vlgmr.msrb.gmra.mxu2 %v7027_v24  ;;  %v5928_v6 = vor.u32 %v6434_v63, %v5927_v12  ;;  %v5932_v7 = vor.u32 %v6426_v20, %v5929_v1  ;;  %v6418_v10 = vld [vmem:[#allocation16 + $0x6e4] sm:$0xf0]  ;;  %v5868_v22 = vor.u32 %v6410_v11, %v5865_v14  ;;  %v6315_v12 = vld [vmem:[#allocation16 + $0x3b4] sm:$0xf] }
 0x3da   :  { %3638 = vmatpush.bf16.msra.mxu0 %v5984_v26  ;;  %3666 = vmatpush.bf16.msra.mxu2 %v5988_v27  ;;  %v5668_v26 = vor.u32 %v6361_v15, %v5665_v16  ;;  %v5025_v27 = vld [vmem:[#allocation16 + $0x60] sm:$0xf0]  ;;  %v5864_v21 = vor.u32 %v6418_v10, %v5863_v9  ;;  %v5489_v63 = vld [vmem:[#allocation16 + $0x3f0] sm:$0xf0]  ;;  %v5607_v20 = vld [vmem:[#allocation16 + $0x4a8] sm:$0xf] }
 0x3db   :  { %v5028_v39 = vor.u32 %v6201_v23, %v5025_v27  ;;  %v6250_v23 = vld [vmem:[#allocation16 + $0x1ac] sm:$0xf]  ;;  %v6402_v27 = vld [vmem:[#allocation16 + $0x664] sm:$0xf0]  ;;  %v6299_v9 = vld [vmem:[#allocation16 + $0x334] sm:$0xf] }
 0x3dc   :  { %3626 = vmatpush.bf16.msrb.mxu3 %v5344_v34  ;;  %3654 = vmatpush.bf16.msra.mxu1 %v5348_v35  ;;  %v6345_v34 = vld [vmem:[#allocation16 + $0x4a4] sm:$0xf]  ;;  %v6354_v1 = vld [vmem:[#allocation16 + $0x4e4] sm:$0xf0]  ;;  %v5425_v14 = vld [vmem:[#allocation16 + $0x370] sm:$0xf0] }
 0x3dd   :  { %v5601_v35 = vld [vmem:[#allocation16 + $0x4e0] sm:$0xf0]  ;;  %v5608_v10 = vor.u32 %v6354_v1, %v5607_v20  ;;  %v5167_v20 = vld [vmem:[#allocation16 + $0x130] sm:$0xf] }
 0x3de   :  { %3639 = vmatpush.bf16.msra.mxu0 %v5920_v40  ;;  %3667 = vmatpush.bf16.msra.mxu2 %v5924_v43  ;;  %v5480_v40 = vor.u32 %v6322_v29, %v5479_v28  ;;  %v5484_v43 = vor.u32 %v6314_v30, %v5481_v31  ;;  %v5604_v48 = vor.u32 %v6345_v34, %v5601_v35  ;;  %v6394_v28 = vld [vmem:[#allocation16 + $0x62c] sm:$0xf]  ;;  %v6243_v1 = vld [vmem:[#allocation16 + $0x16c] sm:$0xf0] }
 0x3df   :  { %v5801_v29 = vld [vmem:[#allocation16 + $0x668] sm:$0xf0] }
 0x3e0   :  { %3627 = vmatpush.bf16.msrb.mxu3 %v5280_v50  ;;  %3655 = vmatpush.bf16.msra.mxu1 %v5284_v51  ;;  %v5535_v50 = vld [vmem:[#allocation16 + $0x420] sm:$0xf]  ;;  %v5804_v35 = vor.u32 %v6394_v28, %v5801_v29 }
 0x3e1   :  { %v6337_v51 = vld [vmem:[#allocation16 + $0x45c] sm:$0xf0] }
 0x3e2   :  { %3640 = vmatpush.bf16.msra.mxu0 %v5856_v54  ;;  %3668 = vmatpush.bf16.msra.mxu2 %v5860_v55  ;;  %v5991_v54 = vld [vmem:[#allocation16 + $0x7a8] sm:$0xf]  ;;  %v5536_v60 = vor.u32 %v6337_v51, %v5535_v50  ;;  %v5740_v51 = vor.u32 %v6378_v44, %v5737_v45 }
 0x3e3   :  { %v6450_v55 = vld [vmem:[#allocation16 + $0x7e4] sm:$0xf0] }
 0x3e4   :  { %3628 = vmatpush.bf16.msrb.mxu3 %v5216_v41  ;;  %3656 = vmatpush.bf16.msra.mxu1 %v5220_v36  ;;  %v5351_v41 = vld [vmem:[#allocation16 + $0x2a8] sm:$0xf]  ;;  %v5992_v37 = vor.u32 %v6450_v55, %v5991_v54 }
 0x3e5   :  { %v6290_v36 = vld [vmem:[#allocation16 + $0x2e4] sm:$0xf0] }
 0x3e6   :  { %3641 = vmatpush.bf16.msra.mxu0 %v5792_v61  ;;  %3669 = vmatpush.bf16.msra.mxu2 %v5796_v62  ;;  %v6282_v61 = vld [vmem:[#allocation16 + $0x2ac] sm:$0xf]  ;;  %v5352_v2 = vor.u32 %v6290_v36, %v5351_v41  ;;  %v5671_v54 = vld [vmem:[#allocation16 + $0x528] sm:$0xf] }
 0x3e7   :  { %v5353_v62 = vld [vmem:[#allocation16 + $0x2e8] sm:$0xf0]  ;;  %v6370_v55 = vld [vmem:[#allocation16 + $0x564] sm:$0xf0] }
 0x3e8   :  { %3629 = vmatpush.bf16.msrb.mxu3 %v5152_v4  ;;  %3657 = vmatpush.bf16.msra.mxu1 %v5156_v5  ;;  %v5356_v3 = vor.u32 %v6282_v61, %v5353_v62  ;;  %v5287_v4 = vld [vmem:[#allocation16 + $0x228] sm:$0xf]  ;;  %v6202_v41 = vld [vmem:[#allocation16 + $0x2c] sm:$0xf]  ;;  %v5672_v36 = vor.u32 %v6370_v55, %v5671_v54  ;;  %v5487_v61 = vld [vmem:[#allocation16 + $0x3b0] sm:$0xf] }
 0x3e9   :  { %v6274_v5 = vld [vmem:[#allocation16 + $0x264] sm:$0xf0]  ;;  %v6323_v62 = vld [vmem:[#allocation16 + $0x3ec] sm:$0xf0]  ;;  %v6411_v54 = vld [vmem:[#allocation16 + $0x6b4] sm:$0xf] }
 0x3ea   :  { %3642 = vmatpush.bf16.msra.mxu0 %v5728_v8  ;;  %3670 = vmatpush.bf16.msra.mxu2 %v5732_v19  ;;  %v6266_v8 = vld [vmem:[#allocation16 + $0x22c] sm:$0xf]  ;;  %v5288_v15 = vor.u32 %v6274_v5, %v5287_v4  ;;  %v5873_v55 = vld [vmem:[#allocation16 + $0x6f0] sm:$0xf0] }
 0x3eb   :  { %v5289_v19 = vld [vmem:[#allocation16 + $0x268] sm:$0xf0] }
 0x3ec   :  { %3630 = vmatpush.bf16.msrb.mxu3 %v5088_v17  ;;  %3658 = vmatpush.bf16.msra.mxu1 %v5092_v18  ;;  %v5292_v16 = vor.u32 %v6266_v8, %v5289_v19  ;;  %v5223_v17 = vld [vmem:[#allocation16 + $0x1a8] sm:$0xf]  ;;  %v5423_v8 = vld [vmem:[#allocation16 + $0x330] sm:$0xf] }
 0x3ed   :  { %v6258_v18 = vld [vmem:[#allocation16 + $0x1e4] sm:$0xf0]  ;;  %v6307_v19 = vld [vmem:[#allocation16 + $0x36c] sm:$0xf0] }
 0x3ee   :  { %3643 = vmatpush.bf16.msra.mxu0 %v5664_v25  ;;  %3671 = vmatpush.bf16.msra.mxu2 %v5668_v26  ;;  %v5225_v25 = vld [vmem:[#allocation16 + $0x1e8] sm:$0xf0]  ;;  %v5799_v26 = vld [vmem:[#allocation16 + $0x628] sm:$0xf]  ;;  %v5224_v30 = vor.u32 %v6258_v18, %v5223_v17 }
 0x3ef   :  { %v5228_v31 = vor.u32 %v6250_v23, %v5225_v25  ;;  %v5800_v34 = vor.u32 %v6402_v27, %v5799_v26  ;;  %v6330_v17 = vld [vmem:[#allocation16 + $0x42c] sm:$0xf]  ;;  %v6443_v23 = vld [vmem:[#allocation16 + $0x7b4] sm:$0xf]  ;;  %v5424_v26 = vor.u32 %v6307_v19, %v5423_v8  ;;  %v5428_v27 = vor.u32 %v6299_v9, %v5425_v14  ;;  %v6387_v19 = vld [vmem:[#allocation16 + $0x5ec] sm:$0xf0] }
 0x3f0   :  { %3631 = vmatpush.bf16.msrb.mxu3 %v5024_v38  ;;  %3659 = vmatpush.bf16.msra.mxu1 %v5028_v39  ;;  %v6234_v38 = vld [vmem:[#allocation16 + $0x12c] sm:$0xf]  ;;  %v6001_v25 = vld [vmem:[#allocation16 + $0x7f0] sm:$0xf0]  ;;  %v5168_v14 = vor.u32 %v6243_v1, %v5167_v20  ;;  %v6444_v20 = vld [vmem:[#allocation16 + $0x7bc] sm:$0xf] }
 0x3f1   :  { %v5161_v39 = vld [vmem:[#allocation16 + $0x168] sm:$0xf0]  ;;  %v6004_v33 = vor.u32 %v6443_v23, %v6001_v25  ;;  %v6379_v9 = vld [vmem:[#allocation16 + $0x5b4] sm:$0xf]  ;;  %v5679_v25 = vld [vmem:[#allocation16 + $0x530] sm:$0xf] }
 0x3f2   :  { %3644 = vmatpush.bf16.msra.mxu0 %v5600_v47  ;;  %3672 = vmatpush.bf16.msra.mxu2 %v5604_v48  ;;  %v5164_v47 = vor.u32 %v6234_v38, %v5161_v39  ;;  %v5095_v48 = vld [vmem:[#allocation16 + $0xa8] sm:$0xf]  ;;  %v5545_v18 = vld [vmem:[#allocation16 + $0x468] sm:$0xf0]  ;;  %v5935_v38 = vld [vmem:[#allocation16 + $0x730] sm:$0xf] }
 0x3f3   :  { %3632 = vmatmul.bf16.vlgmr.msrb.gmra.mxu3 %v7023_v0  ;;  %3660 = vmatmul.bf16.vlgmr.msra.gmra.mxu1 %v7023_v0  ;;  %v5548_v29 = vor.u32 %v6330_v17, %v5545_v18  ;;  %v6435_v39 = vld [vmem:[#allocation16 + $0x76c] sm:$0xf0]  ;;  %v5105_v23 = vld [vmem:[#allocation16 + $0xf0] sm:$0xf0]  ;;  %v6009_v1 = vld [vmem:[#allocation16 + $0x7f8] sm:$0xf0] }
 0x3f4   :  { %3680 = vmatpush.bf16.msra.mxu3 %v5480_v40  ;;  %3708 = vmatpush.bf16.msrb.mxu1 %v5484_v43  ;;  %v5735_v40 = vld [vmem:[#allocation16 + $0x5a8] sm:$0xf]  ;;  %v5103_v18 = vld [vmem:[#allocation16 + $0xb0] sm:$0xf] }
 0x3f5   :  { %v6386_v43 = vld [vmem:[#allocation16 + $0x5e4] sm:$0xf0] }
 0x3f6   :  { %3645 = vmatpush.bf16.msra.mxu0 %v5536_v60  ;;  %3673 = vmatpush.bf16.msra.mxu2 %v5540_v13  ;;  %v5736_v50 = vor.u32 %v6386_v43, %v5735_v40  ;;  %v5031_v60 = vld [vmem:[#allocation16 + $0x28] sm:$0xf]  ;;  %v6427_v40 = vld [vmem:[#allocation16 + $0x734] sm:$0xf] }
 0x3f7   :  { %v6210_v13 = vld [vmem:[#allocation16 + $0x64] sm:$0xf0]  ;;  %v5937_v43 = vld [vmem:[#allocation16 + $0x770] sm:$0xf0] }
 0x3f8   :  { %3681 = vmatpush.bf16.msra.mxu3 %v5416_v58  ;;  %3709 = vmatpush.bf16.msrb.mxu1 %v5420_v59  ;;  %v5096_v58 = vor.u32 %v6226_v49, %v5095_v48  ;;  %v5100_v59 = vor.u32 %v6218_v52, %v5097_v53  ;;  %v5032_v4 = vor.u32 %v6210_v13, %v5031_v60  ;;  %v5871_v52 = vld [vmem:[#allocation16 + $0x6b0] sm:$0xf] }
 0x3f9   :  { %3646 = vmatmul.bf16.vlgmr.msra.gmra.mxu0 %v7027_v24  ;;  %3674 = vmatmul.bf16.vlgmr.msra.gmra.mxu2 %v7027_v24  ;;  %v5936_v48 = vor.u32 %v6435_v39, %v5935_v38  ;;  %v5940_v49 = vor.u32 %v6427_v40, %v5937_v43  ;;  %v6419_v53 = vld [vmem:[#allocation16 + $0x6ec] sm:$0xf0]  ;;  %v5876_v13 = vor.u32 %v6411_v54, %v5873_v55  ;;  %v5041_v38 = vld [vmem:[#allocation16 + $0x70] sm:$0xf0]  ;;  %v5495_v40 = vld [vmem:[#allocation16 + $0x3b8] sm:$0xf] }
 0x3fa   :  { %3694 = vmatpush.bf16.msrb.mxu0 %v5992_v37  ;;  %3722 = vmatpush.bf16.msrb.mxu2 %v5996_v42  ;;  %v5676_v37 = vor.u32 %v6362_v56, %v5673_v57  ;;  %v5033_v42 = vld [vmem:[#allocation16 + $0x68] sm:$0xf0]  ;;  %v5872_v60 = vor.u32 %v6419_v53, %v5871_v52  ;;  %v6324_v43 = vld [vmem:[#allocation16 + $0x3f4] sm:$0xf0]  ;;  %v5617_v52 = vld [vmem:[#allocation16 + $0x4f0] sm:$0xf0] }
 0x3fb   :  { %v5036_v5 = vor.u32 %v6202_v41, %v5033_v42  ;;  %v6251_v41 = vld [vmem:[#allocation16 + $0x1b4] sm:$0xf]  ;;  %v6403_v42 = vld [vmem:[#allocation16 + $0x66c] sm:$0xf0]  ;;  %v5496_v55 = vor.u32 %v6324_v43, %v5495_v40  ;;  %v6412_v40 = vld [vmem:[#allocation16 + $0x6bc] sm:$0xf] }
 0x3fc   :  { %3682 = vmatpush.bf16.msra.mxu3 %v5352_v2  ;;  %3710 = vmatpush.bf16.msrb.mxu1 %v5356_v3  ;;  %v6346_v2 = vld [vmem:[#allocation16 + $0x4ac] sm:$0xf]  ;;  %v5881_v43 = vld [vmem:[#allocation16 + $0x6f8] sm:$0xf0] }
 0x3fd   :  { %v5609_v3 = vld [vmem:[#allocation16 + $0x4e8] sm:$0xf0] }
 0x3fe   :  { %3695 = vmatpush.bf16.msrb.mxu0 %v5928_v6  ;;  %3723 = vmatpush.bf16.msrb.mxu2 %v5932_v7  ;;  %v5488_v6 = vor.u32 %v6323_v62, %v5487_v61  ;;  %v5492_v7 = vor.u32 %v6315_v12, %v5489_v63  ;;  %v5612_v11 = vor.u32 %v6346_v2, %v5609_v3  ;;  %v6395_v61 = vld [vmem:[#allocation16 + $0x634] sm:$0xf] }
 0x3ff   :  { %v5809_v62 = vld [vmem:[#allocation16 + $0x670] sm:$0xf0] }
 0x400   :  { %3683 = vmatpush.bf16.msra.mxu3 %v5288_v15  ;;  %3711 = vmatpush.bf16.msrb.mxu1 %v5292_v16  ;;  %v5543_v15 = vld [vmem:[#allocation16 + $0x428] sm:$0xf] }
 0x401   :  { %v6338_v16 = vld [vmem:[#allocation16 + $0x464] sm:$0xf0] }
 0x402   :  { %3696 = vmatpush.bf16.msrb.mxu0 %v5864_v21  ;;  %3724 = vmatpush.bf16.msrb.mxu2 %v5868_v22  ;;  %v5999_v21 = vld [vmem:[#allocation16 + $0x7b0] sm:$0xf]  ;;  %v5544_v28 = vor.u32 %v6338_v16, %v5543_v15 }
 0x403   :  { %v6451_v22 = vld [vmem:[#allocation16 + $0x7ec] sm:$0xf0] }
 0x404   :  { %3684 = vmatpush.bf16.msra.mxu3 %v5224_v30  ;;  %3712 = vmatpush.bf16.msrb.mxu1 %v5228_v31  ;;  %v5359_v30 = vld [vmem:[#allocation16 + $0x2b0] sm:$0xf]  ;;  %v6000_v32 = vor.u32 %v6451_v22, %v5999_v21  ;;  %v6219_v22 = vld [vmem:[#allocation16 + $0xb4] sm:$0xf] }
 0x405   :  { %v6291_v31 = vld [vmem:[#allocation16 + $0x2ec] sm:$0xf0] }
 0x406   :  { %3697 = vmatpush.bf16.msrb.mxu0 %v5800_v34  ;;  %3725 = vmatpush.bf16.msrb.mxu2 %v5804_v35  ;;  %v6283_v34 = vld [vmem:[#allocation16 + $0x2b4] sm:$0xf]  ;;  %v5360_v44 = vor.u32 %v6291_v31, %v5359_v30  ;;  %v6227_v21 = vld [vmem:[#allocation16 + $0xec] sm:$0xf0] }
 0x407   :  { %v5361_v35 = vld [vmem:[#allocation16 + $0x2f0] sm:$0xf0]  ;;  %v5104_v30 = vor.u32 %v6227_v21, %v5103_v18  ;;  %v5039_v31 = vld [vmem:[#allocation16 + $0x30] sm:$0xf] }
 0x408   :  { %3685 = vmatpush.bf16.msra.mxu3 %v5160_v46  ;;  %3713 = vmatpush.bf16.msrb.mxu1 %v5164_v47  ;;  %v5364_v45 = vor.u32 %v6283_v34, %v5361_v35  ;;  %v5295_v46 = vld [vmem:[#allocation16 + $0x230] sm:$0xf]  ;;  %v6203_v35 = vld [vmem:[#allocation16 + $0x34] sm:$0xf] }
 0x409   :  { %v6275_v47 = vld [vmem:[#allocation16 + $0x26c] sm:$0xf0]  ;;  %v5044_v54 = vor.u32 %v6203_v35, %v5041_v38  ;;  %v5879_v35 = vld [vmem:[#allocation16 + $0x6b8] sm:$0xf] }
 0x40a   :  { %3698 = vmatpush.bf16.msrb.mxu0 %v5736_v50  ;;  %3726 = vmatpush.bf16.msrb.mxu2 %v5740_v51  ;;  %v6267_v50 = vld [vmem:[#allocation16 + $0x234] sm:$0xf]  ;;  %v5296_v56 = vor.u32 %v6275_v47, %v5295_v46  ;;  %v6211_v34 = vld [vmem:[#allocation16 + $0x6c] sm:$0xf0]  ;;  %v5497_v46 = vld [vmem:[#allocation16 + $0x3f8] sm:$0xf0] }
 0x40b   :  { %v5297_v51 = vld [vmem:[#allocation16 + $0x270] sm:$0xf0]  ;;  %v5615_v47 = vld [vmem:[#allocation16 + $0x4b0] sm:$0xf]  ;;  %v6420_v38 = vld [vmem:[#allocation16 + $0x6f4] sm:$0xf0] }
 0x40c   :  { %3686 = vmatpush.bf16.msra.mxu3 %v5096_v58  ;;  %3714 = vmatpush.bf16.msrb.mxu1 %v5100_v59  ;;  %v5300_v57 = vor.u32 %v6267_v50, %v5297_v51  ;;  %v5231_v58 = vld [vmem:[#allocation16 + $0x1b0] sm:$0xf]  ;;  %v5040_v50 = vor.u32 %v6211_v34, %v5039_v31  ;;  %v6347_v51 = vld [vmem:[#allocation16 + $0x4b4] sm:$0xf] }
 0x40d   :  { %v6259_v59 = vld [vmem:[#allocation16 + $0x1ec] sm:$0xf0] }
 0x40e   :  { %3699 = vmatpush.bf16.msrb.mxu0 %v5672_v36  ;;  %3727 = vmatpush.bf16.msrb.mxu2 %v5676_v37  ;;  %v5233_v36 = vld [vmem:[#allocation16 + $0x1f0] sm:$0xf0]  ;;  %v5807_v37 = vld [vmem:[#allocation16 + $0x630] sm:$0xf]  ;;  %v5232_v12 = vor.u32 %v6259_v59, %v5231_v58  ;;  %v6308_v59 = vld [vmem:[#allocation16 + $0x374] sm:$0xf0] }
 0x40f   :  { %v5236_v63 = vor.u32 %v6251_v41, %v5233_v36  ;;  %v5808_v3 = vor.u32 %v6403_v42, %v5807_v37  ;;  %v5620_v41 = vor.u32 %v6347_v51, %v5617_v52  ;;  %v5551_v36 = vld [vmem:[#allocation16 + $0x430] sm:$0xf]  ;;  %v6331_v42 = vld [vmem:[#allocation16 + $0x434] sm:$0xf]  ;;  %v5241_v51 = vld [vmem:[#allocation16 + $0x1f8] sm:$0xf0] }
 0x410   :  { %3687 = vmatpush.bf16.msra.mxu3 %v5032_v4  ;;  %3715 = vmatpush.bf16.msrb.mxu1 %v5036_v5  ;;  %v7051_v2 = vpop.f32.mrf.mxu1  ;;  %v5812_v4 = vor.u32 %v6395_v61, %v5809_v62  ;;  %v6235_v5 = vld [vmem:[#allocation16 + $0x134] sm:$0xf]  ;;  %v6339_v37 = vld [vmem:[#allocation16 + $0x46c] sm:$0xf0]  ;;  %v6007_v62 = vld [vmem:[#allocation16 + $0x7b8] sm:$0xf] }
 0x411   :  { %v5553_v61 = vld [vmem:[#allocation16 + $0x470] sm:$0xf0] }
 0x412   :  { %3700 = vmatpush.bf16.msrb.mxu0 %v5608_v10  ;;  %3728 = vmatpush.bf16.msrb.mxu2 %v5612_v11  ;;  %v5745_v10 = vld [vmem:[#allocation16 + $0x5f0] sm:$0xf0] }
 0x413   :  { %3688 = vmatmul.bf16.vlgmr.msra.gmra.mxu3 %v7023_v0  ;;  %3716 = vmatmul.bf16.vlgmr.msrb.gmra.mxu1 %v7023_v0  ;;  %v5748_v17 = vor.u32 %v6379_v9, %v5745_v10  ;;  %v6284_v10 = vld [vmem:[#allocation16 + $0x2bc] sm:$0xf] }
 0x414   :  { %3736 = vmatpush.bf16.msrb.mxu3 %v5488_v6  ;;  %3764 = vmatpush.bf16.msra.mxu1 %v5492_v7  ;;  %v5169_v6 = vld [vmem:[#allocation16 + $0x170] sm:$0xf0]  ;;  %v5743_v7 = vld [vmem:[#allocation16 + $0x5b0] sm:$0xf] }
 0x415   :  { %v5172_v15 = vor.u32 %v6235_v5, %v5169_v6  ;;  %v5744_v16 = vor.u32 %v6387_v19, %v5743_v7  ;;  %v5552_v5 = vor.u32 %v6339_v37, %v5551_v36  ;;  %v5367_v6 = vld [vmem:[#allocation16 + $0x2b8] sm:$0xf]  ;;  %v5556_v19 = vor.u32 %v6331_v42, %v5553_v61  ;;  %v6236_v42 = vld [vmem:[#allocation16 + $0x13c] sm:$0xf] }
 0x416   :  { %3701 = vmatpush.bf16.msrb.mxu0 %v5544_v28  ;;  %3729 = vmatpush.bf16.msrb.mxu2 %v5548_v29  ;;  %v7053_v8 = vpop.f32.mrf.mxu3  ;;  %v7055_v11 = vpop.f32.mrf.mxu0  ;;  %v5681_v28 = vld [vmem:[#allocation16 + $0x570] sm:$0xf0]  ;;  %v6292_v7 = vld [vmem:[#allocation16 + $0x2f4] sm:$0xf0]  ;;  %v5177_v61 = vld [vmem:[#allocation16 + $0x178] sm:$0xf0] }
 0x417   :  { %v5368_v21 = vor.u32 %v6292_v7, %v5367_v6  ;;  %v5753_v6 = vld [vmem:[#allocation16 + $0x5f8] sm:$0xf0]  ;;  %v5180_v7 = vor.u32 %v6236_v42, %v5177_v61 }
 0x418   :  { %3737 = vmatpush.bf16.msrb.mxu3 %v5424_v26  ;;  %3765 = vmatpush.bf16.msra.mxu1 %v5428_v27  ;;  %v6371_v26 = vld [vmem:[#allocation16 + $0x56c] sm:$0xf0]  ;;  %v6363_v27 = vld [vmem:[#allocation16 + $0x534] sm:$0xf]  ;;  %v6332_v61 = vld [vmem:[#allocation16 + $0x43c] sm:$0xf] }
 0x419   :  { %3702 = vmatmul.bf16.vlgmr.msrb.gmra.mxu0 %v7027_v24  ;;  %3730 = vmatmul.bf16.vlgmr.msrb.gmra.mxu2 %v7027_v24  ;;  %v5684_v39 = vor.u32 %v6363_v27, %v5681_v28  ;;  %v5303_v27 = vld [vmem:[#allocation16 + $0x238] sm:$0xf] }
 0x41a   :  { %3750 = vmatpush.bf16.msra.mxu0 %v6000_v32  ;;  %3778 = vmatpush.bf16.msra.mxu2 %v6004_v33  ;;  %v5108_v32 = vor.u32 %v6219_v22, %v5105_v23  ;;  %v5680_v33 = vor.u32 %v6371_v26, %v5679_v25  ;;  %v6428_v22 = vld [vmem:[#allocation16 + $0x73c] sm:$0xf]  ;;  %v6276_v28 = vld [vmem:[#allocation16 + $0x274] sm:$0xf0] }
 0x41b   :  { %v5945_v23 = vld [vmem:[#allocation16 + $0x778] sm:$0xf0] }
 0x41c   :  { %3738 = vmatpush.bf16.msrb.mxu3 %v5360_v44  ;;  %3766 = vmatpush.bf16.msra.mxu1 %v5364_v45  ;;  %v7057_v29 = vpop.f32.mrf.mxu2  ;;  %v6316_v44 = vld [vmem:[#allocation16 + $0x3bc] sm:$0xf]  ;;  %v7059_v45 = vpop.f32.mrf.mxu1  ;;  %v5948_v34 = vor.u32 %v6428_v22, %v5945_v23 }
 0x41d   :  { %v6364_v23 = vld [vmem:[#allocation16 + $0x53c] sm:$0xf] }
 0x41e   :  { %3751 = vmatpush.bf16.msra.mxu0 %v5936_v48  ;;  %3779 = vmatpush.bf16.msra.mxu2 %v5940_v49  ;;  %v6355_v48 = vld [vmem:[#allocation16 + $0x4ec] sm:$0xf0]  ;;  %v7061_v49 = vpop.f32.mrf.mxu3  ;;  %v7063_v53 = vpop.f32.mrf.mxu0 }
 0x41f   :  { %v5616_v58 = vor.u32 %v6355_v48, %v5615_v47  ;;  %v6260_v47 = vld [vmem:[#allocation16 + $0x1f4] sm:$0xf0]  ;;  %v5880_v48 = vor.u32 %v6420_v38, %v5879_v35  ;;  %v6204_v35 = vld [vmem:[#allocation16 + $0x3c] sm:$0xf] }
 0x420   :  { %3739 = vmatpush.bf16.msrb.mxu3 %v5296_v56  ;;  %3767 = vmatpush.bf16.msra.mxu1 %v5300_v57  ;;  %v5431_v56 = vld [vmem:[#allocation16 + $0x338] sm:$0xf]  ;;  %v5500_v57 = vor.u32 %v6316_v44, %v5497_v46  ;;  %v5049_v38 = vld [vmem:[#allocation16 + $0x78] sm:$0xf0] }
 0x421   :  { %v5239_v46 = vld [vmem:[#allocation16 + $0x1b8] sm:$0xf] }
 0x422   :  { %3752 = vmatpush.bf16.msra.mxu0 %v5872_v60  ;;  %3780 = vmatpush.bf16.msra.mxu2 %v5876_v13  ;;  %v6300_v60 = vld [vmem:[#allocation16 + $0x33c] sm:$0xf] }
 0x423   :  { %v5433_v13 = vld [vmem:[#allocation16 + $0x378] sm:$0xf0] }
 0x424   :  { %3740 = vmatpush.bf16.msrb.mxu3 %v5232_v12  ;;  %3768 = vmatpush.bf16.msra.mxu1 %v5236_v63  ;;  %v6452_v12 = vld [vmem:[#allocation16 + $0x7f4] sm:$0xf0]  ;;  %v5432_v63 = vor.u32 %v6308_v59, %v5431_v56  ;;  %v7069_v18 = vpop.f32.mrf.mxu1  ;;  %v5817_v59 = vld [vmem:[#allocation16 + $0x678] sm:$0xf0] }
 0x425   :  { %v6008_v9 = vor.u32 %v6452_v12, %v6007_v62  ;;  %v6404_v56 = vld [vmem:[#allocation16 + $0x674] sm:$0xf0] }
 0x426   :  { %3753 = vmatpush.bf16.msra.mxu0 %v5808_v3  ;;  %3781 = vmatpush.bf16.msra.mxu2 %v5812_v4  ;;  %v7065_v3 = vpop.f32.mrf.mxu2  ;;  %v5436_v4 = vor.u32 %v6300_v60, %v5433_v13  ;;  %v7071_v25 = vpop.f32.mrf.mxu3  ;;  %v5175_v13 = vld [vmem:[#allocation16 + $0x138] sm:$0xf] }
 0x428   :  { %3741 = vmatpush.bf16.msrb.mxu3 %v5168_v14  ;;  %3769 = vmatpush.bf16.msra.mxu1 %v5172_v15  ;;  %v5369_v14 = vld [vmem:[#allocation16 + $0x2f8] sm:$0xf0]  ;;  %v6012_v15 = vor.u32 %v6444_v20, %v6009_v1  ;;  %v6388_v20 = vld [vmem:[#allocation16 + $0x5f4] sm:$0xf0] }
 0x429   :  { %v5372_v26 = vor.u32 %v6284_v10, %v5369_v14  ;;  %v6220_v14 = vld [vmem:[#allocation16 + $0xbc] sm:$0xf] }
 0x42a   :  { %3754 = vmatpush.bf16.msra.mxu0 %v5744_v16  ;;  %3782 = vmatpush.bf16.msra.mxu2 %v5748_v17  ;;  %v5943_v16 = vld [vmem:[#allocation16 + $0x738] sm:$0xf] }
 0x42b   :  { %v6436_v17 = vld [vmem:[#allocation16 + $0x774] sm:$0xf0] }
 0x42c   :  { %3742 = vmatpush.bf16.msrb.mxu3 %v5104_v30  ;;  %3770 = vmatpush.bf16.msra.mxu1 %v5108_v32  ;;  %v7073_v30 = vpop.f32.mrf.mxu0  ;;  %v5944_v31 = vor.u32 %v6436_v17, %v5943_v16  ;;  %v6268_v32 = vld [vmem:[#allocation16 + $0x23c] sm:$0xf]  ;;  %v7079_v36 = vpop.f32.mrf.mxu1  ;;  %v5687_v17 = vld [vmem:[#allocation16 + $0x538] sm:$0xf] }
 0x42e   :  { %3755 = vmatpush.bf16.msra.mxu0 %v5680_v33  ;;  %3783 = vmatpush.bf16.msra.mxu2 %v5684_v39  ;;  %v5305_v33 = vld [vmem:[#allocation16 + $0x278] sm:$0xf0]  ;;  %v5304_v39 = vor.u32 %v6276_v28, %v5303_v27  ;;  %v7077_v52 = vpop.f32.mrf.mxu2  ;;  %v7081_v62 = vpop.f32.mrf.mxu3  ;;  %v7085_v27 = vld [vmem:[#allocation17] sm:$0xff] }
 0x42f   :  { %v5308_v44 = vor.u32 %v6268_v32, %v5305_v33  ;;  %v5047_v32 = vld [vmem:[#allocation16 + $0x38] sm:$0xf] }
 0x430   :  { %3743 = vmatpush.bf16.msrb.mxu3 %v5040_v50  ;;  %3771 = vmatpush.bf16.msra.mxu1 %v5044_v54  ;;  %v6252_v50 = vld [vmem:[#allocation16 + $0x1bc] sm:$0xf]  ;;  %v5884_v54 = vor.u32 %v6412_v40, %v5881_v43  ;;  %v6212_v33 = vld [vmem:[#allocation16 + $0x74] sm:$0xf0] }
 0x431   :  { %v5244_v60 = vor.u32 %v6252_v50, %v5241_v51  ;;  %v5623_v40 = vld [vmem:[#allocation16 + $0x4b8] sm:$0xf]  ;;  %v6348_v50 = vld [vmem:[#allocation16 + $0x4bc] sm:$0xf] }
 0x432   :  { %3756 = vmatpush.bf16.msra.mxu0 %v5616_v58  ;;  %3784 = vmatpush.bf16.msra.mxu2 %v5620_v41  ;;  %v6396_v58 = vld [vmem:[#allocation16 + $0x63c] sm:$0xf]  ;;  %v6244_v41 = vld [vmem:[#allocation16 + $0x174] sm:$0xf0] }
 0x433   :  { %3744 = vmatmul.bf16.vlgmr.msrb.gmra.mxu3 %v7023_v0  ;;  %3772 = vmatmul.bf16.vlgmr.msra.gmra.mxu1 %v7023_v0  ;;  %v5820_v12 = vor.u32 %v6396_v58, %v5817_v59  ;;  %v6356_v43 = vld [vmem:[#allocation16 + $0x4f4] sm:$0xf0]  ;;  %v5625_v51 = vld [vmem:[#allocation16 + $0x4f8] sm:$0xf0] }
 0x434   :  { %3792 = vmatpush.bf16.msra.mxu3 %v5496_v55  ;;  %3820 = vmatpush.bf16.msrb.mxu1 %v5500_v57  ;;  %v5815_v55 = vld [vmem:[#allocation16 + $0x638] sm:$0xf]  ;;  %v5240_v57 = vor.u32 %v6260_v47, %v5239_v46  ;;  %v7083_v1 = vpop.f32.mrf.mxu0  ;;  %v2088_v46 = vperm.slane %v7085_v27, 0  ;;  %v3549_v47 = vpop.f32.mrf.mxu1  ;;  %v5624_v59 = vor.u32 %v6356_v43, %v5623_v40  ;;  %v2095_v40 = vperm.slane %v7085_v27, 7 }
 0x435   :  { %v5816_v37 = vor.u32 %v6404_v56, %v5815_v55  ;;  %v5052_v55 = vor.u32 %v6204_v35, %v5049_v38  ;;  %v2091_v56 = vperm.slane %v7085_v27, 3 }
 0x436   :  { %3757 = vmatpush.bf16.msra.mxu0 %v5552_v5  ;;  %3785 = vmatpush.bf16.msra.mxu2 %v5556_v19  ;;  %v6380_v5 = vld [vmem:[#allocation16 + $0x5bc] sm:$0xf]  ;;  %v5111_v19 = vld [vmem:[#allocation16 + $0xb8] sm:$0xf]  ;;  %v7087_v28 = vpop.f32.mrf.mxu2  ;;  %v3410_v42 = vadd.f32 %v7053_v8, %v2088_v46 }
 0x437   :  { %v5756_v16 = vor.u32 %v6380_v5, %v5753_v6 }
 0x438   :  { %3793 = vmatpush.bf16.msra.mxu3 %v5432_v63  ;;  %3821 = vmatpush.bf16.msrb.mxu1 %v5436_v4  ;;  %v5751_v63 = vld [vmem:[#allocation16 + $0x5b8] sm:$0xf]  ;;  %v5176_v4 = vor.u32 %v6244_v41, %v5175_v13 }
 0x439   :  { %3758 = vmatmul.bf16.vlgmr.msra.gmra.mxu0 %v7027_v24  ;;  %3786 = vmatmul.bf16.vlgmr.msra.gmra.mxu2 %v7027_v24  ;;  %v5752_v10 = vor.u32 %v6388_v20, %v5751_v63  ;;  %v5559_v13 = vld [vmem:[#allocation16 + $0x438] sm:$0xf]  ;;  %v3494_v20 = vadd.f32 %v7069_v18, %v2091_v56  ;;  %v3496_v18 = vadd.f32 %v7079_v36, %v2091_v56 }
 0x43a   :  { %3806 = vmatpush.bf16.msrb.mxu0 %v6008_v9  ;;  %3834 = vmatpush.bf16.msrb.mxu2 %v6012_v15  ;;  %v6228_v9 = vld [vmem:[#allocation16 + $0xf4] sm:$0xf0]  ;;  %v5113_v15 = vld [vmem:[#allocation16 + $0xf8] sm:$0xf0] }
 0x43b   :  { %v5112_v22 = vor.u32 %v6228_v9, %v5111_v19  ;;  %v6340_v41 = vld [vmem:[#allocation16 + $0x474] sm:$0xf0]  ;;  %v3508_v8 = vadd.f32 %v7077_v52, %v3494_v20 }
 0x43c   :  { %3794 = vmatpush.bf16.msra.mxu3 %v5368_v21  ;;  %3822 = vmatpush.bf16.msrb.mxu1 %v5372_v26  ;;  %v6372_v21 = vld [vmem:[#allocation16 + $0x574] sm:$0xf0]  ;;  %v5689_v26 = vld [vmem:[#allocation16 + $0x578] sm:$0xf0]  ;;  %v7093_v58 = vpop.f32.mrf.mxu0  ;;  %v5560_v5 = vor.u32 %v6340_v41, %v5559_v13  ;;  %v7105_v9 = vpop.f32.mrf.mxu1 }
 0x43e   :  { %3807 = vmatpush.bf16.msrb.mxu0 %v5944_v31  ;;  %3835 = vmatpush.bf16.msrb.mxu2 %v5948_v34  ;;  %v5116_v31 = vor.u32 %v6220_v14, %v5113_v15  ;;  %v5688_v34 = vor.u32 %v6372_v21, %v5687_v17  ;;  %v3563_v6 = vpop.f32.mrf.mxu2  ;;  %v2092_v14 = vperm.slane %v7085_v27, 4 }
 0x440   :  { %3795 = vmatpush.bf16.msra.mxu3 %v5304_v39  ;;  %3823 = vmatpush.bf16.msrb.mxu1 %v5308_v44  ;;  %v5692_v39 = vor.u32 %v6364_v23, %v5689_v26  ;;  %v2089_v44 = vperm.slane %v7085_v27, 1 }
 0x442   :  { %3808 = vmatpush.bf16.msrb.mxu0 %v5880_v48  ;;  %3836 = vmatpush.bf16.msrb.mxu2 %v5884_v54  ;;  %v5048_v48 = vor.u32 %v6212_v33, %v5047_v32  ;;  %v3521_v54 = vpop.f32.mrf.mxu3 }
 0x444   :  { %3796 = vmatpush.bf16.msra.mxu3 %v5240_v57  ;;  %3824 = vmatpush.bf16.msrb.mxu1 %v5244_v60  ;;  %v2090_v57 = vperm.slane %v7085_v27, 2  ;;  %v5628_v60 = vor.u32 %v6348_v50, %v5625_v51  ;;  %v7111_v52 = vpop.f32.mrf.mxu0 }
 0x446   :  { %3809 = vmatpush.bf16.msrb.mxu0 %v5816_v37  ;;  %3837 = vmatpush.bf16.msrb.mxu2 %v5820_v12  ;;  %v3438_v37 = vadd.f32 %v7051_v2, %v2089_v44  ;;  %v5561_v12 = vld [vmem:[#allocation16 + $0x478] sm:$0xf0]  ;;  %v3424_v2 = vadd.f32 %v7055_v11, %v3410_v42 }
 0x448   :  { %3797 = vmatpush.bf16.msra.mxu3 %v5176_v4  ;;  %3825 = vmatpush.bf16.msrb.mxu1 %v5180_v7  ;;  %v3452_v63 = vadd.f32 %v7057_v29, %v3438_v37  ;;  %v3466_v4 = vadd.f32 %v7071_v25, %v2090_v57  ;;  %v5564_v7 = vor.u32 %v6332_v61, %v5561_v12 }
 0x449   :  { %v3468_v25 = vadd.f32 %v7081_v62, %v2090_v57 }
 0x44a   :  { %3810 = vmatpush.bf16.msrb.mxu0 %v5752_v10  ;;  %3838 = vmatpush.bf16.msrb.mxu2 %v5756_v16  ;;  %v3914_v19 = vpack.c.bf16 %v3452_v63, %v3424_v2  ;;  %v3480_v29 = vadd.f32 %v7073_v30, %v3466_v4  ;;  %v2093_v10 = vperm.slane %v7085_v27, 5  ;;  %v3523_v15 = vpop.f32.mrf.mxu3  ;;  %v3412_v30 = vadd.f32 %v7061_v49, %v2088_v46 }
 0x44b   :  { %v3510_v16 = vadd.f32 %v7087_v28, %v3496_v18  ;;  %v3482_v17 = vadd.f32 %v7083_v1, %v3468_v25 }
 0x44c   :  { %3798 = vmatpush.bf16.msra.mxu3 %v5112_v22  ;;  %3826 = vmatpush.bf16.msrb.mxu1 %v5116_v31  ;;  %v3915_v11 = vpack.c.bf16 %v3508_v8, %v3480_v29  ;;  %v3930_v36 = vrot.slane %v3914_v19, 3  ;;  %v3550_v21 = vadd.f32 %v3549_v47, %v2093_v10  ;;  %v3522_v22 = vadd.f32 %v3521_v54, %v2092_v14  ;;  %v3565_v31 = vpop.f32.mrf.mxu2 }
 0x44d   :  { %v3426_v49 = vadd.f32 %v7063_v53, %v3412_v30  ;;  %v3919_v26 = vpack.c.bf16 %v3510_v16, %v3482_v17  ;;  %v3552_v41 = vadd.f32 %v7105_v9, %v2093_v10 }
 0x44e   :  { %3811 = vmatpush.bf16.msrb.mxu0 %v5688_v34  ;;  %3839 = vmatpush.bf16.msrb.mxu2 %v5692_v39  ;;  %v3932_v23 = vrot.slane %v3915_v11, 1  ;;  %v3564_v28 = vadd.f32 %v3563_v6, %v3550_v21  ;;  %v3947_v1 = vsel %vm3944_vm0, %v3914_v19, %v3930_v36  ;;  %v3967_v32 = vsel %vm3966_vm2, %v3914_v19, %v3930_v36 }
 0x44f   :  { %v3536_v34 = vadd.f32 %v7093_v58, %v3522_v22  ;;  %v7132_v46 = vrot.slane %v3919_v26, 6  ;;  %v7134_v47 = vrot.slane %v3919_v26, 1  ;;  %v3982_v50 = vsel %vm3948_vm1, %v3914_v19, %v3930_v36 }
 0x450   :  { %3799 = vmatpush.bf16.msra.mxu3 %v5048_v48  ;;  %3827 = vmatpush.bf16.msrb.mxu1 %v5052_v55  ;;  %v3994_v51 = vsel %vm3968_vm3, %v3914_v19, %v3930_v36 }
 0x451   :  { %v3916_v48 = vpack.c.bf16 %v3564_v28, %v3536_v34  ;;  %v4011_v13 = vsel %vm3948_vm1, %v7132_v46, %v7134_v47  ;;  %v4022_v12 = vsel %vm3968_vm3, %v7132_v46, %v7134_v47  ;;  %v4040_v34 = vsel %vm3972_vm7, %v7132_v46, %v7134_v47 }
 0x452   :  { %3812 = vmatpush.bf16.msrb.mxu0 %v5624_v59  ;;  %3840 = vmatpush.bf16.msrb.mxu2 %v5628_v60 }
 0x453   :  { %3800 = vmatmul.bf16.vlgmr.msra.gmra.mxu3 %v7023_v0  ;;  %3828 = vmatmul.bf16.vlgmr.msrb.gmra.mxu1 %v7023_v0  ;;  %v3440_v0 = vadd.f32 %v7059_v45, %v2089_v44  ;;  %v3931_v45 = vrot.slane %v3915_v11, 6  ;;  %v3933_v37 = vrot.slane %v3916_v48, 4  ;;  %v3934_v42 = vrot.slane %v3916_v48, 7 }
 0x455   :  { %v3454_v62 = vadd.f32 %v7065_v3, %v3440_v0  ;;  %v2094_v3 = vperm.slane %v7085_v27, 6  ;;  %v3951_v53 = vsel %vm3948_vm1, %v3931_v45, %v3932_v23  ;;  %v3969_v38 = vsel %vm3968_vm3, %v3931_v45, %v3932_v23 }
 0x456   :  { %3813 = vmatpush.bf16.msrb.mxu0 %v5560_v5  ;;  %3841 = vmatpush.bf16.msrb.mxu2 %v5564_v7  ;;  %v3577_v35 = vpop.f32.mrf.mxu3  ;;  %v3983_v39 = vsel %vm3954_vm5, %v3931_v45, %v3932_v23  ;;  %v3591_v43 = vpop.f32.mrf.mxu0  ;;  %v3995_v44 = vsel %vm3972_vm7, %v3931_v45, %v3932_v23  ;;  %v3953_v56 = vsel %vm7315_vm4, %v3947_v1, %v3951_v53  ;;  %vm7316_vm4 = vcmask 1046531  }
 0x457   :  { %v7124_v33 = vpack.c.bf16 %v3454_v62, %v3426_v49  ;;  %v3578_v54 = vadd.f32 %v3577_v35, %v2094_v3  ;;  %v3524_v27 = vadd.f32 %v3523_v15, %v2092_v14  ;;  %v3971_v57 = vsel %vm7314_vm6, %v3967_v32, %v3969_v38 }
 0x458   :  { %v3985_v58 = vsel %vm7313_vm8, %v3982_v50, %v3983_v39  ;;  %v3997_v59 = vsel %vm7312_vm9, %v3994_v51, %v3995_v44  ;;  %v3566_v5 = vadd.f32 %v3565_v31, %v3552_v41  ;;  %vm3988_vm9 = vcmask 1045504  }
 0x459   :  { %3814 = vmatmul.bf16.vlgmr.msrb.gmra.mxu0 %v7027_v24  ;;  %3842 = vmatmul.bf16.vlgmr.msrb.gmra.mxu2 %v7027_v24  ;;  %v3605_v24 = vpop.f32.mrf.mxu1  ;;  %v7139_v55 = vrot.slane %v7124_v33, 3  ;;  %v3592_v63 = vadd.f32 %v3591_v43, %v3578_v54  ;;  %v3538_v4 = vadd.f32 %v7111_v52, %v3524_v27  ;;  %v3957_v19 = vsel %vm3954_vm5, %v3933_v37, %v3934_v42 }
 0x45a   :  { %v3606_v60 = vadd.f32 %v3605_v24, %v2095_v40  ;;  %vm7317_vm8 = vcmask 1045506   ;;  %vm4000_vm6 = vcmask 1046529   ;;  %v3973_v29 = vsel %vm3972_vm7, %v3933_v37, %v3934_v42 }
 0x45b   :  { %v3986_v9 = vsel %vm3958_vm10, %v3933_v37, %v3934_v42  ;;  %v3998_v14 = vsel %vm3974_vm11, %v3934_v42, %v3933_v37  ;;  %v3920_v15 = vpack.c.bf16 %v3566_v5, %v3538_v4  ;;  %v4031_v32 = vsel %vm3954_vm5, %v7132_v46, %v7134_v47 }
 0x45c   :  { %v3619_v61 = vpop.f32.mrf.mxu2  ;;  %v4008_v38 = vsel %vm3944_vm0, %v7124_v33, %v7139_v55  ;;  %v4021_v39 = vsel %vm3966_vm2, %v7124_v33, %v7139_v55  ;;  %v4030_v43 = vsel %vm3948_vm1, %v7124_v33, %v7139_v55  ;;  %v4039_v44 = vsel %vm3968_vm3, %v7124_v33, %v7139_v55 }
 0x45d   :  { %v3620_v20 = vadd.f32 %v3619_v61, %v3606_v60  ;;  %v3940_v35 = vrot.slane %v3920_v15, 4  ;;  %v3941_v53 = vrot.slane %v3920_v15, 7 }
 0x45e   :  { %v3579_v6 = vpop.f32.mrf.mxu3  ;;  %v3593_v10 = vpop.f32.mrf.mxu0 }
 0x45f   :  { %v3917_v2 = vpack.c.bf16 %v3620_v20, %v3592_v63  ;;  %v3580_v8 = vadd.f32 %v3579_v6, %v2094_v3  ;;  %v4024_v27 = vsel %vm3972_vm7, %v3940_v35, %v3941_v53  ;;  %v4042_v33 = vsel %vm3974_vm11, %v3941_v53, %v3940_v35 }
 0x461   :  { %v3607_v7 = vpop.f32.mrf.mxu1  ;;  %v3935_v18 = vrot.slane %v3917_v2, 2  ;;  %v3936_v25 = vrot.slane %v3917_v2, 5  ;;  %v3594_v52 = vadd.f32 %v3593_v10, %v3580_v8 }
 0x462   :  { %v3608_v11 = vadd.f32 %v3607_v7, %v2095_v40 }
 0x463   :  { %v3961_v0 = vsel %vm3958_vm10, %v3935_v18, %v3936_v25  ;;  %v3975_v30 = vsel %vm3974_vm11, %v3936_v25, %v3935_v18  ;;  %v3987_v16 = vsel %vm3944_vm0, %v3935_v18, %v3936_v25  ;;  %v3999_v36 = vsel %vm3966_vm2, %v3935_v18, %v3936_v25 }
 0x464   :  { %v3963_v62 = vsel %vm3962_vm12, %v3957_v19, %v3961_v0  ;;  %v3977_v17 = vsel %vm3976_vm14, %v3973_v29, %v3975_v30  ;;  %v3989_v21 = vsel %vm3988_vm9, %v3987_v16, %v3986_v9  ;;  %v4001_v22 = vsel %vm4000_vm6, %v3999_v36, %v3998_v14  ;;  %v3621_v45 = vpop.f32.mrf.mxu2 }
 0x465   :  { %v3965_v23 = vsel %vm7319_vm13, %v3953_v56, %v3963_v62  ;;  %v3979_v49 = vsel %vm7318_vm15, %v3971_v57, %v3977_v17  ;;  %v3991_v26 = vsel %vm7317_vm8, %v3985_v58, %v3989_v21  ;;  %v4003_v28 = vsel %vm7316_vm4, %v3997_v59, %v4001_v22  ;;  %v7207_v17 = vld [vmem:[#allocation17 + $0x8] sm:$0xff] }
 0x466   :  { %v3981_v31 = vrot.slane %v3979_v49, 1  ;;  %v3993_v24 = vrot.slane %v3991_v26, 2  ;;  %v4005_v3 = vrot.slane %v4003_v28, 3  ;;  %4056 = vst [vmem:[#allocation20] sm:$0xff] %v3965_v23  ;;  %v3622_v1 = vadd.f32 %v3621_v45, %v3608_v11 }
 0x467   :  { %vm7323_vm4 = vcmask 1041408   ;;  %vm7324_vm8 = vcmask 1042433   ;;  %vm7325_vm15 = vcmask 1043458   ;;  %vm7326_vm13 = vcmask 1044483  }
 0x468   :  { %4057 = vst [vmem:[#allocation20 + $0x8] sm:$0xff] %v3981_v31  ;;  %v3921_v40 = vpack.c.bf16 %v3622_v1, %v3594_v52  ;;  %v4012_v46 = vsel %vm7323_vm4, %v4008_v38, %v4011_v13  ;;  %v4023_v47 = vsel %vm7324_vm8, %v4021_v39, %v4022_v12  ;;  %v4032_v48 = vsel %vm7325_vm15, %v4030_v43, %v4031_v32 }
 0x469   :  { %4058 = vst [vmem:[#allocation20 + $0x10] sm:$0xff] %v3993_v24  ;;  %v4041_v50 = vsel %vm7326_vm13, %v4039_v44, %v4040_v34  ;;  %v4015_v56 = vsel %vm3954_vm5, %v3940_v35, %v3941_v53  ;;  %v4033_v57 = vsel %vm3958_vm10, %v3940_v35, %v3941_v53  ;;  %vm7327_vm4 = vcmask 1043456  }
 0x46a   :  { %4059 = vst [vmem:[#allocation20 + $0x18] sm:$0xff] %v4005_v3  ;;  %v3942_v51 = vrot.slane %v3921_v40, 2  ;;  %v3943_v54 = vrot.slane %v3921_v40, 5  ;;  %vm7328_vm8 = vcmask 1044481   ;;  %vm7329_vm13 = vcmask 1045506  }
 0x46b   :  { %vm7330_vm15 = vcmask 1046531   ;;  %v2097_v22 = vperm.slane %v7207_v17, 1  ;;  %v2096_v45 = vperm.slane %v7207_v17, 0  ;;  %v2099_v23 = vperm.slane %v7207_v17, 3 }
 0x46c   :  { %v4018_v55 = vsel %vm3958_vm10, %v3942_v51, %v3943_v54  ;;  %v4025_v58 = vsel %vm3974_vm11, %v3943_v54, %v3942_v51  ;;  %v4034_v59 = vsel %vm3944_vm0, %v3942_v51, %v3943_v54  ;;  %v4043_v60 = vsel %vm3966_vm2, %v3942_v51, %v3943_v54 }
 0x46d   :  { %v4019_v13 = vsel %vm3962_vm12, %v4015_v56, %v4018_v55  ;;  %v4026_v41 = vsel %vm3976_vm14, %v4024_v27, %v4025_v58  ;;  %v4035_v37 = vsel %vm3988_vm9, %v4034_v59, %v4033_v57  ;;  %v4044_v42 = vsel %vm4000_vm6, %v4043_v60, %v4042_v33 }
 0x46e   :  { %v4020_v61 = vsel %vm7327_vm4, %v4012_v46, %v4019_v13  ;;  %v4027_v12 = vsel %vm7328_vm8, %v4023_v47, %v4026_v41  ;;  %v4036_v63 = vsel %vm7329_vm13, %v4032_v48, %v4035_v37  ;;  %v4045_v20 = vsel %vm7330_vm15, %v4041_v50, %v4044_v42 }
 0x46f   :  { %v4029_v4 = vrot.slane %v4027_v12, 1  ;;  %v4038_v5 = vrot.slane %v4036_v63, 2  ;;  %v4047_v6 = vrot.slane %v4045_v20, 3  ;;  %4060 = vst [vmem:[#allocation20 + $0x20] sm:$0xff] %v4020_v61  ;;  %v2098_v49 = vperm.slane %v7207_v17, 2 }
 0x470   :  { %v3661_v7 = vpop.f32.mrf.mxu1  ;;  %v2101_v53 = vperm.slane %v7207_v17, 5  ;;  %v2100_v38 = vperm.slane %v7207_v17, 4  ;;  %v2102_v60 = vperm.slane %v7207_v17, 6  ;;  %v2103_v63 = vperm.slane %v7207_v17, 7 }
 0x471   :  { %4061 = vst [vmem:[#allocation20 + $0x28] sm:$0xff] %v4029_v4  ;;  %v3662_v28 = vadd.f32 %v3661_v7, %v2097_v22  ;;  %vm7331_vm4 = vcmask 1041408   ;;  %vm7332_vm8 = vcmask 1042433   ;;  %vm7333_vm13 = vcmask 1043458  }
 0x472   :  { %4062 = vst [vmem:[#allocation20 + $0x30] sm:$0xff] %v4038_v5  ;;  %vm7334_vm15 = vcmask 1044483  }
 0x473   :  { %4063 = vst [vmem:[#allocation20 + $0x38] sm:$0xff] %v4047_v6 }
 0x476   :  { %v3633_v2 = vpop.f32.mrf.mxu3  ;;  %v3647_v8 = vpop.f32.mrf.mxu0 }
 0x477   :  { %v3634_v31 = vadd.f32 %v3633_v2, %v2096_v45 }
 0x478   :  { %v3663_v29 = vpop.f32.mrf.mxu1 }
 0x479   :  { %v3648_v39 = vadd.f32 %v3647_v8, %v3634_v31  ;;  %v3664_v56 = vadd.f32 %v3663_v29, %v2097_v22 }
 0x47c   :  { %v3675_v19 = vpop.f32.mrf.mxu2 }
 0x47d   :  { %v3676_v1 = vadd.f32 %v3675_v19, %v3662_v28 }
 0x47e   :  { %v3635_v9 = vpop.f32.mrf.mxu3  ;;  %v3649_v18 = vpop.f32.mrf.mxu0 }
 0x47f   :  { %v4064_v44 = vpack.c.bf16 %v3676_v1, %v3648_v39  ;;  %v3636_v27 = vadd.f32 %v3635_v9, %v2096_v45 }
 0x481   :  { %v4080_v55 = vrot.slane %v4064_v44, 3  ;;  %v3650_v4 = vadd.f32 %v3649_v18, %v3636_v27 }
 0x483   :  { %v4096_v6 = vsel %vm3944_vm0, %v4064_v44, %v4080_v55  ;;  %v4109_v7 = vsel %vm3966_vm2, %v4064_v44, %v4080_v55 }
 0x484   :  { %v3677_v25 = vpop.f32.mrf.mxu2 }
 0x485   :  { %v3678_v41 = vadd.f32 %v3677_v25, %v3664_v56 }
 0x487   :  { %v7219_v8 = vpack.c.bf16 %v3678_v41, %v3650_v4 }
 0x489   :  { %v4087_v22 = vrot.slane %v7219_v8, 3 }
 0x490   :  { %v3717_v10 = vpop.f32.mrf.mxu1 }
 0x491   :  { %v3718_v24 = vadd.f32 %v3717_v10, %v2099_v23 }
 0x496   :  { %v3689_v14 = vpop.f32.mrf.mxu3  ;;  %v3703_v15 = vpop.f32.mrf.mxu0 }
 0x497   :  { %v3690_v3 = vadd.f32 %v3689_v14, %v2098_v49 }
 0x498   :  { %v3719_v52 = vpop.f32.mrf.mxu1 }
 0x499   :  { %v3704_v43 = vadd.f32 %v3703_v15, %v3690_v3  ;;  %v3720_v46 = vadd.f32 %v3719_v52, %v2099_v23 }
 0x49c   :  { %v3731_v11 = vpop.f32.mrf.mxu2 }
 0x49d   :  { %v3732_v35 = vadd.f32 %v3731_v11, %v3718_v24 }
 0x49e   :  { %v3691_v0 = vpop.f32.mrf.mxu3  ;;  %v3705_v30 = vpop.f32.mrf.mxu0 }
 0x49f   :  { %v3692_v47 = vadd.f32 %v3691_v0, %v2098_v49  ;;  %v4065_v48 = vpack.c.bf16 %v3732_v35, %v3704_v43 }
 0x4a1   :  { %v3706_v58 = vadd.f32 %v3705_v30, %v3692_v47  ;;  %v4081_v37 = vrot.slane %v4065_v48, 6  ;;  %v4082_v42 = vrot.slane %v4065_v48, 1 }
 0x4a3   :  { %v4099_v19 = vsel %vm3948_vm1, %v4081_v37, %v4082_v42  ;;  %v4110_v29 = vsel %vm3968_vm3, %v4081_v37, %v4082_v42  ;;  %v4119_v9 = vsel %vm3954_vm5, %v4081_v37, %v4082_v42  ;;  %v4128_v25 = vsel %vm3972_vm7, %v4081_v37, %v4082_v42 }
 0x4a4   :  { %v3733_v16 = vpop.f32.mrf.mxu2  ;;  %v4100_v45 = vsel %vm7331_vm4, %v4096_v6, %v4099_v19  ;;  %vm7335_vm4 = vcmask 1043456   ;;  %v4138_v6 = vsel %vm3944_vm0, %v7219_v8, %v4087_v22  ;;  %v4160_v19 = vsel %vm3948_vm1, %v7219_v8, %v4087_v22 }
 0x4a5   :  { %v3734_v54 = vadd.f32 %v3733_v16, %v3720_v46  ;;  %v4118_v16 = vsel %vm3948_vm1, %v4064_v44, %v4080_v55 }
 0x4a6   :  { %v4120_v28 = vsel %vm7333_vm13, %v4118_v16, %v4119_v9  ;;  %vm7337_vm13 = vcmask 1045506  }
 0x4a7   :  { %v4069_v12 = vpack.c.bf16 %v3734_v54, %v3706_v58 }
 0x4a9   :  { %v4088_v10 = vrot.slane %v4069_v12, 6  ;;  %v4089_v14 = vrot.slane %v4069_v12, 1 }
 0x4ab   :  { %v4141_v1 = vsel %vm3948_vm1, %v4088_v10, %v4089_v14  ;;  %vm7343_vm1 = vcmask 1043456  }
 0x4b0   :  { %v3773_v36 = vpop.f32.mrf.mxu1 }
 0x4b1   :  { %v3774_v50 = vadd.f32 %v3773_v36, %v2101_v53  ;;  %v4127_v36 = vsel %vm3968_vm3, %v4064_v44, %v4080_v55 }
 0x4b2   :  { %v4129_v31 = vsel %vm7334_vm15, %v4127_v36, %v4128_v25  ;;  %vm7338_vm15 = vcmask 1046531  }
 0x4b6   :  { %v3745_v62 = vpop.f32.mrf.mxu3  ;;  %v3759_v21 = vpop.f32.mrf.mxu0 }
 0x4b7   :  { %v3746_v51 = vadd.f32 %v3745_v62, %v2100_v38 }
 0x4b8   :  { %v3775_v32 = vpop.f32.mrf.mxu1 }
 0x4b9   :  { %v3760_v61 = vadd.f32 %v3759_v21, %v3746_v51  ;;  %v3776_v18 = vadd.f32 %v3775_v32, %v2101_v53  ;;  %v4152_v32 = vsel %vm3968_vm3, %v4088_v10, %v4089_v14 }
 0x4bc   :  { %v3787_v26 = vpop.f32.mrf.mxu2 }
 0x4bd   :  { %v3788_v57 = vadd.f32 %v3787_v26, %v3774_v50  ;;  %v4111_v26 = vsel %vm7332_vm8, %v4109_v7, %v4110_v29  ;;  %vm7336_vm8 = vcmask 1044481   ;;  %v4151_v7 = vsel %vm3966_vm2, %v7219_v8, %v4087_v22 }
 0x4be   :  { %v3747_v34 = vpop.f32.mrf.mxu3  ;;  %v3761_v40 = vpop.f32.mrf.mxu0  ;;  %v4169_v29 = vsel %vm3968_vm3, %v7219_v8, %v4087_v22  ;;  %vm7344_vm3 = vcmask 1044481  }
 0x4bf   :  { %v4066_v5 = vpack.c.bf16 %v3788_v57, %v3760_v61  ;;  %v3748_v0 = vadd.f32 %v3747_v34, %v2100_v38 }
 0x4c1   :  { %v4083_v11 = vrot.slane %v4066_v5, 4  ;;  %v4084_v52 = vrot.slane %v4066_v5, 7  ;;  %v3762_v35 = vadd.f32 %v3761_v40, %v3748_v0 }
 0x4c3   :  { %v4103_v34 = vsel %vm3954_vm5, %v4083_v11, %v4084_v52  ;;  %v4112_v53 = vsel %vm3972_vm7, %v4083_v11, %v4084_v52  ;;  %v4121_v38 = vsel %vm3958_vm10, %v4083_v11, %v4084_v52  ;;  %v4130_v46 = vsel %vm3974_vm11, %v4084_v52, %v4083_v11 }
 0x4c4   :  { %v3789_v33 = vpop.f32.mrf.mxu2 }
 0x4c5   :  { %v3790_v23 = vadd.f32 %v3789_v33, %v3776_v18 }
 0x4c7   :  { %v4070_v47 = vpack.c.bf16 %v3790_v23, %v3762_v35 }
 0x4c9   :  { %v4090_v4 = vrot.slane %v4070_v47, 4  ;;  %v4091_v5 = vrot.slane %v4070_v47, 7 }
 0x4cb   :  { %v4145_v11 = vsel %vm3954_vm5, %v4090_v4, %v4091_v5  ;;  %v4154_v52 = vsel %vm3972_vm7, %v4090_v4, %v4091_v5  ;;  %v4163_v0 = vsel %vm3958_vm10, %v4090_v4, %v4091_v5  ;;  %v4172_v8 = vsel %vm3974_vm11, %v4091_v5, %v4090_v4 }
 0x4d0   :  { %v3829_v59 = vpop.f32.mrf.mxu1 }
 0x4d1   :  { %v3830_v15 = vadd.f32 %v3829_v59, %v2103_v63 }
 0x4d6   :  { %v3801_v13 = vpop.f32.mrf.mxu3  ;;  %v3815_v20 = vpop.f32.mrf.mxu0 }
 0x4d7   :  { %v3802_v2 = vadd.f32 %v3801_v13, %v2102_v60 }
 0x4d8   :  { %v3831_v24 = vpop.f32.mrf.mxu1 }
 0x4d9   :  { %v3816_v62 = vadd.f32 %v3815_v20, %v3802_v2  ;;  %v3832_v48 = vadd.f32 %v3831_v24, %v2103_v63  ;;  %v4161_v63 = vsel %vm3954_vm5, %v4088_v10, %v4089_v14  ;;  %v4170_v20 = vsel %vm3972_vm7, %v4088_v10, %v4089_v14 }
 0x4da   :  { %vm7345_vm5 = vcmask 1045506   ;;  %vm7346_vm7 = vcmask 1046531  }
 0x4dc   :  { %v3843_v30 = vpop.f32.mrf.mxu2 }
 0x4dd   :  { %v3844_v17 = vadd.f32 %v3843_v30, %v3830_v15 }
 0x4de   :  { %v3803_v21 = vpop.f32.mrf.mxu3  ;;  %v3817_v44 = vpop.f32.mrf.mxu0 }
 0x4df   :  { %v3804_v49 = vadd.f32 %v3803_v21, %v2102_v60  ;;  %v4067_v3 = vpack.c.bf16 %v3844_v17, %v3816_v62 }
 0x4e1   :  { %v4085_v39 = vrot.slane %v4067_v3, 2  ;;  %v4086_v43 = vrot.slane %v4067_v3, 5  ;;  %v3818_v50 = vadd.f32 %v3817_v44, %v3804_v49 }
 0x4e3   :  { %v4106_v51 = vsel %vm3958_vm10, %v4085_v39, %v4086_v43  ;;  %v4113_v54 = vsel %vm3974_vm11, %v4086_v43, %v4085_v39  ;;  %v4122_v56 = vsel %vm3944_vm0, %v4085_v39, %v4086_v43  ;;  %v4131_v40 = vsel %vm3966_vm2, %v4085_v39, %v4086_v43 }
 0x4e4   :  { %v4107_v27 = vsel %vm3962_vm12, %v4103_v34, %v4106_v51  ;;  %v4114_v57 = vsel %vm3976_vm14, %v4112_v53, %v4113_v54  ;;  %v4123_v33 = vsel %vm3988_vm9, %v4122_v56, %v4121_v38  ;;  %v4132_v55 = vsel %vm4000_vm6, %v4131_v40, %v4130_v46  ;;  %v3845_v58 = vpop.f32.mrf.mxu2 }
 0x4e5   :  { %v4108_v59 = vsel %vm7335_vm4, %v4100_v45, %v4107_v27  ;;  %v4115_v60 = vsel %vm7336_vm8, %v4111_v26, %v4114_v57  ;;  %v4124_v13 = vsel %vm7337_vm13, %v4120_v28, %v4123_v33  ;;  %v4133_v41 = vsel %vm7338_vm15, %v4129_v31, %v4132_v55 }
 0x4e6   :  { %v4117_v37 = vrot.slane %v4115_v60, 1  ;;  %v4126_v42 = vrot.slane %v4124_v13, 2  ;;  %v4135_v61 = vrot.slane %v4133_v41, 3  ;;  %4186 = vst [vmem:[#allocation22] sm:$0xff] %v4108_v59  ;;  %v3846_v12 = vadd.f32 %v3845_v58, %v3832_v48 }
 0x4e7   :  { %vm7339_vm4 = vcmask 1041408   ;;  %vm7340_vm8 = vcmask 1042433   ;;  %vm7341_vm13 = vcmask 1043458   ;;  %vm7342_vm15 = vcmask 1044483  }
 0x4e8   :  { %4187 = vst [vmem:[#allocation22 + $0x8] sm:$0xff] %v4117_v37  ;;  %v4071_v2 = vpack.c.bf16 %v3846_v12, %v3818_v50  ;;  %v4142_v9 = vsel %vm7339_vm4, %v4138_v6, %v4141_v1  ;;  %v4153_v25 = vsel %vm7340_vm8, %v4151_v7, %v4152_v32  ;;  %v4162_v10 = vsel %vm7341_vm13, %v4160_v19, %v4161_v63 }
 0x4e9   :  { %4188 = vst [vmem:[#allocation22 + $0x10] sm:$0xff] %v4126_v42  ;;  %v4171_v14 = vsel %vm7342_vm15, %v4169_v29, %v4170_v20 }
 0x4ea   :  { %4189 = vst [vmem:[#allocation22 + $0x18] sm:$0xff] %v4135_v61  ;;  %v4092_v15 = vrot.slane %v4071_v2, 2  ;;  %v4093_v18 = vrot.slane %v4071_v2, 5 }
 0x4ec   :  { %v4148_v30 = vsel %vm3958_vm10, %v4092_v15, %v4093_v18  ;;  %v4155_v16 = vsel %vm3974_vm11, %v4093_v18, %v4092_v15  ;;  %v4164_v36 = vsel %vm3944_vm0, %v4092_v15, %v4093_v18  ;;  %v4173_v62 = vsel %vm3966_vm2, %v4092_v15, %v4093_v18 }
 0x4ed   :  { %v4149_v17 = vsel %vm3962_vm12, %v4145_v11, %v4148_v30  ;;  %v4156_v21 = vsel %vm3976_vm14, %v4154_v52, %v4155_v16  ;;  %v4165_v22 = vsel %vm3988_vm9, %v4164_v36, %v4163_v0  ;;  %v4174_v45 = vsel %vm4000_vm6, %v4173_v62, %v4172_v8 }
 0x4ee   :  { %v4150_v23 = vsel %vm7343_vm1, %v4142_v9, %v4149_v17  ;;  %v4157_v49 = vsel %vm7344_vm3, %v4153_v25, %v4156_v21  ;;  %v4166_v26 = vsel %vm7345_vm5, %v4162_v10, %v4165_v22  ;;  %v4175_v28 = vsel %vm7346_vm7, %v4171_v14, %v4174_v45 }
 0x4ef   :  { %v4159_v31 = vrot.slane %v4157_v49, 1  ;;  %v4168_v24 = vrot.slane %v4166_v26, 2  ;;  %v4177_v3 = vrot.slane %v4175_v28, 3  ;;  %4190 = vst [vmem:[#allocation22 + $0x20] sm:$0xff] %v4150_v23 }
 0x4f1   :  { %4191 = vst [vmem:[#allocation22 + $0x28] sm:$0xff] %v4159_v31 }
 0x4f2   :  { %4192 = vst [vmem:[#allocation22 + $0x30] sm:$0xff] %v4168_v24 }
 0x4f3   :  { %4193 = vst [vmem:[#allocation22 + $0x38] sm:$0xff] %v4177_v3 }
 0x4f4   :  { %4197 = vsyncadd [#allocation4], 672  ;;  %s4200_s2 = sshll.u32 %s7309_s14, 4  ;;  %s6830_s29 = smov [#allocation19]   ;;  %s4201_s2 = int_to_ptr.hbm [resolvable:$true] %s4200_s2 }
 0x4f5   :  { %s4198_s4 = sshll.u32 %s6830_s29, 4  ;;  %s6831_s30 = smov 96   ;;  %s4199_s4 = int_to_ptr.vmem [resolvable:$true] %s4198_s4 }
 0x4f6   :  { %s6832_s0 = smov 6  }
 0x4f7   :  { %4206 = dma.vmem_to_hbm [thread:$0]  %s4199_s4, 96, %s4201_s2, [#allocation4], %s6831_s30, %s6831_s30, %s6832_s0  }
 0x4f8   :  { %4210 = vsyncadd [#allocation21], 896  ;;  %s4213_s16 = sshll.u32 %s7310_s15, 4  ;;  %s6833_s20 = smov [#allocation20]   ;;  %s4214_s16 = int_to_ptr.hbm [resolvable:$true] %s4213_s16 }
 0x4f9   :  { %s4211_s21 = sshll.u32 %s6833_s20, 4  ;;  %s4212_s21 = int_to_ptr.vmem [resolvable:$true] %s4211_s21 }
 0x4fa   :  { %4219 = dma.vmem_to_hbm [thread:$0]  %s4212_s21, 128, %s4214_s16, [#allocation21], %s6821_s18, %s6821_s18, %s6822_s19  }
 0x4fb   :  { %4223 = vsyncadd [#allocation21], 896  ;;  %s7347_s6 = sld [smem:[#allocation32_spill]]  ;;  %s6834_s10 = smov [#allocation22]  }
 0x4fc   :  { %s4224_s23 = sshll.u32 %s6834_s10, 4  ;;  %s4225_s23 = int_to_ptr.vmem [resolvable:$true] %s4224_s23 }
 0x501   :  { %s4226_s8 = sshll.u32 %s7347_s6, 4  ;;  %s4227_s8 = int_to_ptr.hbm [resolvable:$true] %s4226_s8 }
 0x502   :  { %4232 = dma.vmem_to_hbm [thread:$0]  %s4225_s23, 128, %s4227_s8, [#allocation21], %s6821_s18, %s6821_s18, %s6822_s19  }
 0x503   :  { %6807 = dma.done.wait [#allocation4], 768  }
 0x504   :  { %6808 = vsyncadd [#allocation4], 4294966528 }
 0x505   :  { %6809 = dma.done.wait [#allocation21], 2048  }
 0x506   :  { %6810 = vsyncadd [#allocation21], 4294965248 }
 0x507   :  { %4245 = vsyncpa [#allocation3], 1 }
 0x508   :  { %4246 = vsyncpa [#allocation6], 1 }
 0x509   :  { %4247 = vsyncpa [#allocation9], 1 }
 0x50a   :  { %4248 = vsyncpa [#allocation12], 1 }
 0x50b   :  { %4249 = vsyncpa [#allocation15], 1 }
 0x50c   :  { %4250 = vsyncpa [#allocation18], 1 }
 0x50d   :  { %4251 = vsyncpa [#allocation4], 1 }
 0x50e   :  { %4252 = vsyncpa [#allocation21], 1 }

</bundles_post_ra>
